<compile_context>
chip_gen: v7x
topology: tpu7x:2x2x1
jax: 0.10.0
libtpu: 0.0.40
codegen_flags: <defaults>
</compile_context>

<pallas_src>
import functools

import jax
import jax.numpy as jnp
from jax.experimental import pallas as pl
from jax.experimental.pallas import tpu as pltpu


# ----------------------------------------------------------------------------
# Pallas kernels
# ----------------------------------------------------------------------------
def _mm_bn_relu_kernel(x_ref, w_ref, s_ref, b_ref, o_ref):
    # x: (tile_m, K) bf16, w: (K, Cout) bf16, s/b: (1, Cout) f32
    acc = jnp.dot(x_ref[...], w_ref[...], preferred_element_type=jnp.float32)
    o_ref[...] = jnp.maximum(acc * s_ref[...] + b_ref[...], 0.0).astype(o_ref.dtype)


def _head_kernel(p_ref, w1_ref, s1_ref, b1_ref, wf_ref, bf_ref, o_ref, *, n, s):
    # conv1 (5x5 valid as a matmul) + BN + ReLU, then global avg pool + FC.
    # p: (n*s, 25*128) bf16, w1: (25*128, 512) bf16, s1/b1: (1, 512) f32,
    # wf: (512, NCP) bf16, bf: (1, NCP) f32, o: (n, NCP) f32.
    acc = jnp.dot(p_ref[...], w1_ref[...], preferred_element_type=jnp.float32)
    h = jnp.maximum(acc * s1_ref[...] + b1_ref[...], 0.0)
    if s > 1:
        # General spatial case (never taken for the canonical aux-head input,
        # where conv1's output is 1x1 and adaptive_avg_pool2d is the identity).
        h = h.reshape(n, s, h.shape[-1]).mean(axis=1)
    logits = jnp.dot(h.astype(jnp.bfloat16), wf_ref[...],
                     preferred_element_type=jnp.float32) + bf_ref[...]
    o_ref[...] = logits.astype(o_ref.dtype)


# ----------------------------------------------------------------------------
# Kernel wrappers
# ----------------------------------------------------------------------------
def matmul_bn_relu(x, w, scale, bias, out_dtype=jnp.bfloat16, tile_m=512):
    """relu((x @ w) * scale + bias) in one fused Pallas kernel (bf16 MXU)."""
    M, K = x.shape
    Cout = w.shape[1]
    x = x.astype(jnp.bfloat16)
    w = w.astype(jnp.bfloat16)
    s2 = scale.reshape(1, Cout).astype(jnp.float32)
    b2 = bias.reshape(1, Cout).astype(jnp.float32)

    if M <= tile_m:
        # Single full-array block: no padding / slicing round trip.
        tm, Mp, xin = M, M, x
    else:
        tm = tile_m  # NOTE: for very large K, cap tile_m so 2*(tm*K+K*Cout+tm*Cout) fits VMEM (64 MiB on v7x).
        Mp = ((M + tm - 1) // tm) * tm
        xin = jnp.pad(x, ((0, Mp - M), (0, 0))) if Mp != M else x

    out = pl.pallas_call(
        _mm_bn_relu_kernel,
        out_shape=jax.ShapeDtypeStruct((Mp, Cout), out_dtype),
        grid=(Mp // tm,),
        in_specs=[
            pl.BlockSpec((tm, K), lambda i: (i, 0)),
            pl.BlockSpec((K, Cout), lambda i: (0, 0)),
            pl.BlockSpec((1, Cout), lambda i: (0, 0)),
            pl.BlockSpec((1, Cout), lambda i: (0, 0)),
        ],
        out_specs=pl.BlockSpec((tm, Cout), lambda i: (i, 0)),
        compiler_params=pltpu.CompilerParams(dimension_semantics=("parallel",)),
    )(xin, w, s2, b2)
    return out if Mp == M else out[:M]


def conv1_head(patches, w1_mat, s1, b1, wf, bf, *, n, s, num_classes):
    """Fused conv1(5x5)+BN+ReLU + global-avg-pool + FC -> logits (n, num_classes)."""
    M2, K1 = patches.shape
    C1 = w1_mat.shape[1]
    ncp = ((num_classes + 127) // 128) * 128  # lane-dense FC output
    wfp = jnp.pad(wf.astype(jnp.bfloat16), ((0, 0), (0, ncp - num_classes)))
    bfp = jnp.pad(bf.astype(jnp.float32).reshape(1, -1),
                  ((0, 0), (0, ncp - num_classes)))
    s1r = s1.reshape(1, C1).astype(jnp.float32)
    b1r = b1.reshape(1, C1).astype(jnp.float32)

    out = pl.pallas_call(
        functools.partial(_head_kernel, n=n, s=s),
        out_shape=jax.ShapeDtypeStruct((n, ncp), jnp.float32),
        grid=(1,),
        in_specs=[
            pl.BlockSpec((M2, K1), lambda i: (0, 0)),
            pl.BlockSpec((K1, C1), lambda i: (0, 0)),
            pl.BlockSpec((1, C1), lambda i: (0, 0)),
            pl.BlockSpec((1, C1), lambda i: (0, 0)),
            pl.BlockSpec((C1, ncp), lambda i: (0, 0)),
            pl.BlockSpec((1, ncp), lambda i: (0, 0)),
        ],
        out_specs=pl.BlockSpec((n, ncp), lambda i: (0, 0)),
        compiler_params=pltpu.CompilerParams(dimension_semantics=("arbitrary",)),
    )(patches.astype(jnp.bfloat16), w1_mat.astype(jnp.bfloat16), s1r, b1r, wfp, bfp)
    return out[:, :num_classes]


# ----------------------------------------------------------------------------
# BN folding (eval-mode BatchNorm, eps=1e-3)
# ----------------------------------------------------------------------------
def _bn_fold(p, eps=1e-3):
    scale = p["gamma"] / jnp.sqrt(p["var"] + eps)
    bias = p["beta"] - p["mean"] * scale
    return scale, bias


# ----------------------------------------------------------------------------
# InceptionAux forward (NCHW input, logits output — matches the PyTorch module)
# ----------------------------------------------------------------------------
def inception_aux_forward(x_nchw, params, num_classes):
    N, Cin, H, W = x_nchw.shape
    Ho, Wo = (H - 3) // 3 + 1, (W - 3) // 3 + 1  # avg_pool2d(k=3, s=3), no pad
    assert Ho >= 5 and Wo >= 5, "conv1 is a 5x5 valid conv"

    # ---- fused avg_pool(3,s3) + conv0(1x1) + BN + ReLU ----------------------
    # Non-overlapping pooling windows: patch extraction is a pure reshape /
    # transpose (no data duplication).  Tap order is (kh, kw, c).
    xb = x_nchw.astype(jnp.bfloat16)
    xc = xb[:, :, :3 * Ho, :3 * Wo]
    p0 = jnp.transpose(xc.reshape(N, Cin, Ho, 3, Wo, 3), (0, 2, 4, 3, 5, 1))
    p0 = p0.reshape(N * Ho * Wo, 9 * Cin)
    w0 = params["conv0"]["w"].reshape(128, Cin)          # (O, I)
    w0p = jnp.tile(w0.T, (9, 1))                          # (9*Cin, 128), tap-major
    s0, b0 = _bn_fold(params["conv0"])
    y0 = matmul_bn_relu(p0, w0p, s0 / 9.0, b0, out_dtype=jnp.bfloat16)
    y0 = y0.reshape(N, Ho, Wo, 128)

    # ---- fused conv1(5x5 valid) + BN + ReLU + global-avg-pool + FC ----------
    H2, W2 = Ho - 4, Wo - 4
    if H2 == 1 and W2 == 1:
        # 5x5 kernel covers the whole 5x5 map: im2col == plain reshape.
        p1 = y0.reshape(N, Ho * Wo * 128)
    else:
        # TODO(synk): general spatial case duplicates data via im2col; the
        # canonical aux head (17x17 -> 5x5 -> 1x1) never takes this path.
        cols = [y0[:, kh:kh + H2, kw:kw + W2, :]
                for kh in range(5) for kw in range(5)]
        p1 = jnp.concatenate(cols, axis=-1).reshape(N * H2 * W2, 25 * 128)

    w1_mat = jnp.transpose(params["conv1"]["w"], (2, 3, 1, 0)).reshape(25 * 128, 512)
    s1, b1 = _bn_fold(params["conv1"])
    wf = params["fc"]["w"].T                              # (512, num_classes)
    bf = params["fc"]["b"]
    return conv1_head(p1, w1_mat, s1, b1, wf, bf,
                      n=N, s=H2 * W2, num_classes=num_classes)


# ----------------------------------------------------------------------------
# Deterministic synthetic parameters (no checkpoint loading)
# ----------------------------------------------------------------------------
def init_params(key, in_channels, num_classes):
    k0, k1, k2 = jax.random.split(key, 3)

    def bn(k, c):
        kg, kb, km, kv = jax.random.split(k, 4)
        return {"gamma": 1.0 + 0.1 * jax.random.normal(kg, (c,), jnp.float32),
                "beta": 0.1 * jax.random.normal(kb, (c,), jnp.float32),
                "mean": 0.1 * jax.random.normal(km, (c,), jnp.float32),
                "var": 1.0 + jax.random.uniform(kv, (c,), jnp.float32)}

    kw0, kbn0 = jax.random.split(k0)
    kw1, kbn1 = jax.random.split(k1)
    kwf, kbf = jax.random.split(k2)
    return {
        "conv0": {"w": 0.1 * jax.random.normal(kw0, (128, in_channels, 1, 1), jnp.float32),
                  **bn(kbn0, 128)},
        "conv1": {"w": 0.02 * jax.random.normal(kw1, (512, 128, 5, 5), jnp.float32),
                  **bn(kbn1, 512)},
        "fc": {"w": 0.05 * jax.random.normal(kwf, (num_classes, 512), jnp.float32),
               "b": 0.1 * jax.random.normal(kbf, (num_classes,), jnp.float32)},
    }


# ----------------------------------------------------------------------------
# Pure-JAX f32 reference (mirrors the PyTorch forward)
# ----------------------------------------------------------------------------
def ref_forward(x, params, num_classes):
    p = jax.lax.reduce_window(x, 0.0, jax.lax.add,
                              (1, 1, 3, 3), (1, 1, 3, 3), "VALID") / 9.0

    def basic(y, pp):
        y = jax.lax.conv_general_dilated(
            y, pp["w"], (1, 1), "VALID",
            dimension_numbers=("NCHW", "OIHW", "NCHW"))
        sc, bi = _bn_fold(pp)
        return jnp.maximum(y * sc[None, :, None, None] + bi[None, :, None, None], 0.0)

    y = basic(p, params["conv0"])
    y = basic(y, params["conv1"])
    y = y.mean(axis=(2, 3))                               # adaptive_avg_pool2d((1,1))
    return y @ params["fc"]["w"].T + params["fc"]["b"]


if __name__ == "__main__":
    key = jax.random.PRNGKey(0)
    kx, kp = jax.random.split(key)

    N, CIN, H, W = 2, 16, 16, 16     # pooled -> 5x5, conv1 -> 1x1 (canonical aux shapes)
    NUM_CLASSES = 10

    x = jax.random.normal(kx, (N, CIN, H, W), jnp.float32)
    params = init_params(kp, CIN, NUM_CLASSES)

    fwd = jax.jit(functools.partial(inception_aux_forward, num_classes=NUM_CLASSES))
    out = jax.block_until_ready(fwd(x, params))
    assert out.shape == (N, NUM_CLASSES), out.shape

    ref = jax.block_until_ready(ref_forward(x, params, NUM_CLASSES))
    max_err = float(jnp.max(jnp.abs(out - ref)))
    assert jnp.allclose(out, ref, atol=2e-2, rtol=2e-2), max_err

    print("KERNEL_OK")
</pallas_src>

<mosaic_0001>
module attributes {stable_mosaic.version = 11 : i64} {
  func.func @_mm_bn_relu_kernel(%arg0: i32, %arg1: memref<50x144xbf16, #tpu.memory_space<vmem>>, %arg2: memref<144x128xbf16, #tpu.memory_space<vmem>>, %arg3: memref<1x128xf32, #tpu.memory_space<vmem>>, %arg4: memref<1x128xf32, #tpu.memory_space<vmem>>, %arg5: memref<50x128xbf16, #tpu.memory_space<vmem>>) attributes {dimension_semantics = [#tpu.dimension_semantics<parallel>], iteration_bounds = array<i64: 1>, scalar_prefetch = 0 : i64, scratch_operands = 0 : i64, tpu.core_type = #tpu.core_type<tc>, window_params = [{transform_indices = @transform_0, window_bounds = array<i64: 50, 144>}, {pipeline_mode = #tpu.pipeline_mode<synchronous>, transform_indices = @transform_1, window_bounds = array<i64: 144, 128>}, {pipeline_mode = #tpu.pipeline_mode<synchronous>, transform_indices = @transform_2, window_bounds = array<i64: 1, 128>}, {pipeline_mode = #tpu.pipeline_mode<synchronous>, transform_indices = @transform_3, window_bounds = array<i64: 1, 128>}, {transform_indices = @transform_4, window_bounds = array<i64: 50, 128>}]} {
    %c0 = arith.constant 0 : index
    %c0_0 = arith.constant 0 : index
    %0 = vector.load %arg1[%c0, %c0_0] : memref<50x144xbf16, #tpu.memory_space<vmem>>, vector<50x144xbf16>
    %c0_1 = arith.constant 0 : index
    %c0_2 = arith.constant 0 : index
    %1 = vector.load %arg2[%c0_1, %c0_2] : memref<144x128xbf16, #tpu.memory_space<vmem>>, vector<144x128xbf16>
    %cst = arith.constant dense<0.000000e+00> : vector<50x128xf32>
    %2 = tpu.matmul %0, %1, %cst {dimension_numbers = #tpu.dot_dimension_numbers<[1], [0], [0], [1], [0, 0, 1, 1], [], []>} : vector<50x144xbf16>, vector<144x128xbf16>, vector<50x128xf32> -> vector<50x128xf32>
    %c0_3 = arith.constant 0 : index
    %c0_4 = arith.constant 0 : index
    %3 = vector.load %arg3[%c0_3, %c0_4] : memref<1x128xf32, #tpu.memory_space<vmem>>, vector<1x128xf32>
    %4 = vector.broadcast %3 : vector<1x128xf32> to vector<50x128xf32>
    %5 = arith.mulf %2, %4 : vector<50x128xf32>
    %c0_5 = arith.constant 0 : index
    %c0_6 = arith.constant 0 : index
    %6 = vector.load %arg4[%c0_5, %c0_6] : memref<1x128xf32, #tpu.memory_space<vmem>>, vector<1x128xf32>
    %7 = vector.broadcast %6 : vector<1x128xf32> to vector<50x128xf32>
    %8 = arith.addf %5, %7 : vector<50x128xf32>
    %cst_7 = arith.constant 0.000000e+00 : f32
    %9 = vector.broadcast %cst_7 : f32 to vector<50x128xf32>
    %10 = arith.maximumf %8, %9 : vector<50x128xf32>
    %11 = arith.truncf %10 : vector<50x128xf32> to vector<50x128xbf16>
    %c0_8 = arith.constant 0 : index
    %c0_9 = arith.constant 0 : index
    %12 = vector.load %arg5[%c0_8, %c0_9] : memref<50x128xbf16, #tpu.memory_space<vmem>>, vector<50x128xbf16>
    tpu.vector_store %arg5[%c0_8, %c0_9], %11 {strides = array<i32>} : memref<50x128xbf16, #tpu.memory_space<vmem>>, vector<50x128xbf16>,
    return
  }
  func.func @transform_0(%arg0: i32) -> (i32, i32) {
    %c0_i32 = arith.constant 0 : i32
    %c0_i32_0 = arith.constant 0 : i32
    return %arg0, %c0_i32 : i32, i32
  }
  func.func @transform_1(%arg0: i32) -> (i32, i32) {
    %c0_i32 = arith.constant 0 : i32
    %c0_i32_0 = arith.constant 0 : i32
    %c0_i32_1 = arith.constant 0 : i32
    return %c0_i32, %c0_i32_0 : i32, i32
  }
  func.func @transform_2(%arg0: i32) -> (i32, i32) {
    %c0_i32 = arith.constant 0 : i32
    %c0_i32_0 = arith.constant 0 : i32
    %c0_i32_1 = arith.constant 0 : i32
    return %c0_i32, %c0_i32_0 : i32, i32
  }
  func.func @transform_3(%arg0: i32) -> (i32, i32) {
    %c0_i32 = arith.constant 0 : i32
    %c0_i32_0 = arith.constant 0 : i32
    %c0_i32_1 = arith.constant 0 : i32
    return %c0_i32, %c0_i32_0 : i32, i32
  }
  func.func @transform_4(%arg0: i32) -> (i32, i32) {
    %c0_i32 = arith.constant 0 : i32
    %c0_i32_0 = arith.constant 0 : i32
    return %arg0, %c0_i32 : i32, i32
  }
}

module attributes {stable_mosaic.version = 11 : i64} {
  func.func @_head_kernel(%arg0: i32, %arg1: memref<2x3200xbf16, #tpu.memory_space<vmem>>, %arg2: memref<3200x512xbf16, #tpu.memory_space<vmem>>, %arg3: memref<1x512xf32, #tpu.memory_space<vmem>>, %arg4: memref<1x512xf32, #tpu.memory_space<vmem>>, %arg5: memref<512x128xbf16, #tpu.memory_space<vmem>>, %arg6: memref<1x128xf32, #tpu.memory_space<vmem>>, %arg7: memref<2x128xf32, #tpu.memory_space<vmem>>) attributes {dimension_semantics = [#tpu.dimension_semantics<arbitrary>], iteration_bounds = array<i64: 1>, scalar_prefetch = 0 : i64, scratch_operands = 0 : i64, tpu.core_type = #tpu.core_type<tc>, window_params = [{pipeline_mode = #tpu.pipeline_mode<synchronous>, transform_indices = @transform_0, window_bounds = array<i64: 2, 3200>}, {pipeline_mode = #tpu.pipeline_mode<synchronous>, transform_indices = @transform_1, window_bounds = array<i64: 3200, 512>}, {pipeline_mode = #tpu.pipeline_mode<synchronous>, transform_indices = @transform_2, window_bounds = array<i64: 1, 512>}, {pipeline_mode = #tpu.pipeline_mode<synchronous>, transform_indices = @transform_3, window_bounds = array<i64: 1, 512>}, {pipeline_mode = #tpu.pipeline_mode<synchronous>, transform_indices = @transform_4, window_bounds = array<i64: 512, 128>}, {pipeline_mode = #tpu.pipeline_mode<synchronous>, transform_indices = @transform_5, window_bounds = array<i64: 1, 128>}, {pipeline_mode = #tpu.pipeline_mode<synchronous>, transform_indices = @transform_6, window_bounds = array<i64: 2, 128>}]} {
    %c0 = arith.constant 0 : index
    %c0_0 = arith.constant 0 : index
    %0 = vector.load %arg1[%c0, %c0_0] : memref<2x3200xbf16, #tpu.memory_space<vmem>>, vector<2x3200xbf16>
    %c0_1 = arith.constant 0 : index
    %c0_2 = arith.constant 0 : index
    %1 = vector.load %arg2[%c0_1, %c0_2] : memref<3200x512xbf16, #tpu.memory_space<vmem>>, vector<3200x512xbf16>
    %cst = arith.constant dense<0.000000e+00> : vector<2x512xf32>
    %2 = tpu.matmul %0, %1, %cst {dimension_numbers = #tpu.dot_dimension_numbers<[1], [0], [0], [1], [0, 0, 1, 1], [], []>} : vector<2x3200xbf16>, vector<3200x512xbf16>, vector<2x512xf32> -> vector<2x512xf32>
    %c0_3 = arith.constant 0 : index
    %c0_4 = arith.constant 0 : index
    %3 = vector.load %arg3[%c0_3, %c0_4] : memref<1x512xf32, #tpu.memory_space<vmem>>, vector<1x512xf32>
    %4 = vector.broadcast %3 : vector<1x512xf32> to vector<2x512xf32>
    %5 = arith.mulf %2, %4 : vector<2x512xf32>
    %c0_5 = arith.constant 0 : index
    %c0_6 = arith.constant 0 : index
    %6 = vector.load %arg4[%c0_5, %c0_6] : memref<1x512xf32, #tpu.memory_space<vmem>>, vector<1x512xf32>
    %7 = vector.broadcast %6 : vector<1x512xf32> to vector<2x512xf32>
    %8 = arith.addf %5, %7 : vector<2x512xf32>
    %cst_7 = arith.constant 0.000000e+00 : f32
    %9 = vector.broadcast %cst_7 : f32 to vector<2x512xf32>
    %10 = arith.maximumf %8, %9 : vector<2x512xf32>
    %11 = arith.truncf %10 : vector<2x512xf32> to vector<2x512xbf16>
    %c0_8 = arith.constant 0 : index
    %c0_9 = arith.constant 0 : index
    %12 = vector.load %arg5[%c0_8, %c0_9] : memref<512x128xbf16, #tpu.memory_space<vmem>>, vector<512x128xbf16>
    %cst_10 = arith.constant dense<0.000000e+00> : vector<2x128xf32>
    %13 = tpu.matmul %11, %12, %cst_10 {dimension_numbers = #tpu.dot_dimension_numbers<[1], [0], [0], [1], [0, 0, 1, 1], [], []>} : vector<2x512xbf16>, vector<512x128xbf16>, vector<2x128xf32> -> vector<2x128xf32>
    %c0_11 = arith.constant 0 : index
    %c0_12 = arith.constant 0 : index
    %14 = vector.load %arg6[%c0_11, %c0_12] : memref<1x128xf32, #tpu.memory_space<vmem>>, vector<1x128xf32>
    %15 = vector.broadcast %14 : vector<1x128xf32> to vector<2x128xf32>
    %16 = arith.addf %13, %15 : vector<2x128xf32>
    %c0_13 = arith.constant 0 : index
    %c0_14 = arith.constant 0 : index
    %17 = vector.load %arg7[%c0_13, %c0_14] : memref<2x128xf32, #tpu.memory_space<vmem>>, vector<2x128xf32>
    tpu.vector_store %arg7[%c0_13, %c0_14], %16 {strides = array<i32>} : memref<2x128xf32, #tpu.memory_space<vmem>>, vector<2x128xf32>,
    return
  }
  func.func @transform_0(%arg0: i32) -> (i32, i32) {
    %c0_i32 = arith.constant 0 : i32
    %c0_i32_0 = arith.constant 0 : i32
    %c0_i32_1 = arith.constant 0 : i32
    return %c0_i32, %c0_i32_0 : i32, i32
  }
  func.func @transform_1(%arg0: i32) -> (i32, i32) {
    %c0_i32 = arith.constant 0 : i32
    %c0_i32_0 = arith.constant 0 : i32
    %c0_i32_1 = arith.constant 0 : i32
    return %c0_i32, %c0_i32_0 : i32, i32
  }
  func.func @transform_2(%arg0: i32) -> (i32, i32) {
    %c0_i32 = arith.constant 0 : i32
    %c0_i32_0 = arith.constant 0 : i32
    %c0_i32_1 = arith.constant 0 : i32
    return %c0_i32, %c0_i32_0 : i32, i32
  }
  func.func @transform_3(%arg0: i32) -> (i32, i32) {
    %c0_i32 = arith.constant 0 : i32
    %c0_i32_0 = arith.constant 0 : i32
    %c0_i32_1 = arith.constant 0 : i32
    return %c0_i32, %c0_i32_0 : i32, i32
  }
  func.func @transform_4(%arg0: i32) -> (i32, i32) {
    %c0_i32 = arith.constant 0 : i32
    %c0_i32_0 = arith.constant 0 : i32
    %c0_i32_1 = arith.constant 0 : i32
    return %c0_i32, %c0_i32_0 : i32, i32
  }
  func.func @transform_5(%arg0: i32) -> (i32, i32) {
    %c0_i32 = arith.constant 0 : i32
    %c0_i32_0 = arith.constant 0 : i32
    %c0_i32_1 = arith.constant 0 : i32
    return %c0_i32, %c0_i32_0 : i32, i32
  }
  func.func @transform_6(%arg0: i32) -> (i32, i32) {
    %c0_i32 = arith.constant 0 : i32
    %c0_i32_0 = arith.constant 0 : i32
    %c0_i32_1 = arith.constant 0 : i32
    return %c0_i32, %c0_i32_0 : i32, i32
  }
}

</mosaic_0001>

<bundles_post_ra>
// kernel: inception_aux_forward.2
= control target key start
LH: loop header
LB: loop body
LE: loop exit
PB: predicated region body
PF: predicated region fallthrough
CT: control target
= control target key end

     0   :  { %v375_v0 = vmov 0   ;;  %vm130_vm0 = vcmask 130048   ;;  %s471_s1 = inlined_call_operand.vmem [shape: bf16[144,128], index: 1, kind: input, shape index: {}]   ;;  %s472_s0 = inlined_call_operand.vmem [shape: bf16[50,144], index: 0, kind: input, shape index: {}]   ;;  %s473_s2 = inlined_call_operand.vmem [shape: f32[1,128], index: 2, kind: input, shape index: {}]   ;;  %s474_s3 = inlined_call_operand.vmem [shape: f32[1,128], index: 3, kind: input, shape index: {}]   ;;  %s475_s4 = inlined_call_operand.vmem [shape: bf16[50,128], index: 4, kind: output, shape index: {}]  }
   0x1   :  { %143 = vmatprep.subr.bf16.mxu0 %v375_v0  ;;  %336 = vmatprep.subr.bf16.mxu1 %v375_v0  ;;  %v355_v1 = vld [vmem:[%s471_s1] sm:$0xff]   ;;  %v356_v2 = vld [vmem:[%s471_s1 + $0x8] sm:$0xff]   ;;  %v357_v3 = vld [vmem:[%s471_s1 + $0x10] sm:$0xff]  }
   0x2   :  { %144 = vmatpush1.bf16.msra.mxu0 %v355_v1  ;;  %345 = vmatpush1.bf16.msra.mxu1 %v355_v1  ;;  %v358_v4 = vld [vmem:[%s471_s1 + $0x18] sm:$0xff]   ;;  %v366_v5 = vld [vmem:[%s472_s0 + $0x4] ss:$8 sps:$4 sm:$0xff]   ;;  %v361_v9 = vld [vmem:[%s471_s1 + $0x30] sm:$0xff]  }
   0x3   :  { %145 = vmatprep.subr.bf16.mxu0 %v375_v0  ;;  %337 = vmatprep.subr.bf16.mxu1 %v375_v0  ;;  %v369_v6 = vld [vmem:[%s472_s0 + $0x24] ss:$8 sps:$4 sm:$0xff]   ;;  %v362_v10 = vld [vmem:[%s471_s1 + $0x38] sm:$0xff]   ;;  %v24_v12 = vld [vmem:[%s472_s0 + $0x30] sm:$0x11] }
   0x4   :  { %299 = vmatprep.mubr.msk.bf16.mxu0 %vm130_vm0, %v366_v5  ;;  %301 = vmatprep.mubr.msk.bf16.mxu1 %vm130_vm0, %v369_v6  ;;  %v359_v7 = vld [vmem:[%s471_s1 + $0x20] sm:$0xff]   ;;  %v360_v8 = vld [vmem:[%s471_s1 + $0x28] sm:$0xff]   ;;  %v370_v15 = vld [vmem:[%s472_s0 + $0x14] ss:$8 sps:$4 sm:$0xff]   ;;  %v289_v16 = vcombine.high %v24_v12, %v24_v12  ;;  %v288_v18 = vcombine.low %v24_v12, %v24_v12 }
   0x5   :  { %v363_v11 = vld [vmem:[%s471_s1 + $0x40] sm:$0xff]   ;;  %v373_v17 = vld [vmem:[%s472_s0 + $0x10] ss:$8 sps:$4 sm:$0xff]  }
   0x6   :  { %146 = vmatpush1.bf16.msra.mxu0 %v356_v2  ;;  %346 = vmatpush1.bf16.msra.mxu1 %v356_v2  ;;  %v364_v13 = vld [vmem:[%s472_s0] ss:$8 sps:$4 sm:$0xff]  }
   0x7   :  { %147 = vmatprep.subr.bf16.mxu0 %v375_v0  ;;  %338 = vmatprep.subr.bf16.mxu1 %v375_v0  ;;  %v367_v14 = vld [vmem:[%s472_s0 + $0x20] ss:$8 sps:$4 sm:$0xff]  }
   0x8   :  { %v303_v19 = vld [vmem:[%s473_s2] ss:$0 sm:$0xff] }
   0x9   :  { %v304_v21 = vld [vmem:[%s474_s3] ss:$0 sm:$0xff] }
   0xa   :  { %148 = vmatpush1.bf16.msra.mxu0 %v357_v3  ;;  %347 = vmatpush1.bf16.msra.mxu1 %v357_v3 }
   0xb   :  { %149 = vmatprep.subr.bf16.mxu0 %v375_v0  ;;  %339 = vmatprep.subr.bf16.mxu1 %v375_v0 }
   0xe   :  { %150 = vmatpush1.bf16.msra.mxu0 %v358_v4  ;;  %348 = vmatpush1.bf16.msra.mxu1 %v358_v4 }
   0xf   :  { %151 = vmatprep.subr.bf16.mxu0 %v375_v0  ;;  %340 = vmatprep.subr.bf16.mxu1 %v375_v0 }
  0x12   :  { %152 = vmatpush1.bf16.msra.mxu0 %v359_v7  ;;  %349 = vmatpush1.bf16.msra.mxu1 %v359_v7 }
  0x13   :  { %153 = vmatprep.subr.bf16.mxu0 %v375_v0  ;;  %341 = vmatprep.subr.bf16.mxu1 %v375_v0 }
  0x16   :  { %154 = vmatpush1.bf16.msra.mxu0 %v360_v8  ;;  %350 = vmatpush1.bf16.msra.mxu1 %v360_v8 }
  0x17   :  { %155 = vmatprep.subr.bf16.mxu0 %v375_v0  ;;  %342 = vmatprep.subr.bf16.mxu1 %v375_v0 }
  0x1a   :  { %156 = vmatpush1.bf16.msra.mxu0 %v361_v9  ;;  %351 = vmatpush1.bf16.msra.mxu1 %v361_v9 }
  0x1b   :  { %157 = vmatprep.subr.bf16.mxu0 %v375_v0  ;;  %343 = vmatprep.subr.bf16.mxu1 %v375_v0 }
  0x1e   :  { %158 = vmatpush1.bf16.msra.mxu0 %v362_v10  ;;  %352 = vmatpush1.bf16.msra.mxu1 %v362_v10 }
  0x1f   :  { %159 = vmatprep.subr.bf16.mxu0 %v375_v0  ;;  %344 = vmatprep.subr.bf16.mxu1 %v375_v0 }
  0x22   :  { %160 = vmatpush1.bf16.msra.mxu0 %v363_v11  ;;  %353 = vmatpush1.bf16.msra.mxu1 %v363_v11 }
  0x25   :  { %176 = vmatmul.mubr.bf16.vlgmr.msra.gmra.mrb[0].mxu0 %v364_v13  ;;  %192 = vmatmul.mubr.bf16.vlgmr.msra.gmra.mrb[0].mxu1 %v367_v14 }
  0x26   :  { %300 = vmatprep.mubr.msk.bf16.mxu0 %vm130_vm0, %v370_v15  ;;  %302 = vmatprep.mubr.msk.bf16.mxu1 %vm130_vm0, %v289_v16 }
  0x2d   :  { %184 = vmatmul.mubr.bf16.gmra.mrb[4].mxu0 %v373_v17  ;;  %200 = vmatmul.mubr.bf16.gmra.mrb[4].mxu1 %v288_v18 }
  0xf8   :  { %v177_v20 = vpop.f32.mrb[0].mxu0  ;;  %v193_v22 = vpop.f32.mrb[0].mxu1 }
  0xf9   :  { %v214_v23 = vmul.f32 %v303_v19, %v177_v20  ;;  %v218_v24 = vmul.f32 %v303_v19, %v193_v22  ;;  %v179_v25 = vpop.f32.mrb[1].mxu0  ;;  %v195_v26 = vpop.f32.mrb[1].mxu1 }
  0xfa   :  { %v180_v27 = vpop.f32.mrb[2].mxu0  ;;  %v196_v28 = vpop.f32.mrb[2].mxu1 }
  0xfb   :  { %v228_v29 = vadd.f32 %v304_v21, %v214_v23  ;;  %v232_v30 = vadd.f32 %v304_v21, %v218_v24  ;;  %v215_v31 = vmul.f32 %v303_v19, %v180_v27  ;;  %v219_v32 = vmul.f32 %v303_v19, %v196_v28  ;;  %v182_v33 = vpop.f32.mrb[3].mxu0  ;;  %v198_v34 = vpop.f32.mrb[3].mxu1 }
  0xfd   :  { %v239_v35 = vmax.f32 %v232_v30, 0.0  ;;  %v229_v36 = vadd.f32 %v304_v21, %v215_v31  ;;  %v233_v37 = vadd.f32 %v304_v21, %v219_v32  ;;  %v235_v38 = vmax.f32 %v228_v29, 0.0 }
  0xff   :  { %v236_v39 = vmax.f32 %v229_v36, 0.0  ;;  %v240_v40 = vmax.f32 %v233_v37, 0.0 }
 0x100   :  { %v185_v41 = vpop.f32.mrb[4].mxu0  ;;  %v201_v42 = vpop.f32.mrb[4].mxu1 }
 0x101   :  { %v322_v43 = vpack.c.bf16 %v236_v39, %v235_v38  ;;  %v332_v44 = vpack.c.bf16 %v240_v40, %v239_v35  ;;  %v216_v45 = vmul.f32 %v303_v19, %v185_v41  ;;  %v220_v46 = vmul.f32 %v303_v19, %v201_v42  ;;  %v187_v47 = vpop.f32.mrb[5].mxu0  ;;  %v203_v48 = vpop.f32.mrb[5].mxu1 }
 0x102   :  { %v188_v49 = vpop.f32.mrb[6].mxu0  ;;  %v204_v50 = vpop.f32.mrb[6].mxu1 }
 0x103   :  { %323 = vst [vmem:[%s475_s4] sm:$0xff] %v322_v43   ;;  %335 = vst [vmem:[%s475_s4 + $0x10] sm:$0xff] %v332_v44   ;;  %v230_v51 = vadd.f32 %v304_v21, %v216_v45  ;;  %v234_v52 = vadd.f32 %v304_v21, %v220_v46  ;;  %v217_v53 = vmul.f32 %v303_v19, %v188_v49  ;;  %v190_v54 = vpop.f32.mrb[7].mxu0  ;;  %v205_v55 = vpop.f32.mrb[7].mxu1 }
 0x105   :  { %v241_v56 = vmax.f32 %v234_v52, 0.0  ;;  %v231_v57 = vadd.f32 %v304_v21, %v217_v53  ;;  %v237_v58 = vmax.f32 %v230_v51, 0.0 }
 0x107   :  { %v318_v59 = vpack.c.bf16 %v241_v56, %v241_v56  ;;  %v238_v60 = vmax.f32 %v231_v57, 0.0 }
 0x109   :  { %277 = vst [vmem:[%s475_s4 + $0x18] sm:$0x1] %v318_v59  ;;  %v327_v61 = vpack.c.bf16 %v238_v60, %v237_v58 }
 0x10b   :  { %334 = vst [vmem:[%s475_s4 + $0x8] sm:$0xff] %v327_v61  }

// kernel: inception_aux_forward.3
= control target key start
LH: loop header
LB: loop body
LE: loop exit
PB: predicated region body
PF: predicated region fallthrough
CT: control target
= control target key end

     0   :  { %v8741_v36 = vmov 1966171168   ;;  %v837_v38 = vlaneseq  ;;  %s11439_s0 = inlined_call_operand.vmem [shape: bf16[2,3200], index: 0, kind: input, shape index: {}]   ;;  %s11440_s1 = inlined_call_operand.vmem [shape: bf16[3200,512], index: 1, kind: input, shape index: {}]   ;;  %s11441_s2 = inlined_call_operand.vmem [shape: f32[1,512], index: 2, kind: input, shape index: {}]   ;;  %s11442_s3 = inlined_call_operand.vmem [shape: f32[1,512], index: 3, kind: input, shape index: {}]   ;;  %s11443_s4 = inlined_call_operand.vmem [shape: bf16[512,128], index: 4, kind: input, shape index: {}]   ;;  %s11444_s5 = inlined_call_operand.vmem [shape: f32[1,128], index: 5, kind: input, shape index: {}]   ;;  %s11445_s6 = inlined_call_operand.hbm [shape: f32[2,128], index: 6, kind: output, shape index: {}]  }
   0x1   :  { %v7480_v0 = vld [vmem:[%s11440_s1 + $0x4] ss:$16 sps:$4 sm:$0xff]   ;;  %v7482_v1 = vld [vmem:[%s11440_s1 + $0xc] ss:$16 sps:$4 sm:$0xff]   ;;  %v7484_v2 = vld [vmem:[%s11440_s1] ss:$16 sps:$4 sm:$0xff]   ;;  %v835_v37 = vunpack.c.l.s4 %v8741_v36 }
   0x2   :  { %5019 = vmatprep.subr.bf16.mxu0 %v7480_v0  ;;  %v7485_v3 = vld [vmem:[%s11440_s1 + $0x8] ss:$16 sps:$4 sm:$0xff]   ;;  %5552 = vmatprep.subr.bf16.mxu1 %v7482_v1  ;;  %v7486_v4 = vld [vmem:[%s11440_s1 + $0x24] ss:$16 sps:$4 sm:$0xff]   ;;  %v7488_v5 = vld [vmem:[%s11440_s1 + $0x2c] ss:$16 sps:$4 sm:$0xff]  }
   0x3   :  { %5020 = vmatpush1.bf16.msra.mxu0 %v7484_v2  ;;  %5553 = vmatpush1.bf16.msra.mxu1 %v7485_v3  ;;  %v7490_v6 = vld [vmem:[%s11440_s1 + $0x20] ss:$16 sps:$4 sm:$0xff]   ;;  %v7491_v7 = vld [vmem:[%s11440_s1 + $0x28] ss:$16 sps:$4 sm:$0xff]   ;;  %v7492_v8 = vld [vmem:[%s11440_s1 + $0x44] ss:$16 sps:$4 sm:$0xff]   ;;  %v836_v42 = vunpack.c.0.s8 %v835_v37 }
   0x4   :  { %5021 = vmatprep.subr.bf16.mxu0 %v7486_v4  ;;  %5554 = vmatprep.subr.bf16.mxu1 %v7488_v5  ;;  %v7494_v9 = vld [vmem:[%s11440_s1 + $0x4c] ss:$16 sps:$4 sm:$0xff]   ;;  %v7496_v10 = vld [vmem:[%s11440_s1 + $0x40] ss:$16 sps:$4 sm:$0xff]   ;;  %v7497_v11 = vld [vmem:[%s11440_s1 + $0x48] ss:$16 sps:$4 sm:$0xff]  }
   0x5   :  { %v7498_v12 = vld [vmem:[%s11440_s1 + $0x64] ss:$16 sps:$4 sm:$0xff]   ;;  %v7500_v13 = vld [vmem:[%s11440_s1 + $0x6c] ss:$16 sps:$4 sm:$0xff]   ;;  %v7502_v14 = vld [vmem:[%s11440_s1 + $0x60] ss:$16 sps:$4 sm:$0xff]  }
   0x6   :  { %v7503_v15 = vld [vmem:[%s11440_s1 + $0x68] ss:$16 sps:$4 sm:$0xff]   ;;  %v7504_v16 = vld [vmem:[%s11440_s1 + $0x84] ss:$16 sps:$4 sm:$0xff]   ;;  %v7506_v17 = vld [vmem:[%s11440_s1 + $0x8c] ss:$16 sps:$4 sm:$0xff]  }
   0x7   :  { %5022 = vmatpush1.bf16.msra.mxu0 %v7490_v6  ;;  %5555 = vmatpush1.bf16.msra.mxu1 %v7491_v7  ;;  %v7508_v18 = vld [vmem:[%s11440_s1 + $0x80] ss:$16 sps:$4 sm:$0xff]   ;;  %v7509_v19 = vld [vmem:[%s11440_s1 + $0x88] ss:$16 sps:$4 sm:$0xff]   ;;  %v7510_v20 = vld [vmem:[%s11440_s1 + $0xa4] ss:$16 sps:$4 sm:$0xff]  }
   0x8   :  { %5023 = vmatprep.subr.bf16.mxu0 %v7492_v8  ;;  %5556 = vmatprep.subr.bf16.mxu1 %v7494_v9  ;;  %v7512_v21 = vld [vmem:[%s11440_s1 + $0xac] ss:$16 sps:$4 sm:$0xff]   ;;  %v7514_v22 = vld [vmem:[%s11440_s1 + $0xa0] ss:$16 sps:$4 sm:$0xff]   ;;  %v7515_v23 = vld [vmem:[%s11440_s1 + $0xa8] ss:$16 sps:$4 sm:$0xff]  }
   0x9   :  { %v7516_v24 = vld [vmem:[%s11440_s1 + $0xc4] ss:$16 sps:$4 sm:$0xff]   ;;  %v7518_v25 = vld [vmem:[%s11440_s1 + $0xcc] ss:$16 sps:$4 sm:$0xff]   ;;  %v7520_v26 = vld [vmem:[%s11440_s1 + $0xc0] ss:$16 sps:$4 sm:$0xff]  }
   0xa   :  { %v7521_v27 = vld [vmem:[%s11440_s1 + $0xc8] ss:$16 sps:$4 sm:$0xff]   ;;  %v7522_v28 = vld [vmem:[%s11440_s1 + $0xe4] ss:$16 sps:$4 sm:$0xff]   ;;  %v7524_v29 = vld [vmem:[%s11440_s1 + $0xec] ss:$16 sps:$4 sm:$0xff]  }
   0xb   :  { %5024 = vmatpush1.bf16.msra.mxu0 %v7496_v10  ;;  %5557 = vmatpush1.bf16.msra.mxu1 %v7497_v11  ;;  %v7526_v30 = vld [vmem:[%s11440_s1 + $0xe0] ss:$16 sps:$4 sm:$0xff]   ;;  %v7527_v31 = vld [vmem:[%s11440_s1 + $0xe8] ss:$16 sps:$4 sm:$0xff]   ;;  %v7528_v32 = vld [vmem:[%s11440_s1 + $0x104] ss:$16 sps:$4 sm:$0xff]  }
   0xc   :  { %5025 = vmatprep.subr.bf16.mxu0 %v7498_v12  ;;  %5558 = vmatprep.subr.bf16.mxu1 %v7500_v13  ;;  %v7530_v33 = vld [vmem:[%s11440_s1 + $0x10c] ss:$16 sps:$4 sm:$0xff]   ;;  %v7532_v34 = vld [vmem:[%s11440_s1 + $0x100] ss:$16 sps:$4 sm:$0xff]   ;;  %v7533_v35 = vld [vmem:[%s11440_s1 + $0x108] ss:$16 sps:$4 sm:$0xff]  }
   0xd   :  { %v7534_v39 = vld [vmem:[%s11440_s1 + $0x124] ss:$16 sps:$4 sm:$0xff]   ;;  %v7536_v40 = vld [vmem:[%s11440_s1 + $0x12c] ss:$16 sps:$4 sm:$0xff]   ;;  %v7538_v41 = vld [vmem:[%s11440_s1 + $0x120] ss:$16 sps:$4 sm:$0xff]  }
   0xe   :  { %v8896_v43 = vshrl.u32 %v837_v38, 7  ;;  %v7539_v44 = vld [vmem:[%s11440_s1 + $0x128] ss:$16 sps:$4 sm:$0xff]   ;;  %v7540_v45 = vld [vmem:[%s11440_s1 + $0x144] ss:$16 sps:$4 sm:$0xff]  }
   0xf   :  { %5026 = vmatpush1.bf16.msra.mxu0 %v7502_v14  ;;  %5559 = vmatpush1.bf16.msra.mxu1 %v7503_v15  ;;  %v7542_v46 = vld [vmem:[%s11440_s1 + $0x14c] ss:$16 sps:$4 sm:$0xff]   ;;  %v7544_v47 = vld [vmem:[%s11440_s1 + $0x140] ss:$16 sps:$4 sm:$0xff]   ;;  %v7545_v48 = vld [vmem:[%s11440_s1 + $0x148] ss:$16 sps:$4 sm:$0xff]  }
  0x10   :  { %5027 = vmatprep.subr.bf16.mxu0 %v7504_v16  ;;  %5560 = vmatprep.subr.bf16.mxu1 %v7506_v17  ;;  %v8914_v49 = vsub.s32 %v836_v42, %v8896_v43  ;;  %v7546_v50 = vld [vmem:[%s11440_s1 + $0x164] ss:$16 sps:$4 sm:$0xff]   ;;  %v7548_v51 = vld [vmem:[%s11440_s1 + $0x16c] ss:$16 sps:$4 sm:$0xff]   ;;  %v7550_v53 = vld [vmem:[%s11440_s1 + $0x160] ss:$16 sps:$4 sm:$0xff]  }
  0x11   :  { %v8925_v52 = vld [vmem:[%s11439_s0] sm:$0xff]  ;;  %v7551_v55 = vld [vmem:[%s11440_s1 + $0x168] ss:$16 sps:$4 sm:$0xff]   ;;  %v7554_v57 = vld [vmem:[%s11440_s1 + $0x18c] ss:$16 sps:$4 sm:$0xff]  }
  0x12   :  { %v840_v54 = vrot.slane %v8925_v52, %v8914_v49  ;;  %v7552_v56 = vld [vmem:[%s11440_s1 + $0x184] ss:$16 sps:$4 sm:$0xff]   ;;  %v7556_v59 = vld [vmem:[%s11440_s1 + $0x180] ss:$16 sps:$4 sm:$0xff]   ;;  %v7557_v61 = vld [vmem:[%s11440_s1 + $0x188] ss:$16 sps:$4 sm:$0xff]  }
  0x13   :  { %5028 = vmatpush1.bf16.msra.mxu0 %v7508_v18  ;;  %5561 = vmatpush1.bf16.msra.mxu1 %v7509_v19  ;;  %v7558_v62 = vld [vmem:[%s11440_s1 + $0x1a4] ss:$16 sps:$4 sm:$0xff]   ;;  %v7560_v63 = vld [vmem:[%s11440_s1 + $0x1ac] ss:$16 sps:$4 sm:$0xff]   ;;  %v7562_v0 = vld [vmem:[%s11440_s1 + $0x1a0] ss:$16 sps:$4 sm:$0xff]  }
  0x14   :  { %5029 = vmatprep.subr.bf16.mxu0 %v7510_v20  ;;  %5562 = vmatprep.subr.bf16.mxu1 %v7512_v21  ;;  %v848_v58 = vcombine.high %v840_v54, %v840_v54  ;;  %v7563_v1 = vld [vmem:[%s11440_s1 + $0x1a8] ss:$16 sps:$4 sm:$0xff]   ;;  %v7564_v2 = vld [vmem:[%s11440_s1 + $0x1c4] ss:$16 sps:$4 sm:$0xff]   ;;  %v7566_v3 = vld [vmem:[%s11440_s1 + $0x1cc] ss:$16 sps:$4 sm:$0xff]   ;;  %v8994_v13 = vrot.slane %v840_v54, %v8914_v49 }
  0x15   :  { %v7568_v4 = vld [vmem:[%s11440_s1 + $0x1c0] ss:$16 sps:$4 sm:$0xff]   ;;  %v7569_v5 = vld [vmem:[%s11440_s1 + $0x1c8] ss:$16 sps:$4 sm:$0xff]   ;;  %v7570_v6 = vld [vmem:[%s11440_s1 + $0x1e4] ss:$16 sps:$4 sm:$0xff]  }
  0x16   :  { %v870_v60 = vrot.slane %v848_v58, %v8914_v49  ;;  %v7572_v7 = vld [vmem:[%s11440_s1 + $0x1ec] ss:$16 sps:$4 sm:$0xff]   ;;  %v7574_v8 = vld [vmem:[%s11440_s1 + $0x1e0] ss:$16 sps:$4 sm:$0xff]   ;;  %v7575_v9 = vld [vmem:[%s11440_s1 + $0x1e8] ss:$16 sps:$4 sm:$0xff]  }
  0x17   :  { %5030 = vmatpush1.bf16.msra.mxu0 %v7514_v22  ;;  %5563 = vmatpush1.bf16.msra.mxu1 %v7515_v23  ;;  %v7578_v10 = vld [vmem:[%s11440_s1 + $0x204] ss:$16 sps:$4 sm:$0xff]   ;;  %v7581_v11 = vld [vmem:[%s11440_s1 + $0x20c] ss:$16 sps:$4 sm:$0xff]   ;;  %v7576_v12 = vld [vmem:[%s11440_s1 + $0x200] ss:$16 sps:$4 sm:$0xff]  }
  0x18   :  { %5031 = vmatprep.subr.bf16.mxu0 %v7516_v24  ;;  %5564 = vmatprep.subr.bf16.mxu1 %v7518_v25  ;;  %v7579_v14 = vld [vmem:[%s11440_s1 + $0x208] ss:$16 sps:$4 sm:$0xff]   ;;  %v7584_v15 = vld [vmem:[%s11440_s1 + $0x224] ss:$16 sps:$4 sm:$0xff]   ;;  %v7587_v16 = vld [vmem:[%s11440_s1 + $0x22c] ss:$16 sps:$4 sm:$0xff]   ;;  %v880_v17 = vcombine.high %v870_v60, %v870_v60 }
  0x19   :  { %5051 = vmatprep.mubr.bf16.mxu0 %v870_v60  ;;  %5584 = vmatprep.mubr.bf16.mxu1 %v870_v60  ;;  %v7582_v18 = vld [vmem:[%s11440_s1 + $0x220] ss:$16 sps:$4 sm:$0xff]   ;;  %v7585_v19 = vld [vmem:[%s11440_s1 + $0x228] ss:$16 sps:$4 sm:$0xff]   ;;  %v7590_v20 = vld [vmem:[%s11440_s1 + $0x244] ss:$16 sps:$4 sm:$0xff]  }
  0x1a   :  { %v7593_v21 = vld [vmem:[%s11440_s1 + $0x24c] ss:$16 sps:$4 sm:$0xff]   ;;  %v7588_v22 = vld [vmem:[%s11440_s1 + $0x240] ss:$16 sps:$4 sm:$0xff]   ;;  %v7591_v23 = vld [vmem:[%s11440_s1 + $0x248] ss:$16 sps:$4 sm:$0xff]  }
  0x1b   :  { %5032 = vmatpush1.bf16.msra.mxu0 %v7520_v26  ;;  %5565 = vmatpush1.bf16.msra.mxu1 %v7521_v27  ;;  %v7596_v24 = vld [vmem:[%s11440_s1 + $0x264] ss:$16 sps:$4 sm:$0xff]   ;;  %v7599_v25 = vld [vmem:[%s11440_s1 + $0x26c] ss:$16 sps:$4 sm:$0xff]   ;;  %v7594_v26 = vld [vmem:[%s11440_s1 + $0x260] ss:$16 sps:$4 sm:$0xff]  }
  0x1c   :  { %5033 = vmatprep.subr.bf16.mxu0 %v7522_v28  ;;  %5566 = vmatprep.subr.bf16.mxu1 %v7524_v29  ;;  %v7597_v27 = vld [vmem:[%s11440_s1 + $0x268] ss:$16 sps:$4 sm:$0xff]   ;;  %v7602_v28 = vld [vmem:[%s11440_s1 + $0x284] ss:$16 sps:$4 sm:$0xff]   ;;  %v7605_v29 = vld [vmem:[%s11440_s1 + $0x28c] ss:$16 sps:$4 sm:$0xff]  }
  0x1d   :  { %v7614_v36 = vld [vmem:[%s11440_s1 + $0x2c4] ss:$16 sps:$4 sm:$0xff]   ;;  %v7617_v37 = vld [vmem:[%s11440_s1 + $0x2cc] ss:$16 sps:$4 sm:$0xff]   ;;  %v7612_v38 = vld [vmem:[%s11440_s1 + $0x2c0] ss:$16 sps:$4 sm:$0xff]  }
  0x1e   :  { %v7618_v42 = vld [vmem:[%s11440_s1 + $0x2e0] ss:$16 sps:$4 sm:$0xff]   ;;  %v7633_v54 = vld [vmem:[%s11440_s1 + $0x328] ss:$16 sps:$4 sm:$0xff]   ;;  %v7647_v60 = vld [vmem:[%s11440_s1 + $0x36c] ss:$16 sps:$4 sm:$0xff]  }
  0x1f   :  { %5034 = vmatpush1.bf16.msra.mxu0 %v7526_v30  ;;  %5567 = vmatpush1.bf16.msra.mxu1 %v7527_v31  ;;  %v7600_v30 = vld [vmem:[%s11440_s1 + $0x280] ss:$16 sps:$4 sm:$0xff]   ;;  %v7603_v31 = vld [vmem:[%s11440_s1 + $0x288] ss:$16 sps:$4 sm:$0xff]  }
  0x20   :  { %5035 = vmatprep.subr.bf16.mxu0 %v7528_v32  ;;  %5568 = vmatprep.subr.bf16.mxu1 %v7530_v33  ;;  %v7608_v32 = vld [vmem:[%s11440_s1 + $0x2a4] ss:$16 sps:$4 sm:$0xff]   ;;  %v7611_v33 = vld [vmem:[%s11440_s1 + $0x2ac] ss:$16 sps:$4 sm:$0xff]   ;;  %v7639_v58 = vld [vmem:[%s11440_s1 + $0x348] ss:$16 sps:$4 sm:$0xff]  }
  0x23   :  { %5036 = vmatpush1.bf16.msra.mxu0 %v7532_v34  ;;  %5569 = vmatpush1.bf16.msra.mxu1 %v7533_v35  ;;  %v7606_v34 = vld [vmem:[%s11440_s1 + $0x2a0] ss:$16 sps:$4 sm:$0xff]   ;;  %v7609_v35 = vld [vmem:[%s11440_s1 + $0x2a8] ss:$16 sps:$4 sm:$0xff]  }
  0x24   :  { %5037 = vmatprep.subr.bf16.mxu0 %v7534_v39  ;;  %5570 = vmatprep.subr.bf16.mxu1 %v7536_v40  ;;  %v7615_v39 = vld [vmem:[%s11440_s1 + $0x2c8] ss:$16 sps:$4 sm:$0xff]   ;;  %v7620_v40 = vld [vmem:[%s11440_s1 + $0x2e4] ss:$16 sps:$4 sm:$0xff]  }
  0x27   :  { %5038 = vmatpush1.bf16.msra.mxu0 %v7538_v41  ;;  %5571 = vmatpush1.bf16.msra.mxu1 %v7539_v44  ;;  %v7623_v41 = vld [vmem:[%s11440_s1 + $0x2ec] ss:$16 sps:$4 sm:$0xff]   ;;  %v7621_v44 = vld [vmem:[%s11440_s1 + $0x2e8] ss:$16 sps:$4 sm:$0xff]  }
  0x28   :  { %5039 = vmatprep.subr.bf16.mxu0 %v7540_v45  ;;  %5572 = vmatprep.subr.bf16.mxu1 %v7542_v46  ;;  %v7626_v45 = vld [vmem:[%s11440_s1 + $0x304] ss:$16 sps:$4 sm:$0xff]   ;;  %v7629_v46 = vld [vmem:[%s11440_s1 + $0x30c] ss:$16 sps:$4 sm:$0xff]  }
  0x2b   :  { %5040 = vmatpush1.bf16.msra.mxu0 %v7544_v47  ;;  %5573 = vmatpush1.bf16.msra.mxu1 %v7545_v48  ;;  %v7624_v47 = vld [vmem:[%s11440_s1 + $0x300] ss:$16 sps:$4 sm:$0xff]   ;;  %v7627_v48 = vld [vmem:[%s11440_s1 + $0x308] ss:$16 sps:$4 sm:$0xff]  }
  0x2c   :  { %5041 = vmatprep.subr.bf16.mxu0 %v7546_v50  ;;  %5574 = vmatprep.subr.bf16.mxu1 %v7548_v51  ;;  %v7632_v50 = vld [vmem:[%s11440_s1 + $0x324] ss:$16 sps:$4 sm:$0xff]   ;;  %v7635_v51 = vld [vmem:[%s11440_s1 + $0x32c] ss:$16 sps:$4 sm:$0xff]  }
  0x2f   :  { %5042 = vmatpush1.bf16.msra.mxu0 %v7550_v53  ;;  %5575 = vmatpush1.bf16.msra.mxu1 %v7551_v55  ;;  %v7630_v53 = vld [vmem:[%s11440_s1 + $0x320] ss:$16 sps:$4 sm:$0xff]   ;;  %v7638_v55 = vld [vmem:[%s11440_s1 + $0x344] ss:$16 sps:$4 sm:$0xff]  }
  0x30   :  { %5043 = vmatprep.subr.bf16.mxu0 %v7552_v56  ;;  %5576 = vmatprep.subr.bf16.mxu1 %v7554_v57  ;;  %v7641_v56 = vld [vmem:[%s11440_s1 + $0x34c] ss:$16 sps:$4 sm:$0xff]   ;;  %v7636_v57 = vld [vmem:[%s11440_s1 + $0x340] ss:$16 sps:$4 sm:$0xff]  }
  0x33   :  { %5044 = vmatpush1.bf16.msra.mxu0 %v7556_v59  ;;  %5577 = vmatpush1.bf16.msra.mxu1 %v7557_v61  ;;  %v7644_v59 = vld [vmem:[%s11440_s1 + $0x364] ss:$16 sps:$4 sm:$0xff]   ;;  %v7642_v61 = vld [vmem:[%s11440_s1 + $0x360] ss:$16 sps:$4 sm:$0xff]  }
  0x34   :  { %5045 = vmatprep.subr.bf16.mxu0 %v7558_v62  ;;  %5578 = vmatprep.subr.bf16.mxu1 %v7560_v63  ;;  %v7645_v62 = vld [vmem:[%s11440_s1 + $0x368] ss:$16 sps:$4 sm:$0xff]   ;;  %v7650_v63 = vld [vmem:[%s11440_s1 + $0x384] ss:$16 sps:$4 sm:$0xff]  }
  0x37   :  { %5046 = vmatpush1.bf16.msra.mxu0 %v7562_v0  ;;  %5579 = vmatpush1.bf16.msra.mxu1 %v7563_v1  ;;  %v7653_v0 = vld [vmem:[%s11440_s1 + $0x38c] ss:$16 sps:$4 sm:$0xff]   ;;  %v7648_v1 = vld [vmem:[%s11440_s1 + $0x380] ss:$16 sps:$4 sm:$0xff]  }
  0x38   :  { %5047 = vmatprep.subr.bf16.mxu0 %v7564_v2  ;;  %5580 = vmatprep.subr.bf16.mxu1 %v7566_v3  ;;  %v7651_v2 = vld [vmem:[%s11440_s1 + $0x388] ss:$16 sps:$4 sm:$0xff]   ;;  %v7656_v3 = vld [vmem:[%s11440_s1 + $0x3a4] ss:$16 sps:$4 sm:$0xff]  }
  0x3b   :  { %5048 = vmatpush1.bf16.msra.mxu0 %v7568_v4  ;;  %5581 = vmatpush1.bf16.msra.mxu1 %v7569_v5  ;;  %v7659_v4 = vld [vmem:[%s11440_s1 + $0x3ac] ss:$16 sps:$4 sm:$0xff]   ;;  %v7654_v5 = vld [vmem:[%s11440_s1 + $0x3a0] ss:$16 sps:$4 sm:$0xff]  }
  0x3c   :  { %5049 = vmatprep.subr.bf16.mxu0 %v7570_v6  ;;  %5582 = vmatprep.subr.bf16.mxu1 %v7572_v7  ;;  %v7657_v6 = vld [vmem:[%s11440_s1 + $0x3a8] ss:$16 sps:$4 sm:$0xff]   ;;  %v7662_v7 = vld [vmem:[%s11440_s1 + $0x3c4] ss:$16 sps:$4 sm:$0xff]  }
  0x3f   :  { %5050 = vmatpush1.bf16.msra.mxu0 %v7574_v8  ;;  %5583 = vmatpush1.bf16.msra.mxu1 %v7575_v9  ;;  %v7665_v8 = vld [vmem:[%s11440_s1 + $0x3cc] ss:$16 sps:$4 sm:$0xff]   ;;  %v833_v9 = vcombine.high %v8925_v52, %v8925_v52 }
  0x40   :  { %5060 = vmatprep.subr.bf16.mxu0 %v7578_v10  ;;  %5593 = vmatprep.subr.bf16.mxu1 %v7581_v11  ;;  %v7660_v10 = vld [vmem:[%s11440_s1 + $0x3c0] ss:$16 sps:$4 sm:$0xff]   ;;  %v7663_v11 = vld [vmem:[%s11440_s1 + $0x3c8] ss:$16 sps:$4 sm:$0xff]   ;;  %v7671_v52 = vld [vmem:[%s11440_s1 + $0x3ec] ss:$16 sps:$4 sm:$0xff]  }
  0x42   :  { %5052 = vmatmul.mubr.bf16.vlgmr.msra.gmra.mrb[0].mxu0 %v8994_v13  ;;  %5585 = vmatmul.mubr.bf16.vlgmr.msra.gmra.mrb[0].mxu1 %v8994_v13 }
  0x43   :  { %5061 = vmatpush1.bf16.msra.mxu0 %v7576_v12  ;;  %5594 = vmatpush1.bf16.msra.mxu1 %v7579_v14  ;;  %v7668_v12 = vld [vmem:[%s11440_s1 + $0x3e4] ss:$16 sps:$4 sm:$0xff]   ;;  %v9178_v14 = vrot.slane %v833_v9, %v8914_v49  ;;  %v7747_v9 = vld [vmem:[%s11440_s1 + $0x588] ss:$16 sps:$4 sm:$0xff]  }
  0x44   :  { %5062 = vmatprep.subr.bf16.mxu0 %v7584_v15  ;;  %5595 = vmatprep.subr.bf16.mxu1 %v7587_v16  ;;  %v7666_v15 = vld [vmem:[%s11440_s1 + $0x3e0] ss:$16 sps:$4 sm:$0xff]   ;;  %v7669_v16 = vld [vmem:[%s11440_s1 + $0x3e8] ss:$16 sps:$4 sm:$0xff]  }
  0x45   :  { %5092 = vmatprep.mubr.bf16.mxu0 %v880_v17  ;;  %5625 = vmatprep.mubr.bf16.mxu1 %v880_v17  ;;  %v7674_v17 = vld [vmem:[%s11440_s1 + $0x404] ss:$16 sps:$4 sm:$0xff]  }
  0x47   :  { %5063 = vmatpush1.bf16.msra.mxu0 %v7582_v18  ;;  %5596 = vmatpush1.bf16.msra.mxu1 %v7585_v19  ;;  %v7677_v18 = vld [vmem:[%s11440_s1 + $0x40c] ss:$16 sps:$4 sm:$0xff]   ;;  %v849_v19 = vcombine.high %v9178_v14, %v9178_v14 }
  0x48   :  { %5064 = vmatprep.subr.bf16.mxu0 %v7590_v20  ;;  %5597 = vmatprep.subr.bf16.mxu1 %v7593_v21  ;;  %v7672_v20 = vld [vmem:[%s11440_s1 + $0x400] ss:$16 sps:$4 sm:$0xff]   ;;  %v878_v21 = vcombine.high %v8994_v13, %v8994_v13 }
  0x49   :  { %v7678_v13 = vld [vmem:[%s11440_s1 + $0x420] ss:$16 sps:$4 sm:$0xff]  }
  0x4b   :  { %5065 = vmatpush1.bf16.msra.mxu0 %v7588_v22  ;;  %5598 = vmatpush1.bf16.msra.mxu1 %v7591_v23  ;;  %v7675_v22 = vld [vmem:[%s11440_s1 + $0x408] ss:$16 sps:$4 sm:$0xff]   ;;  %v7680_v23 = vld [vmem:[%s11440_s1 + $0x424] ss:$16 sps:$4 sm:$0xff]  }
  0x4c   :  { %5066 = vmatprep.subr.bf16.mxu0 %v7596_v24  ;;  %5599 = vmatprep.subr.bf16.mxu1 %v7599_v25  ;;  %v7683_v24 = vld [vmem:[%s11440_s1 + $0x42c] ss:$16 sps:$4 sm:$0xff]   ;;  %v9209_v25 = vrot.slane %v849_v19, %v8914_v49  ;;  %v7764_v19 = vld [vmem:[%s11440_s1 + $0x5e4] ss:$16 sps:$4 sm:$0xff]  }
  0x4f   :  { %5067 = vmatpush1.bf16.msra.mxu0 %v7594_v26  ;;  %5600 = vmatpush1.bf16.msra.mxu1 %v7597_v27  ;;  %v7681_v26 = vld [vmem:[%s11440_s1 + $0x428] ss:$16 sps:$4 sm:$0xff]   ;;  %v7686_v27 = vld [vmem:[%s11440_s1 + $0x444] ss:$16 sps:$4 sm:$0xff]  }
  0x50   :  { %5068 = vmatprep.subr.bf16.mxu0 %v7602_v28  ;;  %5601 = vmatprep.subr.bf16.mxu1 %v7605_v29  ;;  %v7689_v28 = vld [vmem:[%s11440_s1 + $0x44c] ss:$16 sps:$4 sm:$0xff]   ;;  %v7684_v29 = vld [vmem:[%s11440_s1 + $0x440] ss:$16 sps:$4 sm:$0xff]  }
  0x53   :  { %5069 = vmatpush1.bf16.msra.mxu0 %v7600_v30  ;;  %5602 = vmatpush1.bf16.msra.mxu1 %v7603_v31  ;;  %v7687_v30 = vld [vmem:[%s11440_s1 + $0x448] ss:$16 sps:$4 sm:$0xff]   ;;  %v7692_v31 = vld [vmem:[%s11440_s1 + $0x464] ss:$16 sps:$4 sm:$0xff]  }
  0x54   :  { %5070 = vmatprep.subr.bf16.mxu0 %v7608_v32  ;;  %5603 = vmatprep.subr.bf16.mxu1 %v7611_v33  ;;  %v7695_v32 = vld [vmem:[%s11440_s1 + $0x46c] ss:$16 sps:$4 sm:$0xff]   ;;  %v7690_v33 = vld [vmem:[%s11440_s1 + $0x460] ss:$16 sps:$4 sm:$0xff]  }
  0x57   :  { %5071 = vmatpush1.bf16.msra.mxu0 %v7606_v34  ;;  %5604 = vmatpush1.bf16.msra.mxu1 %v7609_v35  ;;  %v7693_v34 = vld [vmem:[%s11440_s1 + $0x468] ss:$16 sps:$4 sm:$0xff]   ;;  %v7698_v35 = vld [vmem:[%s11440_s1 + $0x484] ss:$16 sps:$4 sm:$0xff]  }
  0x58   :  { %5072 = vmatprep.subr.bf16.mxu0 %v7614_v36  ;;  %5605 = vmatprep.subr.bf16.mxu1 %v7617_v37  ;;  %v7701_v36 = vld [vmem:[%s11440_s1 + $0x48c] ss:$16 sps:$4 sm:$0xff]   ;;  %v7696_v37 = vld [vmem:[%s11440_s1 + $0x480] ss:$16 sps:$4 sm:$0xff]  }
  0x5b   :  { %5073 = vmatpush1.bf16.msra.mxu0 %v7612_v38  ;;  %5606 = vmatpush1.bf16.msra.mxu1 %v7615_v39  ;;  %v7699_v38 = vld [vmem:[%s11440_s1 + $0x488] ss:$16 sps:$4 sm:$0xff]   ;;  %v7704_v39 = vld [vmem:[%s11440_s1 + $0x4a4] ss:$16 sps:$4 sm:$0xff]  }
  0x5c   :  { %5074 = vmatprep.subr.bf16.mxu0 %v7620_v40  ;;  %5607 = vmatprep.subr.bf16.mxu1 %v7623_v41  ;;  %v7707_v40 = vld [vmem:[%s11440_s1 + $0x4ac] ss:$16 sps:$4 sm:$0xff]   ;;  %v7702_v41 = vld [vmem:[%s11440_s1 + $0x4a0] ss:$16 sps:$4 sm:$0xff]  }
  0x5f   :  { %5075 = vmatpush1.bf16.msra.mxu0 %v7618_v42  ;;  %5608 = vmatpush1.bf16.msra.mxu1 %v7621_v44  ;;  %v7705_v42 = vld [vmem:[%s11440_s1 + $0x4a8] ss:$16 sps:$4 sm:$0xff]   ;;  %v7710_v44 = vld [vmem:[%s11440_s1 + $0x4c4] ss:$16 sps:$4 sm:$0xff]  }
  0x60   :  { %5076 = vmatprep.subr.bf16.mxu0 %v7626_v45  ;;  %5609 = vmatprep.subr.bf16.mxu1 %v7629_v46  ;;  %v7713_v45 = vld [vmem:[%s11440_s1 + $0x4cc] ss:$16 sps:$4 sm:$0xff]   ;;  %v7708_v46 = vld [vmem:[%s11440_s1 + $0x4c0] ss:$16 sps:$4 sm:$0xff]  }
  0x63   :  { %5077 = vmatpush1.bf16.msra.mxu0 %v7624_v47  ;;  %5610 = vmatpush1.bf16.msra.mxu1 %v7627_v48  ;;  %v7711_v47 = vld [vmem:[%s11440_s1 + $0x4c8] ss:$16 sps:$4 sm:$0xff]   ;;  %v7716_v48 = vld [vmem:[%s11440_s1 + $0x4e4] ss:$16 sps:$4 sm:$0xff]  }
  0x64   :  { %5078 = vmatprep.subr.bf16.mxu0 %v7632_v50  ;;  %5611 = vmatprep.subr.bf16.mxu1 %v7635_v51  ;;  %v7719_v50 = vld [vmem:[%s11440_s1 + $0x4ec] ss:$16 sps:$4 sm:$0xff]   ;;  %v7714_v51 = vld [vmem:[%s11440_s1 + $0x4e0] ss:$16 sps:$4 sm:$0xff]  }
  0x67   :  { %5079 = vmatpush1.bf16.msra.mxu0 %v7630_v53  ;;  %5612 = vmatpush1.bf16.msra.mxu1 %v7633_v54  ;;  %v7717_v53 = vld [vmem:[%s11440_s1 + $0x4e8] ss:$16 sps:$4 sm:$0xff]   ;;  %v7722_v54 = vld [vmem:[%s11440_s1 + $0x504] ss:$16 sps:$4 sm:$0xff]  }
  0x68   :  { %5080 = vmatprep.subr.bf16.mxu0 %v7638_v55  ;;  %5613 = vmatprep.subr.bf16.mxu1 %v7641_v56  ;;  %v7725_v55 = vld [vmem:[%s11440_s1 + $0x50c] ss:$16 sps:$4 sm:$0xff]   ;;  %v7720_v56 = vld [vmem:[%s11440_s1 + $0x500] ss:$16 sps:$4 sm:$0xff]  }
  0x6b   :  { %5081 = vmatpush1.bf16.msra.mxu0 %v7636_v57  ;;  %5614 = vmatpush1.bf16.msra.mxu1 %v7639_v58  ;;  %v7723_v57 = vld [vmem:[%s11440_s1 + $0x508] ss:$16 sps:$4 sm:$0xff]   ;;  %v7728_v58 = vld [vmem:[%s11440_s1 + $0x524] ss:$16 sps:$4 sm:$0xff]  }
  0x6c   :  { %5082 = vmatprep.subr.bf16.mxu0 %v7644_v59  ;;  %5615 = vmatprep.subr.bf16.mxu1 %v7647_v60  ;;  %v7731_v59 = vld [vmem:[%s11440_s1 + $0x52c] ss:$16 sps:$4 sm:$0xff]   ;;  %v7726_v60 = vld [vmem:[%s11440_s1 + $0x520] ss:$16 sps:$4 sm:$0xff]  }
  0x6f   :  { %5083 = vmatpush1.bf16.msra.mxu0 %v7642_v61  ;;  %5616 = vmatpush1.bf16.msra.mxu1 %v7645_v62  ;;  %v7729_v61 = vld [vmem:[%s11440_s1 + $0x528] ss:$16 sps:$4 sm:$0xff]   ;;  %v7734_v62 = vld [vmem:[%s11440_s1 + $0x544] ss:$16 sps:$4 sm:$0xff]  }
  0x70   :  { %5084 = vmatprep.subr.bf16.mxu0 %v7650_v63  ;;  %5617 = vmatprep.subr.bf16.mxu1 %v7653_v0  ;;  %v7737_v63 = vld [vmem:[%s11440_s1 + $0x54c] ss:$16 sps:$4 sm:$0xff]   ;;  %v7732_v0 = vld [vmem:[%s11440_s1 + $0x540] ss:$16 sps:$4 sm:$0xff]  }
  0x73   :  { %5085 = vmatpush1.bf16.msra.mxu0 %v7648_v1  ;;  %5618 = vmatpush1.bf16.msra.mxu1 %v7651_v2  ;;  %v7735_v1 = vld [vmem:[%s11440_s1 + $0x548] ss:$16 sps:$4 sm:$0xff]   ;;  %v7740_v2 = vld [vmem:[%s11440_s1 + $0x564] ss:$16 sps:$4 sm:$0xff]  }
  0x74   :  { %5086 = vmatprep.subr.bf16.mxu0 %v7656_v3  ;;  %5619 = vmatprep.subr.bf16.mxu1 %v7659_v4  ;;  %v7743_v3 = vld [vmem:[%s11440_s1 + $0x56c] ss:$16 sps:$4 sm:$0xff]   ;;  %v7738_v4 = vld [vmem:[%s11440_s1 + $0x560] ss:$16 sps:$4 sm:$0xff]  }
  0x77   :  { %5087 = vmatpush1.bf16.msra.mxu0 %v7654_v5  ;;  %5620 = vmatpush1.bf16.msra.mxu1 %v7657_v6  ;;  %v7741_v5 = vld [vmem:[%s11440_s1 + $0x568] ss:$16 sps:$4 sm:$0xff]   ;;  %v7746_v6 = vld [vmem:[%s11440_s1 + $0x584] ss:$16 sps:$4 sm:$0xff]  }
  0x78   :  { %5088 = vmatprep.subr.bf16.mxu0 %v7662_v7  ;;  %5621 = vmatprep.subr.bf16.mxu1 %v7665_v8  ;;  %v7749_v7 = vld [vmem:[%s11440_s1 + $0x58c] ss:$16 sps:$4 sm:$0xff]   ;;  %v7744_v8 = vld [vmem:[%s11440_s1 + $0x580] ss:$16 sps:$4 sm:$0xff]  }
  0x7b   :  { %5089 = vmatpush1.bf16.msra.mxu0 %v7660_v10  ;;  %5622 = vmatpush1.bf16.msra.mxu1 %v7663_v11  ;;  %v7752_v10 = vld [vmem:[%s11440_s1 + $0x5a4] ss:$16 sps:$4 sm:$0xff]   ;;  %v7755_v11 = vld [vmem:[%s11440_s1 + $0x5ac] ss:$16 sps:$4 sm:$0xff]  }
  0x7c   :  { %5090 = vmatprep.subr.bf16.mxu0 %v7668_v12  ;;  %5623 = vmatprep.subr.bf16.mxu1 %v7671_v52  ;;  %v7750_v12 = vld [vmem:[%s11440_s1 + $0x5a0] ss:$16 sps:$4 sm:$0xff]   ;;  %v7753_v52 = vld [vmem:[%s11440_s1 + $0x5a8] ss:$16 sps:$4 sm:$0xff]  }
  0x7f   :  { %5091 = vmatpush1.bf16.msra.mxu0 %v7666_v15  ;;  %5624 = vmatpush1.bf16.msra.mxu1 %v7669_v16  ;;  %v7758_v15 = vld [vmem:[%s11440_s1 + $0x5c4] ss:$16 sps:$4 sm:$0xff]   ;;  %v7761_v16 = vld [vmem:[%s11440_s1 + $0x5cc] ss:$16 sps:$4 sm:$0xff]  }
  0x80   :  { %5101 = vmatprep.subr.bf16.mxu0 %v7674_v17  ;;  %5634 = vmatprep.subr.bf16.mxu1 %v7677_v18  ;;  %v7756_v17 = vld [vmem:[%s11440_s1 + $0x5c0] ss:$16 sps:$4 sm:$0xff]   ;;  %v7759_v18 = vld [vmem:[%s11440_s1 + $0x5c8] ss:$16 sps:$4 sm:$0xff]  }
  0x82   :  { %5093 = vmatmul.mubr.bf16.vlgmr.msra.gmra.mrb[0].mxu0 %v878_v21  ;;  %5626 = vmatmul.mubr.bf16.vlgmr.msra.gmra.mrb[0].mxu1 %v878_v21  ;;  %v7762_v21 = vld [vmem:[%s11440_s1 + $0x5e0] ss:$16 sps:$4 sm:$0xff]  }
  0x83   :  { %5102 = vmatpush1.bf16.msra.mxu0 %v7672_v20  ;;  %5635 = vmatpush1.bf16.msra.mxu1 %v7675_v22  ;;  %v7767_v20 = vld [vmem:[%s11440_s1 + $0x5ec] ss:$16 sps:$4 sm:$0xff]   ;;  %v7765_v22 = vld [vmem:[%s11440_s1 + $0x5e8] ss:$16 sps:$4 sm:$0xff]  }
  0x84   :  { %5103 = vmatprep.subr.bf16.mxu0 %v7680_v23  ;;  %5636 = vmatprep.subr.bf16.mxu1 %v7683_v24  ;;  %v7771_v23 = vld [vmem:[%s11440_s1 + $0x604] ss:$16 sps:$4 sm:$0xff]   ;;  %v7774_v24 = vld [vmem:[%s11440_s1 + $0x60c] ss:$16 sps:$4 sm:$0xff]  }
  0x85   :  { %5133 = vmatprep.mubr.bf16.mxu0 %v9209_v25  ;;  %5666 = vmatprep.mubr.bf16.mxu1 %v9209_v25 }
  0x87   :  { %5104 = vmatpush1.bf16.msra.mxu0 %v7678_v13  ;;  %5637 = vmatpush1.bf16.msra.mxu1 %v7681_v26  ;;  %v7769_v13 = vld [vmem:[%s11440_s1 + $0x600] ss:$16 sps:$4 sm:$0xff]   ;;  %v9398_v26 = vrot.slane %v9178_v14, %v8914_v49  ;;  %v881_v14 = vcombine.high %v9209_v25, %v9209_v25  ;;  %v7783_v25 = vld [vmem:[%s11440_s1 + $0x644] ss:$16 sps:$4 sm:$0xff]  }
  0x88   :  { %5105 = vmatprep.subr.bf16.mxu0 %v7686_v27  ;;  %5638 = vmatprep.subr.bf16.mxu1 %v7689_v28  ;;  %v7772_v27 = vld [vmem:[%s11440_s1 + $0x608] ss:$16 sps:$4 sm:$0xff]   ;;  %v7777_v28 = vld [vmem:[%s11440_s1 + $0x624] ss:$16 sps:$4 sm:$0xff]  }
  0x8b   :  { %5106 = vmatpush1.bf16.msra.mxu0 %v7684_v29  ;;  %5639 = vmatpush1.bf16.msra.mxu1 %v7687_v30  ;;  %v7780_v29 = vld [vmem:[%s11440_s1 + $0x62c] ss:$16 sps:$4 sm:$0xff]   ;;  %v7775_v30 = vld [vmem:[%s11440_s1 + $0x620] ss:$16 sps:$4 sm:$0xff]  }
  0x8c   :  { %5107 = vmatprep.subr.bf16.mxu0 %v7692_v31  ;;  %5640 = vmatprep.subr.bf16.mxu1 %v7695_v32  ;;  %v7778_v31 = vld [vmem:[%s11440_s1 + $0x628] ss:$16 sps:$4 sm:$0xff]   ;;  %v7786_v32 = vld [vmem:[%s11440_s1 + $0x64c] ss:$16 sps:$4 sm:$0xff]  }
  0x8f   :  { %5108 = vmatpush1.bf16.msra.mxu0 %v7690_v33  ;;  %5641 = vmatpush1.bf16.msra.mxu1 %v7693_v34  ;;  %v7781_v33 = vld [vmem:[%s11440_s1 + $0x640] ss:$16 sps:$4 sm:$0xff]   ;;  %v7784_v34 = vld [vmem:[%s11440_s1 + $0x648] ss:$16 sps:$4 sm:$0xff]  }
  0x90   :  { %5109 = vmatprep.subr.bf16.mxu0 %v7698_v35  ;;  %5642 = vmatprep.subr.bf16.mxu1 %v7701_v36  ;;  %v7789_v35 = vld [vmem:[%s11440_s1 + $0x664] ss:$16 sps:$4 sm:$0xff]   ;;  %v7792_v36 = vld [vmem:[%s11440_s1 + $0x66c] ss:$16 sps:$4 sm:$0xff]  }
  0x93   :  { %5110 = vmatpush1.bf16.msra.mxu0 %v7696_v37  ;;  %5643 = vmatpush1.bf16.msra.mxu1 %v7699_v38  ;;  %v7787_v37 = vld [vmem:[%s11440_s1 + $0x660] ss:$16 sps:$4 sm:$0xff]   ;;  %v7790_v38 = vld [vmem:[%s11440_s1 + $0x668] ss:$16 sps:$4 sm:$0xff]  }
  0x94   :  { %5111 = vmatprep.subr.bf16.mxu0 %v7704_v39  ;;  %5644 = vmatprep.subr.bf16.mxu1 %v7707_v40  ;;  %v7795_v39 = vld [vmem:[%s11440_s1 + $0x684] ss:$16 sps:$4 sm:$0xff]   ;;  %v7798_v40 = vld [vmem:[%s11440_s1 + $0x68c] ss:$16 sps:$4 sm:$0xff]  }
  0x97   :  { %5112 = vmatpush1.bf16.msra.mxu0 %v7702_v41  ;;  %5645 = vmatpush1.bf16.msra.mxu1 %v7705_v42  ;;  %v7793_v41 = vld [vmem:[%s11440_s1 + $0x680] ss:$16 sps:$4 sm:$0xff]   ;;  %v7796_v42 = vld [vmem:[%s11440_s1 + $0x688] ss:$16 sps:$4 sm:$0xff]  }
  0x98   :  { %5113 = vmatprep.subr.bf16.mxu0 %v7710_v44  ;;  %5646 = vmatprep.subr.bf16.mxu1 %v7713_v45  ;;  %v7801_v44 = vld [vmem:[%s11440_s1 + $0x6a4] ss:$16 sps:$4 sm:$0xff]   ;;  %v7804_v45 = vld [vmem:[%s11440_s1 + $0x6ac] ss:$16 sps:$4 sm:$0xff]  }
  0x9b   :  { %5114 = vmatpush1.bf16.msra.mxu0 %v7708_v46  ;;  %5647 = vmatpush1.bf16.msra.mxu1 %v7711_v47  ;;  %v7799_v46 = vld [vmem:[%s11440_s1 + $0x6a0] ss:$16 sps:$4 sm:$0xff]   ;;  %v7802_v47 = vld [vmem:[%s11440_s1 + $0x6a8] ss:$16 sps:$4 sm:$0xff]  }
  0x9c   :  { %5115 = vmatprep.subr.bf16.mxu0 %v7716_v48  ;;  %5648 = vmatprep.subr.bf16.mxu1 %v7719_v50  ;;  %v7807_v48 = vld [vmem:[%s11440_s1 + $0x6c4] ss:$16 sps:$4 sm:$0xff]   ;;  %v7810_v50 = vld [vmem:[%s11440_s1 + $0x6cc] ss:$16 sps:$4 sm:$0xff]  }
  0x9f   :  { %5116 = vmatpush1.bf16.msra.mxu0 %v7714_v51  ;;  %5649 = vmatpush1.bf16.msra.mxu1 %v7717_v53  ;;  %v7805_v51 = vld [vmem:[%s11440_s1 + $0x6c0] ss:$16 sps:$4 sm:$0xff]   ;;  %v7808_v53 = vld [vmem:[%s11440_s1 + $0x6c8] ss:$16 sps:$4 sm:$0xff]  }
  0xa0   :  { %5117 = vmatprep.subr.bf16.mxu0 %v7722_v54  ;;  %5650 = vmatprep.subr.bf16.mxu1 %v7725_v55  ;;  %v7813_v54 = vld [vmem:[%s11440_s1 + $0x6e4] ss:$16 sps:$4 sm:$0xff]   ;;  %v7816_v55 = vld [vmem:[%s11440_s1 + $0x6ec] ss:$16 sps:$4 sm:$0xff]  }
  0xa3   :  { %5118 = vmatpush1.bf16.msra.mxu0 %v7720_v56  ;;  %5651 = vmatpush1.bf16.msra.mxu1 %v7723_v57  ;;  %v7811_v56 = vld [vmem:[%s11440_s1 + $0x6e0] ss:$16 sps:$4 sm:$0xff]   ;;  %v7814_v57 = vld [vmem:[%s11440_s1 + $0x6e8] ss:$16 sps:$4 sm:$0xff]  }
  0xa4   :  { %5119 = vmatprep.subr.bf16.mxu0 %v7728_v58  ;;  %5652 = vmatprep.subr.bf16.mxu1 %v7731_v59  ;;  %v7819_v58 = vld [vmem:[%s11440_s1 + $0x704] ss:$16 sps:$4 sm:$0xff]   ;;  %v7822_v59 = vld [vmem:[%s11440_s1 + $0x70c] ss:$16 sps:$4 sm:$0xff]  }
  0xa7   :  { %5120 = vmatpush1.bf16.msra.mxu0 %v7726_v60  ;;  %5653 = vmatpush1.bf16.msra.mxu1 %v7729_v61  ;;  %v7817_v60 = vld [vmem:[%s11440_s1 + $0x700] ss:$16 sps:$4 sm:$0xff]   ;;  %v7820_v61 = vld [vmem:[%s11440_s1 + $0x708] ss:$16 sps:$4 sm:$0xff]  }
  0xa8   :  { %5121 = vmatprep.subr.bf16.mxu0 %v7734_v62  ;;  %5654 = vmatprep.subr.bf16.mxu1 %v7737_v63  ;;  %v7825_v62 = vld [vmem:[%s11440_s1 + $0x724] ss:$16 sps:$4 sm:$0xff]   ;;  %v7828_v63 = vld [vmem:[%s11440_s1 + $0x72c] ss:$16 sps:$4 sm:$0xff]  }
  0xab   :  { %5122 = vmatpush1.bf16.msra.mxu0 %v7732_v0  ;;  %5655 = vmatpush1.bf16.msra.mxu1 %v7735_v1  ;;  %v7823_v0 = vld [vmem:[%s11440_s1 + $0x720] ss:$16 sps:$4 sm:$0xff]   ;;  %v7826_v1 = vld [vmem:[%s11440_s1 + $0x728] ss:$16 sps:$4 sm:$0xff]  }
  0xac   :  { %5123 = vmatprep.subr.bf16.mxu0 %v7740_v2  ;;  %5656 = vmatprep.subr.bf16.mxu1 %v7743_v3  ;;  %v7831_v2 = vld [vmem:[%s11440_s1 + $0x744] ss:$16 sps:$4 sm:$0xff]   ;;  %v7834_v3 = vld [vmem:[%s11440_s1 + $0x74c] ss:$16 sps:$4 sm:$0xff]  }
  0xaf   :  { %5124 = vmatpush1.bf16.msra.mxu0 %v7738_v4  ;;  %5657 = vmatpush1.bf16.msra.mxu1 %v7741_v5  ;;  %v7829_v4 = vld [vmem:[%s11440_s1 + $0x740] ss:$16 sps:$4 sm:$0xff]   ;;  %v7832_v5 = vld [vmem:[%s11440_s1 + $0x748] ss:$16 sps:$4 sm:$0xff]  }
  0xb0   :  { %5125 = vmatprep.subr.bf16.mxu0 %v7746_v6  ;;  %5658 = vmatprep.subr.bf16.mxu1 %v7749_v7  ;;  %v7837_v6 = vld [vmem:[%s11440_s1 + $0x764] ss:$16 sps:$4 sm:$0xff]   ;;  %v7840_v7 = vld [vmem:[%s11440_s1 + $0x76c] ss:$16 sps:$4 sm:$0xff]  }
  0xb3   :  { %5126 = vmatpush1.bf16.msra.mxu0 %v7744_v8  ;;  %5659 = vmatpush1.bf16.msra.mxu1 %v7747_v9  ;;  %v7835_v8 = vld [vmem:[%s11440_s1 + $0x760] ss:$16 sps:$4 sm:$0xff]   ;;  %v7838_v9 = vld [vmem:[%s11440_s1 + $0x768] ss:$16 sps:$4 sm:$0xff]  }
  0xb4   :  { %5127 = vmatprep.subr.bf16.mxu0 %v7752_v10  ;;  %5660 = vmatprep.subr.bf16.mxu1 %v7755_v11  ;;  %v7843_v10 = vld [vmem:[%s11440_s1 + $0x784] ss:$16 sps:$4 sm:$0xff]   ;;  %v7846_v11 = vld [vmem:[%s11440_s1 + $0x78c] ss:$16 sps:$4 sm:$0xff]  }
  0xb7   :  { %5128 = vmatpush1.bf16.msra.mxu0 %v7750_v12  ;;  %5661 = vmatpush1.bf16.msra.mxu1 %v7753_v52  ;;  %v7841_v12 = vld [vmem:[%s11440_s1 + $0x780] ss:$16 sps:$4 sm:$0xff]   ;;  %v7844_v52 = vld [vmem:[%s11440_s1 + $0x788] ss:$16 sps:$4 sm:$0xff]  }
  0xb8   :  { %5129 = vmatprep.subr.bf16.mxu0 %v7758_v15  ;;  %5662 = vmatprep.subr.bf16.mxu1 %v7761_v16  ;;  %v7849_v15 = vld [vmem:[%s11440_s1 + $0x7a4] ss:$16 sps:$4 sm:$0xff]   ;;  %v7852_v16 = vld [vmem:[%s11440_s1 + $0x7ac] ss:$16 sps:$4 sm:$0xff]  }
  0xbb   :  { %5130 = vmatpush1.bf16.msra.mxu0 %v7756_v17  ;;  %5663 = vmatpush1.bf16.msra.mxu1 %v7759_v18  ;;  %v7847_v17 = vld [vmem:[%s11440_s1 + $0x7a0] ss:$16 sps:$4 sm:$0xff]   ;;  %v7850_v18 = vld [vmem:[%s11440_s1 + $0x7a8] ss:$16 sps:$4 sm:$0xff]  }
  0xbc   :  { %5131 = vmatprep.subr.bf16.mxu0 %v7764_v19  ;;  %5664 = vmatprep.subr.bf16.mxu1 %v7767_v20  ;;  %v7855_v19 = vld [vmem:[%s11440_s1 + $0x7c4] ss:$16 sps:$4 sm:$0xff]   ;;  %v7858_v20 = vld [vmem:[%s11440_s1 + $0x7cc] ss:$16 sps:$4 sm:$0xff]  }
  0xbf   :  { %5132 = vmatpush1.bf16.msra.mxu0 %v7762_v21  ;;  %5665 = vmatpush1.bf16.msra.mxu1 %v7765_v22  ;;  %v9572_v21 = vld.sshfl [vmem:[%s11439_s0 + $0x8] sm:$0xff pattern:$0x75316420]  ;;  %v7853_v22 = vld [vmem:[%s11440_s1 + $0x7c0] ss:$16 sps:$4 sm:$0xff]  }
  0xc0   :  { %5142 = vmatprep.subr.bf16.mxu0 %v7771_v23  ;;  %5675 = vmatprep.subr.bf16.mxu1 %v7774_v24  ;;  %v7856_v23 = vld [vmem:[%s11440_s1 + $0x7c8] ss:$16 sps:$4 sm:$0xff]   ;;  %v7861_v24 = vld [vmem:[%s11440_s1 + $0x7e4] ss:$16 sps:$4 sm:$0xff]  }
  0xc2   :  { %5134 = vmatmul.mubr.bf16.vlgmr.msra.gmra.mrb[0].mxu0 %v9398_v26  ;;  %5667 = vmatmul.mubr.bf16.vlgmr.msra.gmra.mrb[0].mxu1 %v9398_v26 }
  0xc3   :  { %5143 = vmatpush1.bf16.msra.mxu0 %v7769_v13  ;;  %5676 = vmatpush1.bf16.msra.mxu1 %v7772_v27  ;;  %v7864_v13 = vld [vmem:[%s11440_s1 + $0x7ec] ss:$16 sps:$4 sm:$0xff]   ;;  %v7859_v27 = vld [vmem:[%s11440_s1 + $0x7e0] ss:$16 sps:$4 sm:$0xff]  }
  0xc4   :  { %5144 = vmatprep.subr.bf16.mxu0 %v7777_v28  ;;  %5677 = vmatprep.subr.bf16.mxu1 %v7780_v29  ;;  %v7862_v28 = vld [vmem:[%s11440_s1 + $0x7e8] ss:$16 sps:$4 sm:$0xff]   ;;  %v7867_v29 = vld [vmem:[%s11440_s1 + $0x804] ss:$16 sps:$4 sm:$0xff]  }
  0xc5   :  { %5174 = vmatprep.mubr.bf16.mxu0 %v881_v14  ;;  %5707 = vmatprep.mubr.bf16.mxu1 %v881_v14  ;;  %v7870_v14 = vld [vmem:[%s11440_s1 + $0x80c] ss:$16 sps:$4 sm:$0xff]  }
  0xc7   :  { %5145 = vmatpush1.bf16.msra.mxu0 %v7775_v30  ;;  %5678 = vmatpush1.bf16.msra.mxu1 %v7778_v31  ;;  %v897_v30 = vcombine.high %v9572_v21, %v9572_v21  ;;  %v879_v31 = vcombine.high %v9398_v26, %v9398_v26  ;;  %v7876_v26 = vld [vmem:[%s11440_s1 + $0x82c] ss:$16 sps:$4 sm:$0xff]  }
  0xc8   :  { %5146 = vmatprep.subr.bf16.mxu0 %v7783_v25  ;;  %5679 = vmatprep.subr.bf16.mxu1 %v7786_v32  ;;  %v7865_v25 = vld [vmem:[%s11440_s1 + $0x800] ss:$16 sps:$4 sm:$0xff]   ;;  %v7868_v32 = vld [vmem:[%s11440_s1 + $0x808] ss:$16 sps:$4 sm:$0xff]  }
  0xcb   :  { %5147 = vmatpush1.bf16.msra.mxu0 %v7781_v33  ;;  %5680 = vmatpush1.bf16.msra.mxu1 %v7784_v34  ;;  %v7873_v33 = vld [vmem:[%s11440_s1 + $0x824] ss:$16 sps:$4 sm:$0xff]   ;;  %v9615_v34 = vrot.slane %v897_v30, %v8914_v49 }
  0xcc   :  { %5148 = vmatprep.subr.bf16.mxu0 %v7789_v35  ;;  %5681 = vmatprep.subr.bf16.mxu1 %v7792_v36  ;;  %v7871_v35 = vld [vmem:[%s11440_s1 + $0x820] ss:$16 sps:$4 sm:$0xff]   ;;  %v7874_v36 = vld [vmem:[%s11440_s1 + $0x828] ss:$16 sps:$4 sm:$0xff]   ;;  %v7957_v30 = vld [vmem:[%s11440_s1 + $0x9e4] ss:$16 sps:$4 sm:$0xff]  }
  0xcf   :  { %5149 = vmatpush1.bf16.msra.mxu0 %v7787_v37  ;;  %5682 = vmatpush1.bf16.msra.mxu1 %v7790_v38  ;;  %v7879_v37 = vld [vmem:[%s11440_s1 + $0x844] ss:$16 sps:$4 sm:$0xff]   ;;  %v7882_v38 = vld [vmem:[%s11440_s1 + $0x84c] ss:$16 sps:$4 sm:$0xff]  }
  0xd0   :  { %5150 = vmatprep.subr.bf16.mxu0 %v7795_v39  ;;  %5683 = vmatprep.subr.bf16.mxu1 %v7798_v40  ;;  %v7877_v39 = vld [vmem:[%s11440_s1 + $0x840] ss:$16 sps:$4 sm:$0xff]   ;;  %v7880_v40 = vld [vmem:[%s11440_s1 + $0x848] ss:$16 sps:$4 sm:$0xff]  }
  0xd3   :  { %5151 = vmatpush1.bf16.msra.mxu0 %v7793_v41  ;;  %5684 = vmatpush1.bf16.msra.mxu1 %v7796_v42  ;;  %v7885_v41 = vld [vmem:[%s11440_s1 + $0x864] ss:$16 sps:$4 sm:$0xff]   ;;  %v7888_v42 = vld [vmem:[%s11440_s1 + $0x86c] ss:$16 sps:$4 sm:$0xff]  }
  0xd4   :  { %5152 = vmatprep.subr.bf16.mxu0 %v7801_v44  ;;  %5685 = vmatprep.subr.bf16.mxu1 %v7804_v45  ;;  %v7883_v44 = vld [vmem:[%s11440_s1 + $0x860] ss:$16 sps:$4 sm:$0xff]   ;;  %v7886_v45 = vld [vmem:[%s11440_s1 + $0x868] ss:$16 sps:$4 sm:$0xff]  }
  0xd7   :  { %5153 = vmatpush1.bf16.msra.mxu0 %v7799_v46  ;;  %5686 = vmatpush1.bf16.msra.mxu1 %v7802_v47  ;;  %v7891_v46 = vld [vmem:[%s11440_s1 + $0x884] ss:$16 sps:$4 sm:$0xff]   ;;  %v7894_v47 = vld [vmem:[%s11440_s1 + $0x88c] ss:$16 sps:$4 sm:$0xff]  }
  0xd8   :  { %5154 = vmatprep.subr.bf16.mxu0 %v7807_v48  ;;  %5687 = vmatprep.subr.bf16.mxu1 %v7810_v50  ;;  %v7889_v48 = vld [vmem:[%s11440_s1 + $0x880] ss:$16 sps:$4 sm:$0xff]   ;;  %v7892_v50 = vld [vmem:[%s11440_s1 + $0x888] ss:$16 sps:$4 sm:$0xff]  }
  0xdb   :  { %5155 = vmatpush1.bf16.msra.mxu0 %v7805_v51  ;;  %5688 = vmatpush1.bf16.msra.mxu1 %v7808_v53  ;;  %v7897_v51 = vld [vmem:[%s11440_s1 + $0x8a4] ss:$16 sps:$4 sm:$0xff]   ;;  %v7900_v53 = vld [vmem:[%s11440_s1 + $0x8ac] ss:$16 sps:$4 sm:$0xff]  }
  0xdc   :  { %5156 = vmatprep.subr.bf16.mxu0 %v7813_v54  ;;  %5689 = vmatprep.subr.bf16.mxu1 %v7816_v55  ;;  %v7895_v54 = vld [vmem:[%s11440_s1 + $0x8a0] ss:$16 sps:$4 sm:$0xff]   ;;  %v7898_v55 = vld [vmem:[%s11440_s1 + $0x8a8] ss:$16 sps:$4 sm:$0xff]  }
  0xdf   :  { %5157 = vmatpush1.bf16.msra.mxu0 %v7811_v56  ;;  %5690 = vmatpush1.bf16.msra.mxu1 %v7814_v57  ;;  %v7903_v56 = vld [vmem:[%s11440_s1 + $0x8c4] ss:$16 sps:$4 sm:$0xff]   ;;  %v7906_v57 = vld [vmem:[%s11440_s1 + $0x8cc] ss:$16 sps:$4 sm:$0xff]  }
  0xe0   :  { %5158 = vmatprep.subr.bf16.mxu0 %v7819_v58  ;;  %5691 = vmatprep.subr.bf16.mxu1 %v7822_v59  ;;  %v7901_v58 = vld [vmem:[%s11440_s1 + $0x8c0] ss:$16 sps:$4 sm:$0xff]   ;;  %v7904_v59 = vld [vmem:[%s11440_s1 + $0x8c8] ss:$16 sps:$4 sm:$0xff]  }
  0xe3   :  { %5159 = vmatpush1.bf16.msra.mxu0 %v7817_v60  ;;  %5692 = vmatpush1.bf16.msra.mxu1 %v7820_v61  ;;  %v7909_v60 = vld [vmem:[%s11440_s1 + $0x8e4] ss:$16 sps:$4 sm:$0xff]   ;;  %v7912_v61 = vld [vmem:[%s11440_s1 + $0x8ec] ss:$16 sps:$4 sm:$0xff]  }
  0xe4   :  { %5160 = vmatprep.subr.bf16.mxu0 %v7825_v62  ;;  %5693 = vmatprep.subr.bf16.mxu1 %v7828_v63  ;;  %v7907_v62 = vld [vmem:[%s11440_s1 + $0x8e0] ss:$16 sps:$4 sm:$0xff]   ;;  %v7910_v63 = vld [vmem:[%s11440_s1 + $0x8e8] ss:$16 sps:$4 sm:$0xff]  }
  0xe7   :  { %5161 = vmatpush1.bf16.msra.mxu0 %v7823_v0  ;;  %5694 = vmatpush1.bf16.msra.mxu1 %v7826_v1  ;;  %v7915_v0 = vld [vmem:[%s11440_s1 + $0x904] ss:$16 sps:$4 sm:$0xff]   ;;  %v7918_v1 = vld [vmem:[%s11440_s1 + $0x90c] ss:$16 sps:$4 sm:$0xff]  }
  0xe8   :  { %5162 = vmatprep.subr.bf16.mxu0 %v7831_v2  ;;  %5695 = vmatprep.subr.bf16.mxu1 %v7834_v3  ;;  %v7913_v2 = vld [vmem:[%s11440_s1 + $0x900] ss:$16 sps:$4 sm:$0xff]   ;;  %v7916_v3 = vld [vmem:[%s11440_s1 + $0x908] ss:$16 sps:$4 sm:$0xff]  }
  0xeb   :  { %5163 = vmatpush1.bf16.msra.mxu0 %v7829_v4  ;;  %5696 = vmatpush1.bf16.msra.mxu1 %v7832_v5  ;;  %v7921_v4 = vld [vmem:[%s11440_s1 + $0x924] ss:$16 sps:$4 sm:$0xff]   ;;  %v7924_v5 = vld [vmem:[%s11440_s1 + $0x92c] ss:$16 sps:$4 sm:$0xff]  }
  0xec   :  { %5164 = vmatprep.subr.bf16.mxu0 %v7837_v6  ;;  %5697 = vmatprep.subr.bf16.mxu1 %v7840_v7  ;;  %v7919_v6 = vld [vmem:[%s11440_s1 + $0x920] ss:$16 sps:$4 sm:$0xff]   ;;  %v7922_v7 = vld [vmem:[%s11440_s1 + $0x928] ss:$16 sps:$4 sm:$0xff]  }
  0xef   :  { %5165 = vmatpush1.bf16.msra.mxu0 %v7835_v8  ;;  %5698 = vmatpush1.bf16.msra.mxu1 %v7838_v9  ;;  %v7927_v8 = vld [vmem:[%s11440_s1 + $0x944] ss:$16 sps:$4 sm:$0xff]   ;;  %v7930_v9 = vld [vmem:[%s11440_s1 + $0x94c] ss:$16 sps:$4 sm:$0xff]  }
  0xf0   :  { %5166 = vmatprep.subr.bf16.mxu0 %v7843_v10  ;;  %5699 = vmatprep.subr.bf16.mxu1 %v7846_v11  ;;  %v7925_v10 = vld [vmem:[%s11440_s1 + $0x940] ss:$16 sps:$4 sm:$0xff]   ;;  %v7928_v11 = vld [vmem:[%s11440_s1 + $0x948] ss:$16 sps:$4 sm:$0xff]  }
  0xf3   :  { %5167 = vmatpush1.bf16.msra.mxu0 %v7841_v12  ;;  %5700 = vmatpush1.bf16.msra.mxu1 %v7844_v52  ;;  %v7933_v12 = vld [vmem:[%s11440_s1 + $0x964] ss:$16 sps:$4 sm:$0xff]   ;;  %v7936_v52 = vld [vmem:[%s11440_s1 + $0x96c] ss:$16 sps:$4 sm:$0xff]  }
  0xf4   :  { %5168 = vmatprep.subr.bf16.mxu0 %v7849_v15  ;;  %5701 = vmatprep.subr.bf16.mxu1 %v7852_v16  ;;  %v7931_v15 = vld [vmem:[%s11440_s1 + $0x960] ss:$16 sps:$4 sm:$0xff]   ;;  %v7934_v16 = vld [vmem:[%s11440_s1 + $0x968] ss:$16 sps:$4 sm:$0xff]  }
  0xf7   :  { %5169 = vmatpush1.bf16.msra.mxu0 %v7847_v17  ;;  %5702 = vmatpush1.bf16.msra.mxu1 %v7850_v18  ;;  %v7939_v17 = vld [vmem:[%s11440_s1 + $0x984] ss:$16 sps:$4 sm:$0xff]   ;;  %v7942_v18 = vld [vmem:[%s11440_s1 + $0x98c] ss:$16 sps:$4 sm:$0xff]  }
  0xf8   :  { %5170 = vmatprep.subr.bf16.mxu0 %v7855_v19  ;;  %5703 = vmatprep.subr.bf16.mxu1 %v7858_v20  ;;  %v7937_v19 = vld [vmem:[%s11440_s1 + $0x980] ss:$16 sps:$4 sm:$0xff]   ;;  %v7940_v20 = vld [vmem:[%s11440_s1 + $0x988] ss:$16 sps:$4 sm:$0xff]  }
  0xfb   :  { %5171 = vmatpush1.bf16.msra.mxu0 %v7853_v22  ;;  %5704 = vmatpush1.bf16.msra.mxu1 %v7856_v23  ;;  %v7945_v22 = vld [vmem:[%s11440_s1 + $0x9a4] ss:$16 sps:$4 sm:$0xff]   ;;  %v7948_v23 = vld [vmem:[%s11440_s1 + $0x9ac] ss:$16 sps:$4 sm:$0xff]  }
  0xfc   :  { %5172 = vmatprep.subr.bf16.mxu0 %v7861_v24  ;;  %5705 = vmatprep.subr.bf16.mxu1 %v7864_v13  ;;  %v7943_v24 = vld [vmem:[%s11440_s1 + $0x9a0] ss:$16 sps:$4 sm:$0xff]   ;;  %v7946_v13 = vld [vmem:[%s11440_s1 + $0x9a8] ss:$16 sps:$4 sm:$0xff]  }
  0xff   :  { %5173 = vmatpush1.bf16.msra.mxu0 %v7859_v27  ;;  %5706 = vmatpush1.bf16.msra.mxu1 %v7862_v28  ;;  %v7951_v27 = vld [vmem:[%s11440_s1 + $0x9c4] ss:$16 sps:$4 sm:$0xff]   ;;  %v7954_v28 = vld [vmem:[%s11440_s1 + $0x9cc] ss:$16 sps:$4 sm:$0xff]  }
 0x100   :  { %5183 = vmatprep.subr.bf16.mxu0 %v7867_v29  ;;  %5716 = vmatprep.subr.bf16.mxu1 %v7870_v14  ;;  %v7949_v29 = vld [vmem:[%s11440_s1 + $0x9c0] ss:$16 sps:$4 sm:$0xff]   ;;  %v7952_v14 = vld [vmem:[%s11440_s1 + $0x9c8] ss:$16 sps:$4 sm:$0xff]  }
 0x102   :  { %5175 = vmatmul.mubr.bf16.vlgmr.msra.gmra.mrb[0].mxu0 %v879_v31  ;;  %5708 = vmatmul.mubr.bf16.vlgmr.msra.gmra.mrb[0].mxu1 %v879_v31  ;;  %v7960_v31 = vld [vmem:[%s11440_s1 + $0x9ec] ss:$16 sps:$4 sm:$0xff]  }
 0x103   :  { %5184 = vmatpush1.bf16.msra.mxu0 %v7865_v25  ;;  %5717 = vmatpush1.bf16.msra.mxu1 %v7868_v32  ;;  %v7955_v25 = vld [vmem:[%s11440_s1 + $0x9e0] ss:$16 sps:$4 sm:$0xff]   ;;  %v7958_v32 = vld [vmem:[%s11440_s1 + $0x9e8] ss:$16 sps:$4 sm:$0xff]  }
 0x104   :  { %5185 = vmatprep.subr.bf16.mxu0 %v7873_v33  ;;  %5718 = vmatprep.subr.bf16.mxu1 %v7876_v26  ;;  %v7963_v33 = vld [vmem:[%s11440_s1 + $0xa04] ss:$16 sps:$4 sm:$0xff]   ;;  %v7966_v26 = vld [vmem:[%s11440_s1 + $0xa0c] ss:$16 sps:$4 sm:$0xff]  }
 0x105   :  { %5215 = vmatprep.mubr.bf16.mxu0 %v9615_v34  ;;  %5748 = vmatprep.mubr.bf16.mxu1 %v9615_v34 }
 0x107   :  { %5186 = vmatpush1.bf16.msra.mxu0 %v7871_v35  ;;  %5719 = vmatpush1.bf16.msra.mxu1 %v7874_v36  ;;  %v9801_v35 = vrot.slane %v9572_v21, %v8914_v49  ;;  %v7961_v36 = vld [vmem:[%s11440_s1 + $0xa00] ss:$16 sps:$4 sm:$0xff]   ;;  %v7972_v21 = vld [vmem:[%s11440_s1 + $0xa2c] ss:$16 sps:$4 sm:$0xff]  }
 0x108   :  { %5187 = vmatprep.subr.bf16.mxu0 %v7879_v37  ;;  %5720 = vmatprep.subr.bf16.mxu1 %v7882_v38  ;;  %v7964_v37 = vld [vmem:[%s11440_s1 + $0xa08] ss:$16 sps:$4 sm:$0xff]   ;;  %v7969_v38 = vld [vmem:[%s11440_s1 + $0xa24] ss:$16 sps:$4 sm:$0xff]  }
 0x10b   :  { %5188 = vmatpush1.bf16.msra.mxu0 %v7877_v39  ;;  %5721 = vmatpush1.bf16.msra.mxu1 %v7880_v40  ;;  %v929_v39 = vcombine.high %v9615_v34, %v9615_v34  ;;  %v7967_v40 = vld [vmem:[%s11440_s1 + $0xa20] ss:$16 sps:$4 sm:$0xff]   ;;  %v7975_v34 = vld [vmem:[%s11440_s1 + $0xa44] ss:$16 sps:$4 sm:$0xff]  }
 0x10c   :  { %5189 = vmatprep.subr.bf16.mxu0 %v7885_v41  ;;  %5722 = vmatprep.subr.bf16.mxu1 %v7888_v42  ;;  %v7970_v41 = vld [vmem:[%s11440_s1 + $0xa28] ss:$16 sps:$4 sm:$0xff]   ;;  %v7978_v42 = vld [vmem:[%s11440_s1 + $0xa4c] ss:$16 sps:$4 sm:$0xff]  }
 0x10f   :  { %5190 = vmatpush1.bf16.msra.mxu0 %v7883_v44  ;;  %5723 = vmatpush1.bf16.msra.mxu1 %v7886_v45  ;;  %v7973_v44 = vld [vmem:[%s11440_s1 + $0xa40] ss:$16 sps:$4 sm:$0xff]   ;;  %v7976_v45 = vld [vmem:[%s11440_s1 + $0xa48] ss:$16 sps:$4 sm:$0xff]  }
 0x110   :  { %5191 = vmatprep.subr.bf16.mxu0 %v7891_v46  ;;  %5724 = vmatprep.subr.bf16.mxu1 %v7894_v47  ;;  %v7981_v46 = vld [vmem:[%s11440_s1 + $0xa64] ss:$16 sps:$4 sm:$0xff]   ;;  %v7984_v47 = vld [vmem:[%s11440_s1 + $0xa6c] ss:$16 sps:$4 sm:$0xff]  }
 0x113   :  { %5192 = vmatpush1.bf16.msra.mxu0 %v7889_v48  ;;  %5725 = vmatpush1.bf16.msra.mxu1 %v7892_v50  ;;  %v7979_v48 = vld [vmem:[%s11440_s1 + $0xa60] ss:$16 sps:$4 sm:$0xff]   ;;  %v7982_v50 = vld [vmem:[%s11440_s1 + $0xa68] ss:$16 sps:$4 sm:$0xff]  }
 0x114   :  { %5193 = vmatprep.subr.bf16.mxu0 %v7897_v51  ;;  %5726 = vmatprep.subr.bf16.mxu1 %v7900_v53  ;;  %v7987_v51 = vld [vmem:[%s11440_s1 + $0xa84] ss:$16 sps:$4 sm:$0xff]   ;;  %v7990_v53 = vld [vmem:[%s11440_s1 + $0xa8c] ss:$16 sps:$4 sm:$0xff]  }
 0x117   :  { %5194 = vmatpush1.bf16.msra.mxu0 %v7895_v54  ;;  %5727 = vmatpush1.bf16.msra.mxu1 %v7898_v55  ;;  %v7985_v54 = vld [vmem:[%s11440_s1 + $0xa80] ss:$16 sps:$4 sm:$0xff]   ;;  %v7988_v55 = vld [vmem:[%s11440_s1 + $0xa88] ss:$16 sps:$4 sm:$0xff]  }
 0x118   :  { %5195 = vmatprep.subr.bf16.mxu0 %v7903_v56  ;;  %5728 = vmatprep.subr.bf16.mxu1 %v7906_v57  ;;  %v7993_v56 = vld [vmem:[%s11440_s1 + $0xaa4] ss:$16 sps:$4 sm:$0xff]   ;;  %v7996_v57 = vld [vmem:[%s11440_s1 + $0xaac] ss:$16 sps:$4 sm:$0xff]  }
 0x11b   :  { %5196 = vmatpush1.bf16.msra.mxu0 %v7901_v58  ;;  %5729 = vmatpush1.bf16.msra.mxu1 %v7904_v59  ;;  %v7991_v58 = vld [vmem:[%s11440_s1 + $0xaa0] ss:$16 sps:$4 sm:$0xff]   ;;  %v7994_v59 = vld [vmem:[%s11440_s1 + $0xaa8] ss:$16 sps:$4 sm:$0xff]  }
 0x11c   :  { %5197 = vmatprep.subr.bf16.mxu0 %v7909_v60  ;;  %5730 = vmatprep.subr.bf16.mxu1 %v7912_v61  ;;  %v7999_v60 = vld [vmem:[%s11440_s1 + $0xac4] ss:$16 sps:$4 sm:$0xff]   ;;  %v8002_v61 = vld [vmem:[%s11440_s1 + $0xacc] ss:$16 sps:$4 sm:$0xff]  }
 0x11f   :  { %5198 = vmatpush1.bf16.msra.mxu0 %v7907_v62  ;;  %5731 = vmatpush1.bf16.msra.mxu1 %v7910_v63  ;;  %v7997_v62 = vld [vmem:[%s11440_s1 + $0xac0] ss:$16 sps:$4 sm:$0xff]   ;;  %v8000_v63 = vld [vmem:[%s11440_s1 + $0xac8] ss:$16 sps:$4 sm:$0xff]  }
 0x120   :  { %5199 = vmatprep.subr.bf16.mxu0 %v7915_v0  ;;  %5732 = vmatprep.subr.bf16.mxu1 %v7918_v1  ;;  %v8005_v0 = vld [vmem:[%s11440_s1 + $0xae4] ss:$16 sps:$4 sm:$0xff]   ;;  %v8008_v1 = vld [vmem:[%s11440_s1 + $0xaec] ss:$16 sps:$4 sm:$0xff]  }
 0x123   :  { %5200 = vmatpush1.bf16.msra.mxu0 %v7913_v2  ;;  %5733 = vmatpush1.bf16.msra.mxu1 %v7916_v3  ;;  %v8003_v2 = vld [vmem:[%s11440_s1 + $0xae0] ss:$16 sps:$4 sm:$0xff]   ;;  %v8006_v3 = vld [vmem:[%s11440_s1 + $0xae8] ss:$16 sps:$4 sm:$0xff]  }
 0x124   :  { %5201 = vmatprep.subr.bf16.mxu0 %v7921_v4  ;;  %5734 = vmatprep.subr.bf16.mxu1 %v7924_v5  ;;  %v8011_v4 = vld [vmem:[%s11440_s1 + $0xb04] ss:$16 sps:$4 sm:$0xff]   ;;  %v8014_v5 = vld [vmem:[%s11440_s1 + $0xb0c] ss:$16 sps:$4 sm:$0xff]  }
 0x127   :  { %5202 = vmatpush1.bf16.msra.mxu0 %v7919_v6  ;;  %5735 = vmatpush1.bf16.msra.mxu1 %v7922_v7  ;;  %v8009_v6 = vld [vmem:[%s11440_s1 + $0xb00] ss:$16 sps:$4 sm:$0xff]   ;;  %v8012_v7 = vld [vmem:[%s11440_s1 + $0xb08] ss:$16 sps:$4 sm:$0xff]  }
 0x128   :  { %5203 = vmatprep.subr.bf16.mxu0 %v7927_v8  ;;  %5736 = vmatprep.subr.bf16.mxu1 %v7930_v9  ;;  %v8017_v8 = vld [vmem:[%s11440_s1 + $0xb24] ss:$16 sps:$4 sm:$0xff]   ;;  %v8020_v9 = vld [vmem:[%s11440_s1 + $0xb2c] ss:$16 sps:$4 sm:$0xff]  }
 0x12b   :  { %5204 = vmatpush1.bf16.msra.mxu0 %v7925_v10  ;;  %5737 = vmatpush1.bf16.msra.mxu1 %v7928_v11  ;;  %v8015_v10 = vld [vmem:[%s11440_s1 + $0xb20] ss:$16 sps:$4 sm:$0xff]   ;;  %v8018_v11 = vld [vmem:[%s11440_s1 + $0xb28] ss:$16 sps:$4 sm:$0xff]  }
 0x12c   :  { %5205 = vmatprep.subr.bf16.mxu0 %v7933_v12  ;;  %5738 = vmatprep.subr.bf16.mxu1 %v7936_v52  ;;  %v8023_v12 = vld [vmem:[%s11440_s1 + $0xb44] ss:$16 sps:$4 sm:$0xff]   ;;  %v8026_v52 = vld [vmem:[%s11440_s1 + $0xb4c] ss:$16 sps:$4 sm:$0xff]  }
 0x12f   :  { %5206 = vmatpush1.bf16.msra.mxu0 %v7931_v15  ;;  %5739 = vmatpush1.bf16.msra.mxu1 %v7934_v16  ;;  %v8021_v15 = vld [vmem:[%s11440_s1 + $0xb40] ss:$16 sps:$4 sm:$0xff]   ;;  %v8024_v16 = vld [vmem:[%s11440_s1 + $0xb48] ss:$16 sps:$4 sm:$0xff]  }
 0x130   :  { %5207 = vmatprep.subr.bf16.mxu0 %v7939_v17  ;;  %5740 = vmatprep.subr.bf16.mxu1 %v7942_v18  ;;  %v8029_v17 = vld [vmem:[%s11440_s1 + $0xb64] ss:$16 sps:$4 sm:$0xff]   ;;  %v8032_v18 = vld [vmem:[%s11440_s1 + $0xb6c] ss:$16 sps:$4 sm:$0xff]  }
 0x133   :  { %5208 = vmatpush1.bf16.msra.mxu0 %v7937_v19  ;;  %5741 = vmatpush1.bf16.msra.mxu1 %v7940_v20  ;;  %v8027_v19 = vld [vmem:[%s11440_s1 + $0xb60] ss:$16 sps:$4 sm:$0xff]   ;;  %v8030_v20 = vld [vmem:[%s11440_s1 + $0xb68] ss:$16 sps:$4 sm:$0xff]  }
 0x134   :  { %5209 = vmatprep.subr.bf16.mxu0 %v7945_v22  ;;  %5742 = vmatprep.subr.bf16.mxu1 %v7948_v23  ;;  %v8035_v22 = vld [vmem:[%s11440_s1 + $0xb84] ss:$16 sps:$4 sm:$0xff]   ;;  %v8038_v23 = vld [vmem:[%s11440_s1 + $0xb8c] ss:$16 sps:$4 sm:$0xff]  }
 0x137   :  { %5210 = vmatpush1.bf16.msra.mxu0 %v7943_v24  ;;  %5743 = vmatpush1.bf16.msra.mxu1 %v7946_v13  ;;  %v8033_v24 = vld [vmem:[%s11440_s1 + $0xb80] ss:$16 sps:$4 sm:$0xff]   ;;  %v8036_v13 = vld [vmem:[%s11440_s1 + $0xb88] ss:$16 sps:$4 sm:$0xff]  }
 0x138   :  { %5211 = vmatprep.subr.bf16.mxu0 %v7951_v27  ;;  %5744 = vmatprep.subr.bf16.mxu1 %v7954_v28  ;;  %v8041_v27 = vld [vmem:[%s11440_s1 + $0xba4] ss:$16 sps:$4 sm:$0xff]   ;;  %v8044_v28 = vld [vmem:[%s11440_s1 + $0xbac] ss:$16 sps:$4 sm:$0xff]  }
 0x13b   :  { %5212 = vmatpush1.bf16.msra.mxu0 %v7949_v29  ;;  %5745 = vmatpush1.bf16.msra.mxu1 %v7952_v14  ;;  %v8039_v29 = vld [vmem:[%s11440_s1 + $0xba0] ss:$16 sps:$4 sm:$0xff]   ;;  %v8042_v14 = vld [vmem:[%s11440_s1 + $0xba8] ss:$16 sps:$4 sm:$0xff]  }
 0x13c   :  { %5213 = vmatprep.subr.bf16.mxu0 %v7957_v30  ;;  %5746 = vmatprep.subr.bf16.mxu1 %v7960_v31  ;;  %v8047_v30 = vld [vmem:[%s11440_s1 + $0xbc4] ss:$16 sps:$4 sm:$0xff]   ;;  %v8050_v31 = vld [vmem:[%s11440_s1 + $0xbcc] ss:$16 sps:$4 sm:$0xff]  }
 0x13f   :  { %5214 = vmatpush1.bf16.msra.mxu0 %v7955_v25  ;;  %5747 = vmatpush1.bf16.msra.mxu1 %v7958_v32  ;;  %v8715_v25 = vld [vmem:[%s11439_s0 + $0x8] sm:$0xff] }
 0x140   :  { %5224 = vmatprep.subr.bf16.mxu0 %v7963_v33  ;;  %5757 = vmatprep.subr.bf16.mxu1 %v7966_v26  ;;  %v882_v32 = vcombine.high %v8715_v25, %v8715_v25  ;;  %v8045_v33 = vld [vmem:[%s11440_s1 + $0xbc0] ss:$16 sps:$4 sm:$0xff]   ;;  %v8048_v26 = vld [vmem:[%s11440_s1 + $0xbc8] ss:$16 sps:$4 sm:$0xff]  }
 0x141   :  { %v8129_v25 = vld [vmem:[%s11440_s1 + $0xd80] ss:$16 sps:$4 sm:$0xff]  }
 0x142   :  { %5216 = vmatmul.mubr.bf16.vlgmr.msra.gmra.mrb[0].mxu0 %v9801_v35  ;;  %5749 = vmatmul.mubr.bf16.vlgmr.msra.gmra.mrb[0].mxu1 %v9801_v35 }
 0x143   :  { %5225 = vmatpush1.bf16.msra.mxu0 %v7961_v36  ;;  %5758 = vmatpush1.bf16.msra.mxu1 %v7964_v37  ;;  %v8053_v36 = vld [vmem:[%s11440_s1 + $0xbe4] ss:$16 sps:$4 sm:$0xff]   ;;  %v8056_v37 = vld [vmem:[%s11440_s1 + $0xbec] ss:$16 sps:$4 sm:$0xff]  }
 0x144   :  { %5226 = vmatprep.subr.bf16.mxu0 %v7969_v38  ;;  %5759 = vmatprep.subr.bf16.mxu1 %v7972_v21  ;;  %v9991_v38 = vrot.slane %v882_v32, %v8914_v49  ;;  %v8051_v21 = vld [vmem:[%s11440_s1 + $0xbe0] ss:$16 sps:$4 sm:$0xff]   ;;  %v8132_v32 = vld [vmem:[%s11440_s1 + $0xd88] ss:$16 sps:$4 sm:$0xff]  }
 0x145   :  { %5256 = vmatprep.mubr.bf16.mxu0 %v929_v39  ;;  %5789 = vmatprep.mubr.bf16.mxu1 %v929_v39  ;;  %v8054_v39 = vld [vmem:[%s11440_s1 + $0xbe8] ss:$16 sps:$4 sm:$0xff]  }
 0x147   :  { %5227 = vmatpush1.bf16.msra.mxu0 %v7967_v40  ;;  %5760 = vmatpush1.bf16.msra.mxu1 %v7970_v41  ;;  %v8059_v40 = vld [vmem:[%s11440_s1 + $0xc04] ss:$16 sps:$4 sm:$0xff]   ;;  %v8062_v41 = vld [vmem:[%s11440_s1 + $0xc0c] ss:$16 sps:$4 sm:$0xff]  }
 0x148   :  { %5228 = vmatprep.subr.bf16.mxu0 %v7975_v34  ;;  %5761 = vmatprep.subr.bf16.mxu1 %v7978_v42  ;;  %v898_v34 = vcombine.high %v9991_v38, %v9991_v38  ;;  %v927_v42 = vcombine.high %v9801_v35, %v9801_v35  ;;  %v8068_v35 = vld [vmem:[%s11440_s1 + $0xc2c] ss:$16 sps:$4 sm:$0xff]  }
 0x14b   :  { %5229 = vmatpush1.bf16.msra.mxu0 %v7973_v44  ;;  %5762 = vmatpush1.bf16.msra.mxu1 %v7976_v45  ;;  %v8057_v44 = vld [vmem:[%s11440_s1 + $0xc00] ss:$16 sps:$4 sm:$0xff]   ;;  %v8060_v45 = vld [vmem:[%s11440_s1 + $0xc08] ss:$16 sps:$4 sm:$0xff]  }
 0x14c   :  { %5230 = vmatprep.subr.bf16.mxu0 %v7981_v46  ;;  %5763 = vmatprep.subr.bf16.mxu1 %v7984_v47  ;;  %v8065_v46 = vld [vmem:[%s11440_s1 + $0xc24] ss:$16 sps:$4 sm:$0xff]   ;;  %v10022_v47 = vrot.slane %v898_v34, %v8914_v49 }
 0x14d   :  { %v8149_v34 = vld [vmem:[%s11440_s1 + $0xde4] ss:$16 sps:$4 sm:$0xff]  }
 0x14f   :  { %5231 = vmatpush1.bf16.msra.mxu0 %v7979_v48  ;;  %5764 = vmatpush1.bf16.msra.mxu1 %v7982_v50  ;;  %v8063_v48 = vld [vmem:[%s11440_s1 + $0xc20] ss:$16 sps:$4 sm:$0xff]   ;;  %v8066_v50 = vld [vmem:[%s11440_s1 + $0xc28] ss:$16 sps:$4 sm:$0xff]  }
 0x150   :  { %5232 = vmatprep.subr.bf16.mxu0 %v7987_v51  ;;  %5765 = vmatprep.subr.bf16.mxu1 %v7990_v53  ;;  %v8071_v51 = vld [vmem:[%s11440_s1 + $0xc44] ss:$16 sps:$4 sm:$0xff]   ;;  %v8074_v53 = vld [vmem:[%s11440_s1 + $0xc4c] ss:$16 sps:$4 sm:$0xff]  }
 0x153   :  { %5233 = vmatpush1.bf16.msra.mxu0 %v7985_v54  ;;  %5766 = vmatpush1.bf16.msra.mxu1 %v7988_v55  ;;  %v8069_v54 = vld [vmem:[%s11440_s1 + $0xc40] ss:$16 sps:$4 sm:$0xff]   ;;  %v8072_v55 = vld [vmem:[%s11440_s1 + $0xc48] ss:$16 sps:$4 sm:$0xff]  }
 0x154   :  { %5234 = vmatprep.subr.bf16.mxu0 %v7993_v56  ;;  %5767 = vmatprep.subr.bf16.mxu1 %v7996_v57  ;;  %v8077_v56 = vld [vmem:[%s11440_s1 + $0xc64] ss:$16 sps:$4 sm:$0xff]   ;;  %v8080_v57 = vld [vmem:[%s11440_s1 + $0xc6c] ss:$16 sps:$4 sm:$0xff]  }
 0x157   :  { %5235 = vmatpush1.bf16.msra.mxu0 %v7991_v58  ;;  %5768 = vmatpush1.bf16.msra.mxu1 %v7994_v59  ;;  %v8075_v58 = vld [vmem:[%s11440_s1 + $0xc60] ss:$16 sps:$4 sm:$0xff]   ;;  %v8078_v59 = vld [vmem:[%s11440_s1 + $0xc68] ss:$16 sps:$4 sm:$0xff]  }
 0x158   :  { %5236 = vmatprep.subr.bf16.mxu0 %v7999_v60  ;;  %5769 = vmatprep.subr.bf16.mxu1 %v8002_v61  ;;  %v8083_v60 = vld [vmem:[%s11440_s1 + $0xc84] ss:$16 sps:$4 sm:$0xff]   ;;  %v8086_v61 = vld [vmem:[%s11440_s1 + $0xc8c] ss:$16 sps:$4 sm:$0xff]  }
 0x15b   :  { %5237 = vmatpush1.bf16.msra.mxu0 %v7997_v62  ;;  %5770 = vmatpush1.bf16.msra.mxu1 %v8000_v63  ;;  %v8081_v62 = vld [vmem:[%s11440_s1 + $0xc80] ss:$16 sps:$4 sm:$0xff]   ;;  %v8084_v63 = vld [vmem:[%s11440_s1 + $0xc88] ss:$16 sps:$4 sm:$0xff]  }
 0x15c   :  { %5238 = vmatprep.subr.bf16.mxu0 %v8005_v0  ;;  %5771 = vmatprep.subr.bf16.mxu1 %v8008_v1  ;;  %v8089_v0 = vld [vmem:[%s11440_s1 + $0xca4] ss:$16 sps:$4 sm:$0xff]   ;;  %v8092_v1 = vld [vmem:[%s11440_s1 + $0xcac] ss:$16 sps:$4 sm:$0xff]  }
 0x15f   :  { %5239 = vmatpush1.bf16.msra.mxu0 %v8003_v2  ;;  %5772 = vmatpush1.bf16.msra.mxu1 %v8006_v3  ;;  %v8087_v2 = vld [vmem:[%s11440_s1 + $0xca0] ss:$16 sps:$4 sm:$0xff]   ;;  %v8090_v3 = vld [vmem:[%s11440_s1 + $0xca8] ss:$16 sps:$4 sm:$0xff]  }
 0x160   :  { %5240 = vmatprep.subr.bf16.mxu0 %v8011_v4  ;;  %5773 = vmatprep.subr.bf16.mxu1 %v8014_v5  ;;  %v8095_v4 = vld [vmem:[%s11440_s1 + $0xcc4] ss:$16 sps:$4 sm:$0xff]   ;;  %v8098_v5 = vld [vmem:[%s11440_s1 + $0xccc] ss:$16 sps:$4 sm:$0xff]  }
 0x163   :  { %5241 = vmatpush1.bf16.msra.mxu0 %v8009_v6  ;;  %5774 = vmatpush1.bf16.msra.mxu1 %v8012_v7  ;;  %v8093_v6 = vld [vmem:[%s11440_s1 + $0xcc0] ss:$16 sps:$4 sm:$0xff]   ;;  %v8096_v7 = vld [vmem:[%s11440_s1 + $0xcc8] ss:$16 sps:$4 sm:$0xff]  }
 0x164   :  { %5242 = vmatprep.subr.bf16.mxu0 %v8017_v8  ;;  %5775 = vmatprep.subr.bf16.mxu1 %v8020_v9  ;;  %v8101_v8 = vld [vmem:[%s11440_s1 + $0xce4] ss:$16 sps:$4 sm:$0xff]   ;;  %v8104_v9 = vld [vmem:[%s11440_s1 + $0xcec] ss:$16 sps:$4 sm:$0xff]  }
 0x167   :  { %5243 = vmatpush1.bf16.msra.mxu0 %v8015_v10  ;;  %5776 = vmatpush1.bf16.msra.mxu1 %v8018_v11  ;;  %v8099_v10 = vld [vmem:[%s11440_s1 + $0xce0] ss:$16 sps:$4 sm:$0xff]   ;;  %v8102_v11 = vld [vmem:[%s11440_s1 + $0xce8] ss:$16 sps:$4 sm:$0xff]  }
 0x168   :  { %5244 = vmatprep.subr.bf16.mxu0 %v8023_v12  ;;  %5777 = vmatprep.subr.bf16.mxu1 %v8026_v52  ;;  %v8107_v12 = vld [vmem:[%s11440_s1 + $0xd04] ss:$16 sps:$4 sm:$0xff]   ;;  %v8110_v52 = vld [vmem:[%s11440_s1 + $0xd0c] ss:$16 sps:$4 sm:$0xff]  }
 0x16b   :  { %5245 = vmatpush1.bf16.msra.mxu0 %v8021_v15  ;;  %5778 = vmatpush1.bf16.msra.mxu1 %v8024_v16  ;;  %v8105_v15 = vld [vmem:[%s11440_s1 + $0xd00] ss:$16 sps:$4 sm:$0xff]   ;;  %v8108_v16 = vld [vmem:[%s11440_s1 + $0xd08] ss:$16 sps:$4 sm:$0xff]  }
 0x16c   :  { %5246 = vmatprep.subr.bf16.mxu0 %v8029_v17  ;;  %5779 = vmatprep.subr.bf16.mxu1 %v8032_v18  ;;  %v8113_v17 = vld [vmem:[%s11440_s1 + $0xd24] ss:$16 sps:$4 sm:$0xff]   ;;  %v8116_v18 = vld [vmem:[%s11440_s1 + $0xd2c] ss:$16 sps:$4 sm:$0xff]  }
 0x16f   :  { %5247 = vmatpush1.bf16.msra.mxu0 %v8027_v19  ;;  %5780 = vmatpush1.bf16.msra.mxu1 %v8030_v20  ;;  %v8111_v19 = vld [vmem:[%s11440_s1 + $0xd20] ss:$16 sps:$4 sm:$0xff]   ;;  %v8114_v20 = vld [vmem:[%s11440_s1 + $0xd28] ss:$16 sps:$4 sm:$0xff]  }
 0x170   :  { %5248 = vmatprep.subr.bf16.mxu0 %v8035_v22  ;;  %5781 = vmatprep.subr.bf16.mxu1 %v8038_v23  ;;  %v8119_v22 = vld [vmem:[%s11440_s1 + $0xd44] ss:$16 sps:$4 sm:$0xff]   ;;  %v8122_v23 = vld [vmem:[%s11440_s1 + $0xd4c] ss:$16 sps:$4 sm:$0xff]  }
 0x173   :  { %5249 = vmatpush1.bf16.msra.mxu0 %v8033_v24  ;;  %5782 = vmatpush1.bf16.msra.mxu1 %v8036_v13  ;;  %v8117_v24 = vld [vmem:[%s11440_s1 + $0xd40] ss:$16 sps:$4 sm:$0xff]   ;;  %v8120_v13 = vld [vmem:[%s11440_s1 + $0xd48] ss:$16 sps:$4 sm:$0xff]  }
 0x174   :  { %5250 = vmatprep.subr.bf16.mxu0 %v8041_v27  ;;  %5783 = vmatprep.subr.bf16.mxu1 %v8044_v28  ;;  %v8125_v27 = vld [vmem:[%s11440_s1 + $0xd64] ss:$16 sps:$4 sm:$0xff]   ;;  %v8128_v28 = vld [vmem:[%s11440_s1 + $0xd6c] ss:$16 sps:$4 sm:$0xff]  }
 0x177   :  { %5251 = vmatpush1.bf16.msra.mxu0 %v8039_v29  ;;  %5784 = vmatpush1.bf16.msra.mxu1 %v8042_v14  ;;  %v8123_v29 = vld [vmem:[%s11440_s1 + $0xd60] ss:$16 sps:$4 sm:$0xff]   ;;  %v8126_v14 = vld [vmem:[%s11440_s1 + $0xd68] ss:$16 sps:$4 sm:$0xff]  }
 0x178   :  { %5252 = vmatprep.subr.bf16.mxu0 %v8047_v30  ;;  %5785 = vmatprep.subr.bf16.mxu1 %v8050_v31  ;;  %v8131_v30 = vld [vmem:[%s11440_s1 + $0xd84] ss:$16 sps:$4 sm:$0xff]   ;;  %v8134_v31 = vld [vmem:[%s11440_s1 + $0xd8c] ss:$16 sps:$4 sm:$0xff]  }
 0x17b   :  { %5253 = vmatpush1.bf16.msra.mxu0 %v8045_v33  ;;  %5786 = vmatpush1.bf16.msra.mxu1 %v8048_v26  ;;  %v8137_v33 = vld [vmem:[%s11440_s1 + $0xda4] ss:$16 sps:$4 sm:$0xff]   ;;  %v8140_v26 = vld [vmem:[%s11440_s1 + $0xdac] ss:$16 sps:$4 sm:$0xff]  }
 0x17c   :  { %5254 = vmatprep.subr.bf16.mxu0 %v8053_v36  ;;  %5787 = vmatprep.subr.bf16.mxu1 %v8056_v37  ;;  %v8135_v36 = vld [vmem:[%s11440_s1 + $0xda0] ss:$16 sps:$4 sm:$0xff]   ;;  %v8138_v37 = vld [vmem:[%s11440_s1 + $0xda8] ss:$16 sps:$4 sm:$0xff]  }
 0x17f   :  { %5255 = vmatpush1.bf16.msra.mxu0 %v8051_v21  ;;  %5788 = vmatpush1.bf16.msra.mxu1 %v8054_v39  ;;  %v8143_v21 = vld [vmem:[%s11440_s1 + $0xdc4] ss:$16 sps:$4 sm:$0xff]   ;;  %v8146_v39 = vld [vmem:[%s11440_s1 + $0xdcc] ss:$16 sps:$4 sm:$0xff]  }
 0x180   :  { %5265 = vmatprep.subr.bf16.mxu0 %v8059_v40  ;;  %5798 = vmatprep.subr.bf16.mxu1 %v8062_v41  ;;  %v8141_v40 = vld [vmem:[%s11440_s1 + $0xdc0] ss:$16 sps:$4 sm:$0xff]   ;;  %v8144_v41 = vld [vmem:[%s11440_s1 + $0xdc8] ss:$16 sps:$4 sm:$0xff]  }
 0x182   :  { %5257 = vmatmul.mubr.bf16.vlgmr.msra.gmra.mrb[0].mxu0 %v927_v42  ;;  %5790 = vmatmul.mubr.bf16.vlgmr.msra.gmra.mrb[0].mxu1 %v927_v42  ;;  %v8152_v42 = vld [vmem:[%s11440_s1 + $0xdec] ss:$16 sps:$4 sm:$0xff]  }
 0x183   :  { %5266 = vmatpush1.bf16.msra.mxu0 %v8057_v44  ;;  %5799 = vmatpush1.bf16.msra.mxu1 %v8060_v45  ;;  %v8147_v44 = vld [vmem:[%s11440_s1 + $0xde0] ss:$16 sps:$4 sm:$0xff]   ;;  %v8150_v45 = vld [vmem:[%s11440_s1 + $0xde8] ss:$16 sps:$4 sm:$0xff]  }
 0x184   :  { %5267 = vmatprep.subr.bf16.mxu0 %v8065_v46  ;;  %5800 = vmatprep.subr.bf16.mxu1 %v8068_v35  ;;  %v8156_v46 = vld [vmem:[%s11440_s1 + $0xe04] ss:$16 sps:$4 sm:$0xff]   ;;  %v8159_v35 = vld [vmem:[%s11440_s1 + $0xe0c] ss:$16 sps:$4 sm:$0xff]  }
 0x185   :  { %5297 = vmatprep.mubr.bf16.mxu0 %v10022_v47  ;;  %5830 = vmatprep.mubr.bf16.mxu1 %v10022_v47 }
 0x187   :  { %5268 = vmatpush1.bf16.msra.mxu0 %v8063_v48  ;;  %5801 = vmatpush1.bf16.msra.mxu1 %v8066_v50  ;;  %v10208_v48 = vrot.slane %v9991_v38, %v8914_v49  ;;  %v8154_v50 = vld [vmem:[%s11440_s1 + $0xe00] ss:$16 sps:$4 sm:$0xff]   ;;  %v8165_v38 = vld [vmem:[%s11440_s1 + $0xe2c] ss:$16 sps:$4 sm:$0xff]  }
 0x188   :  { %5269 = vmatprep.subr.bf16.mxu0 %v8071_v51  ;;  %5802 = vmatprep.subr.bf16.mxu1 %v8074_v53  ;;  %v8157_v51 = vld [vmem:[%s11440_s1 + $0xe08] ss:$16 sps:$4 sm:$0xff]   ;;  %v8162_v53 = vld [vmem:[%s11440_s1 + $0xe24] ss:$16 sps:$4 sm:$0xff]  }
 0x18b   :  { %5270 = vmatpush1.bf16.msra.mxu0 %v8069_v54  ;;  %5803 = vmatpush1.bf16.msra.mxu1 %v8072_v55  ;;  %v930_v54 = vcombine.high %v10022_v47, %v10022_v47  ;;  %v8160_v55 = vld [vmem:[%s11440_s1 + $0xe20] ss:$16 sps:$4 sm:$0xff]   ;;  %v8168_v47 = vld [vmem:[%s11440_s1 + $0xe44] ss:$16 sps:$4 sm:$0xff]  }
 0x18c   :  { %5271 = vmatprep.subr.bf16.mxu0 %v8077_v56  ;;  %5804 = vmatprep.subr.bf16.mxu1 %v8080_v57  ;;  %v8163_v56 = vld [vmem:[%s11440_s1 + $0xe28] ss:$16 sps:$4 sm:$0xff]   ;;  %v8171_v57 = vld [vmem:[%s11440_s1 + $0xe4c] ss:$16 sps:$4 sm:$0xff]  }
 0x18f   :  { %5272 = vmatpush1.bf16.msra.mxu0 %v8075_v58  ;;  %5805 = vmatpush1.bf16.msra.mxu1 %v8078_v59  ;;  %v8166_v58 = vld [vmem:[%s11440_s1 + $0xe40] ss:$16 sps:$4 sm:$0xff]   ;;  %v8169_v59 = vld [vmem:[%s11440_s1 + $0xe48] ss:$16 sps:$4 sm:$0xff]  }
 0x190   :  { %5273 = vmatprep.subr.bf16.mxu0 %v8083_v60  ;;  %5806 = vmatprep.subr.bf16.mxu1 %v8086_v61  ;;  %v8174_v60 = vld [vmem:[%s11440_s1 + $0xe64] ss:$16 sps:$4 sm:$0xff]   ;;  %v8177_v61 = vld [vmem:[%s11440_s1 + $0xe6c] ss:$16 sps:$4 sm:$0xff]  }
 0x193   :  { %5274 = vmatpush1.bf16.msra.mxu0 %v8081_v62  ;;  %5807 = vmatpush1.bf16.msra.mxu1 %v8084_v63  ;;  %v8172_v62 = vld [vmem:[%s11440_s1 + $0xe60] ss:$16 sps:$4 sm:$0xff]   ;;  %v8175_v63 = vld [vmem:[%s11440_s1 + $0xe68] ss:$16 sps:$4 sm:$0xff]  }
 0x194   :  { %5275 = vmatprep.subr.bf16.mxu0 %v8089_v0  ;;  %5808 = vmatprep.subr.bf16.mxu1 %v8092_v1  ;;  %v8180_v0 = vld [vmem:[%s11440_s1 + $0xe84] ss:$16 sps:$4 sm:$0xff]   ;;  %v8183_v1 = vld [vmem:[%s11440_s1 + $0xe8c] ss:$16 sps:$4 sm:$0xff]  }
 0x197   :  { %5276 = vmatpush1.bf16.msra.mxu0 %v8087_v2  ;;  %5809 = vmatpush1.bf16.msra.mxu1 %v8090_v3  ;;  %v8178_v2 = vld [vmem:[%s11440_s1 + $0xe80] ss:$16 sps:$4 sm:$0xff]   ;;  %v8181_v3 = vld [vmem:[%s11440_s1 + $0xe88] ss:$16 sps:$4 sm:$0xff]  }
 0x198   :  { %5277 = vmatprep.subr.bf16.mxu0 %v8095_v4  ;;  %5810 = vmatprep.subr.bf16.mxu1 %v8098_v5  ;;  %v8186_v4 = vld [vmem:[%s11440_s1 + $0xea4] ss:$16 sps:$4 sm:$0xff]   ;;  %v8189_v5 = vld [vmem:[%s11440_s1 + $0xeac] ss:$16 sps:$4 sm:$0xff]  }
 0x19b   :  { %5278 = vmatpush1.bf16.msra.mxu0 %v8093_v6  ;;  %5811 = vmatpush1.bf16.msra.mxu1 %v8096_v7  ;;  %v8184_v6 = vld [vmem:[%s11440_s1 + $0xea0] ss:$16 sps:$4 sm:$0xff]   ;;  %v8187_v7 = vld [vmem:[%s11440_s1 + $0xea8] ss:$16 sps:$4 sm:$0xff]  }
 0x19c   :  { %5279 = vmatprep.subr.bf16.mxu0 %v8101_v8  ;;  %5812 = vmatprep.subr.bf16.mxu1 %v8104_v9  ;;  %v8192_v8 = vld [vmem:[%s11440_s1 + $0xec4] ss:$16 sps:$4 sm:$0xff]   ;;  %v8195_v9 = vld [vmem:[%s11440_s1 + $0xecc] ss:$16 sps:$4 sm:$0xff]  }
 0x19f   :  { %5280 = vmatpush1.bf16.msra.mxu0 %v8099_v10  ;;  %5813 = vmatpush1.bf16.msra.mxu1 %v8102_v11  ;;  %v8190_v10 = vld [vmem:[%s11440_s1 + $0xec0] ss:$16 sps:$4 sm:$0xff]   ;;  %v8193_v11 = vld [vmem:[%s11440_s1 + $0xec8] ss:$16 sps:$4 sm:$0xff]  }
 0x1a0   :  { %5281 = vmatprep.subr.bf16.mxu0 %v8107_v12  ;;  %5814 = vmatprep.subr.bf16.mxu1 %v8110_v52  ;;  %v8198_v12 = vld [vmem:[%s11440_s1 + $0xee4] ss:$16 sps:$4 sm:$0xff]   ;;  %v8201_v52 = vld [vmem:[%s11440_s1 + $0xeec] ss:$16 sps:$4 sm:$0xff]  }
 0x1a3   :  { %5282 = vmatpush1.bf16.msra.mxu0 %v8105_v15  ;;  %5815 = vmatpush1.bf16.msra.mxu1 %v8108_v16  ;;  %v8196_v15 = vld [vmem:[%s11440_s1 + $0xee0] ss:$16 sps:$4 sm:$0xff]   ;;  %v8199_v16 = vld [vmem:[%s11440_s1 + $0xee8] ss:$16 sps:$4 sm:$0xff]  }
 0x1a4   :  { %5283 = vmatprep.subr.bf16.mxu0 %v8113_v17  ;;  %5816 = vmatprep.subr.bf16.mxu1 %v8116_v18  ;;  %v8204_v17 = vld [vmem:[%s11440_s1 + $0xf04] ss:$16 sps:$4 sm:$0xff]   ;;  %v8207_v18 = vld [vmem:[%s11440_s1 + $0xf0c] ss:$16 sps:$4 sm:$0xff]  }
 0x1a7   :  { %5284 = vmatpush1.bf16.msra.mxu0 %v8111_v19  ;;  %5817 = vmatpush1.bf16.msra.mxu1 %v8114_v20  ;;  %v8202_v19 = vld [vmem:[%s11440_s1 + $0xf00] ss:$16 sps:$4 sm:$0xff]   ;;  %v8205_v20 = vld [vmem:[%s11440_s1 + $0xf08] ss:$16 sps:$4 sm:$0xff]  }
 0x1a8   :  { %5285 = vmatprep.subr.bf16.mxu0 %v8119_v22  ;;  %5818 = vmatprep.subr.bf16.mxu1 %v8122_v23  ;;  %v8210_v22 = vld [vmem:[%s11440_s1 + $0xf24] ss:$16 sps:$4 sm:$0xff]   ;;  %v8213_v23 = vld [vmem:[%s11440_s1 + $0xf2c] ss:$16 sps:$4 sm:$0xff]  }
 0x1ab   :  { %5286 = vmatpush1.bf16.msra.mxu0 %v8117_v24  ;;  %5819 = vmatpush1.bf16.msra.mxu1 %v8120_v13  ;;  %v8208_v24 = vld [vmem:[%s11440_s1 + $0xf20] ss:$16 sps:$4 sm:$0xff]   ;;  %v8211_v13 = vld [vmem:[%s11440_s1 + $0xf28] ss:$16 sps:$4 sm:$0xff]  }
 0x1ac   :  { %5287 = vmatprep.subr.bf16.mxu0 %v8125_v27  ;;  %5820 = vmatprep.subr.bf16.mxu1 %v8128_v28  ;;  %v8216_v27 = vld [vmem:[%s11440_s1 + $0xf44] ss:$16 sps:$4 sm:$0xff]   ;;  %v8219_v28 = vld [vmem:[%s11440_s1 + $0xf4c] ss:$16 sps:$4 sm:$0xff]  }
 0x1af   :  { %5288 = vmatpush1.bf16.msra.mxu0 %v8123_v29  ;;  %5821 = vmatpush1.bf16.msra.mxu1 %v8126_v14  ;;  %v8214_v29 = vld [vmem:[%s11440_s1 + $0xf40] ss:$16 sps:$4 sm:$0xff]   ;;  %v8217_v14 = vld [vmem:[%s11440_s1 + $0xf48] ss:$16 sps:$4 sm:$0xff]  }
 0x1b0   :  { %5289 = vmatprep.subr.bf16.mxu0 %v8131_v30  ;;  %5822 = vmatprep.subr.bf16.mxu1 %v8134_v31  ;;  %v8222_v30 = vld [vmem:[%s11440_s1 + $0xf64] ss:$16 sps:$4 sm:$0xff]   ;;  %v8225_v31 = vld [vmem:[%s11440_s1 + $0xf6c] ss:$16 sps:$4 sm:$0xff]  }
 0x1b3   :  { %5290 = vmatpush1.bf16.msra.mxu0 %v8129_v25  ;;  %5823 = vmatpush1.bf16.msra.mxu1 %v8132_v32  ;;  %v8220_v25 = vld [vmem:[%s11440_s1 + $0xf60] ss:$16 sps:$4 sm:$0xff]   ;;  %v8223_v32 = vld [vmem:[%s11440_s1 + $0xf68] ss:$16 sps:$4 sm:$0xff]  }
 0x1b4   :  { %5291 = vmatprep.subr.bf16.mxu0 %v8137_v33  ;;  %5824 = vmatprep.subr.bf16.mxu1 %v8140_v26  ;;  %v8228_v33 = vld [vmem:[%s11440_s1 + $0xf84] ss:$16 sps:$4 sm:$0xff]   ;;  %v8231_v26 = vld [vmem:[%s11440_s1 + $0xf8c] ss:$16 sps:$4 sm:$0xff]  }
 0x1b7   :  { %5292 = vmatpush1.bf16.msra.mxu0 %v8135_v36  ;;  %5825 = vmatpush1.bf16.msra.mxu1 %v8138_v37  ;;  %v8226_v36 = vld [vmem:[%s11440_s1 + $0xf80] ss:$16 sps:$4 sm:$0xff]   ;;  %v8229_v37 = vld [vmem:[%s11440_s1 + $0xf88] ss:$16 sps:$4 sm:$0xff]  }
 0x1b8   :  { %5293 = vmatprep.subr.bf16.mxu0 %v8143_v21  ;;  %5826 = vmatprep.subr.bf16.mxu1 %v8146_v39  ;;  %v8234_v21 = vld [vmem:[%s11440_s1 + $0xfa4] ss:$16 sps:$4 sm:$0xff]   ;;  %v8237_v39 = vld [vmem:[%s11440_s1 + $0xfac] ss:$16 sps:$4 sm:$0xff]  }
 0x1bb   :  { %5294 = vmatpush1.bf16.msra.mxu0 %v8141_v40  ;;  %5827 = vmatpush1.bf16.msra.mxu1 %v8144_v41 }
 0x1bc   :  { %5295 = vmatprep.subr.bf16.mxu0 %v8149_v34  ;;  %5828 = vmatprep.subr.bf16.mxu1 %v8152_v42 }
 0x1bf   :  { %5296 = vmatpush1.bf16.msra.mxu0 %v8147_v44  ;;  %5829 = vmatpush1.bf16.msra.mxu1 %v8150_v45 }
 0x1c0   :  { %5306 = vmatprep.subr.bf16.mxu0 %v8156_v46  ;;  %5839 = vmatprep.subr.bf16.mxu1 %v8159_v35 }
 0x1c2   :  { %5298 = vmatmul.mubr.bf16.vlgmr.msra.gmra.mrb[0].mxu0 %v10208_v48  ;;  %5831 = vmatmul.mubr.bf16.vlgmr.msra.gmra.mrb[0].mxu1 %v10208_v48 }
 0x1c3   :  { %5307 = vmatpush1.bf16.msra.mxu0 %v8154_v50  ;;  %5840 = vmatpush1.bf16.msra.mxu1 %v8157_v51 }
 0x1c4   :  { %5308 = vmatprep.subr.bf16.mxu0 %v8162_v53  ;;  %5841 = vmatprep.subr.bf16.mxu1 %v8165_v38 }
 0x1c5   :  { %5338 = vmatprep.mubr.bf16.mxu0 %v930_v54  ;;  %5871 = vmatprep.mubr.bf16.mxu1 %v930_v54 }
 0x1c7   :  { %5309 = vmatpush1.bf16.msra.mxu0 %v8160_v55  ;;  %5842 = vmatpush1.bf16.msra.mxu1 %v8163_v56 }
 0x1c8   :  { %5310 = vmatprep.subr.bf16.mxu0 %v8168_v47  ;;  %5843 = vmatprep.subr.bf16.mxu1 %v8171_v57 }
 0x1cb   :  { %5311 = vmatpush1.bf16.msra.mxu0 %v8166_v58  ;;  %5844 = vmatpush1.bf16.msra.mxu1 %v8169_v59 }
 0x1cc   :  { %5312 = vmatprep.subr.bf16.mxu0 %v8174_v60  ;;  %5845 = vmatprep.subr.bf16.mxu1 %v8177_v61 }
 0x1cf   :  { %5313 = vmatpush1.bf16.msra.mxu0 %v8172_v62  ;;  %5846 = vmatpush1.bf16.msra.mxu1 %v8175_v63 }
 0x1d0   :  { %5314 = vmatprep.subr.bf16.mxu0 %v8180_v0  ;;  %5847 = vmatprep.subr.bf16.mxu1 %v8183_v1 }
 0x1d3   :  { %5315 = vmatpush1.bf16.msra.mxu0 %v8178_v2  ;;  %5848 = vmatpush1.bf16.msra.mxu1 %v8181_v3 }
 0x1d4   :  { %5316 = vmatprep.subr.bf16.mxu0 %v8186_v4  ;;  %5849 = vmatprep.subr.bf16.mxu1 %v8189_v5 }
 0x1d7   :  { %5317 = vmatpush1.bf16.msra.mxu0 %v8184_v6  ;;  %5850 = vmatpush1.bf16.msra.mxu1 %v8187_v7 }
 0x1d8   :  { %5318 = vmatprep.subr.bf16.mxu0 %v8192_v8  ;;  %5851 = vmatprep.subr.bf16.mxu1 %v8195_v9 }
 0x1db   :  { %5319 = vmatpush1.bf16.msra.mxu0 %v8190_v10  ;;  %5852 = vmatpush1.bf16.msra.mxu1 %v8193_v11 }
 0x1dc   :  { %5320 = vmatprep.subr.bf16.mxu0 %v8198_v12  ;;  %5853 = vmatprep.subr.bf16.mxu1 %v8201_v52 }
 0x1df   :  { %5321 = vmatpush1.bf16.msra.mxu0 %v8196_v15  ;;  %5854 = vmatpush1.bf16.msra.mxu1 %v8199_v16 }
 0x1e0   :  { %5322 = vmatprep.subr.bf16.mxu0 %v8204_v17  ;;  %5855 = vmatprep.subr.bf16.mxu1 %v8207_v18 }
 0x1e3   :  { %5323 = vmatpush1.bf16.msra.mxu0 %v8202_v19  ;;  %5856 = vmatpush1.bf16.msra.mxu1 %v8205_v20 }
 0x1e4   :  { %5324 = vmatprep.subr.bf16.mxu0 %v8210_v22  ;;  %5857 = vmatprep.subr.bf16.mxu1 %v8213_v23 }
 0x1e7   :  { %5325 = vmatpush1.bf16.msra.mxu0 %v8208_v24  ;;  %5858 = vmatpush1.bf16.msra.mxu1 %v8211_v13 }
 0x1e8   :  { %5326 = vmatprep.subr.bf16.mxu0 %v8216_v27  ;;  %5859 = vmatprep.subr.bf16.mxu1 %v8219_v28 }
 0x1eb   :  { %5327 = vmatpush1.bf16.msra.mxu0 %v8214_v29  ;;  %5860 = vmatpush1.bf16.msra.mxu1 %v8217_v14 }
 0x1ec   :  { %5328 = vmatprep.subr.bf16.mxu0 %v8222_v30  ;;  %5861 = vmatprep.subr.bf16.mxu1 %v8225_v31 }
 0x1ef   :  { %5329 = vmatpush1.bf16.msra.mxu0 %v8220_v25  ;;  %5862 = vmatpush1.bf16.msra.mxu1 %v8223_v32 }
 0x1f0   :  { %5330 = vmatprep.subr.bf16.mxu0 %v8228_v33  ;;  %5863 = vmatprep.subr.bf16.mxu1 %v8231_v26 }
 0x1f1   :  { %11 = vsyncpa [#allocation3], 0  ;;  %v8232_v40 = vld [vmem:[%s11440_s1 + $0xfa0] ss:$16 sps:$4 sm:$0xff]   ;;  %v8235_v41 = vld [vmem:[%s11440_s1 + $0xfa8] ss:$16 sps:$4 sm:$0xff]   ;;  %v928_v47 = vcombine.high %v10208_v48, %v10208_v48 }
 0x1f2   :  { %v8240_v34 = vld [vmem:[%s11440_s1 + $0xfc4] ss:$16 sps:$4 sm:$0xff]   ;;  %v8243_v42 = vld [vmem:[%s11440_s1 + $0xfcc] ss:$16 sps:$4 sm:$0xff]   ;;  %v8238_v45 = vld [vmem:[%s11440_s1 + $0xfc0] ss:$16 sps:$4 sm:$0xff]  }
 0x1f3   :  { %5331 = vmatpush1.bf16.msra.mxu0 %v8226_v36  ;;  %5864 = vmatpush1.bf16.msra.mxu1 %v8229_v37  ;;  %v10385_v44 = vld [vmem:[%s11439_s0 + $0x10] sm:$0xff]  ;;  %v8241_v46 = vld [vmem:[%s11440_s1 + $0xfc8] ss:$16 sps:$4 sm:$0xff]   ;;  %v8249_v50 = vld [vmem:[%s11440_s1 + $0xfec] ss:$16 sps:$4 sm:$0xff]  }
 0x1f4   :  { %5332 = vmatprep.subr.bf16.mxu0 %v8234_v21  ;;  %5865 = vmatprep.subr.bf16.mxu1 %v8237_v39  ;;  %v8246_v35 = vld [vmem:[%s11440_s1 + $0xfe4] ss:$16 sps:$4 sm:$0xff]   ;;  %v10401_v51 = vrot.slane %v10385_v44, %v8914_v49  ;;  %v8244_v53 = vld [vmem:[%s11440_s1 + $0xfe0] ss:$16 sps:$4 sm:$0xff]   ;;  %v8247_v38 = vld [vmem:[%s11440_s1 + $0xfe8] ss:$16 sps:$4 sm:$0xff]  }
 0x1f5   :  { %v8252_v54 = vld [vmem:[%s11440_s1 + $0x1004] ss:$16 sps:$4 sm:$0xff]   ;;  %v8255_v55 = vld [vmem:[%s11440_s1 + $0x100c] ss:$16 sps:$4 sm:$0xff]   ;;  %v8250_v57 = vld [vmem:[%s11440_s1 + $0x1000] ss:$16 sps:$4 sm:$0xff]  }
 0x1f6   :  { %v946_v56 = vcombine.high %v10401_v51, %v10401_v51  ;;  %v8253_v58 = vld [vmem:[%s11440_s1 + $0x1008] ss:$16 sps:$4 sm:$0xff]   ;;  %v8258_v59 = vld [vmem:[%s11440_s1 + $0x1024] ss:$16 sps:$4 sm:$0xff]   ;;  %v8261_v48 = vld [vmem:[%s11440_s1 + $0x102c] ss:$16 sps:$4 sm:$0xff]  }
 0x1f7   :  { %5333 = vmatpush1.bf16.msra.mxu0 %v8232_v40  ;;  %5866 = vmatpush1.bf16.msra.mxu1 %v8235_v41  ;;  %v8256_v61 = vld [vmem:[%s11440_s1 + $0x1020] ss:$16 sps:$4 sm:$0xff]   ;;  %v8259_v62 = vld [vmem:[%s11440_s1 + $0x1028] ss:$16 sps:$4 sm:$0xff]   ;;  %v8264_v63 = vld [vmem:[%s11440_s1 + $0x1044] ss:$16 sps:$4 sm:$0xff]  }
 0x1f8   :  { %5334 = vmatprep.subr.bf16.mxu0 %v8240_v34  ;;  %5867 = vmatprep.subr.bf16.mxu1 %v8243_v42  ;;  %v10432_v60 = vrot.slane %v946_v56, %v8914_v49  ;;  %v8267_v0 = vld [vmem:[%s11440_s1 + $0x104c] ss:$16 sps:$4 sm:$0xff]   ;;  %v8262_v1 = vld [vmem:[%s11440_s1 + $0x1040] ss:$16 sps:$4 sm:$0xff]   ;;  %v8265_v2 = vld [vmem:[%s11440_s1 + $0x1048] ss:$16 sps:$4 sm:$0xff]  }
 0x1f9   :  { %v8270_v3 = vld [vmem:[%s11440_s1 + $0x1064] ss:$16 sps:$4 sm:$0xff]   ;;  %v8273_v4 = vld [vmem:[%s11440_s1 + $0x106c] ss:$16 sps:$4 sm:$0xff]   ;;  %v8268_v5 = vld [vmem:[%s11440_s1 + $0x1060] ss:$16 sps:$4 sm:$0xff]  }
 0x1fa   :  { %v8271_v6 = vld [vmem:[%s11440_s1 + $0x1068] ss:$16 sps:$4 sm:$0xff]   ;;  %v8276_v7 = vld [vmem:[%s11440_s1 + $0x1084] ss:$16 sps:$4 sm:$0xff]   ;;  %v8279_v8 = vld [vmem:[%s11440_s1 + $0x108c] ss:$16 sps:$4 sm:$0xff]  }
 0x1fb   :  { %5335 = vmatpush1.bf16.msra.mxu0 %v8238_v45  ;;  %5868 = vmatpush1.bf16.msra.mxu1 %v8241_v46  ;;  %v8274_v9 = vld [vmem:[%s11440_s1 + $0x1080] ss:$16 sps:$4 sm:$0xff]   ;;  %v8277_v10 = vld [vmem:[%s11440_s1 + $0x1088] ss:$16 sps:$4 sm:$0xff]   ;;  %v8282_v11 = vld [vmem:[%s11440_s1 + $0x10a4] ss:$16 sps:$4 sm:$0xff]  }
 0x1fc   :  { %5336 = vmatprep.subr.bf16.mxu0 %v8246_v35  ;;  %5869 = vmatprep.subr.bf16.mxu1 %v8249_v50  ;;  %v8285_v12 = vld [vmem:[%s11440_s1 + $0x10ac] ss:$16 sps:$4 sm:$0xff]   ;;  %v8280_v52 = vld [vmem:[%s11440_s1 + $0x10a0] ss:$16 sps:$4 sm:$0xff]   ;;  %v8283_v15 = vld [vmem:[%s11440_s1 + $0x10a8] ss:$16 sps:$4 sm:$0xff]  }
 0x1fd   :  { %v8288_v16 = vld [vmem:[%s11440_s1 + $0x10c4] ss:$16 sps:$4 sm:$0xff]   ;;  %v8291_v17 = vld [vmem:[%s11440_s1 + $0x10cc] ss:$16 sps:$4 sm:$0xff]   ;;  %v8286_v18 = vld [vmem:[%s11440_s1 + $0x10c0] ss:$16 sps:$4 sm:$0xff]  }
 0x1fe   :  { %v8289_v19 = vld [vmem:[%s11440_s1 + $0x10c8] ss:$16 sps:$4 sm:$0xff]   ;;  %v8294_v20 = vld [vmem:[%s11440_s1 + $0x10e4] ss:$16 sps:$4 sm:$0xff]   ;;  %v8297_v22 = vld [vmem:[%s11440_s1 + $0x10ec] ss:$16 sps:$4 sm:$0xff]  }
 0x1ff   :  { %5337 = vmatpush1.bf16.msra.mxu0 %v8244_v53  ;;  %5870 = vmatpush1.bf16.msra.mxu1 %v8247_v38  ;;  %v8292_v23 = vld [vmem:[%s11440_s1 + $0x10e0] ss:$16 sps:$4 sm:$0xff]   ;;  %v8295_v24 = vld [vmem:[%s11440_s1 + $0x10e8] ss:$16 sps:$4 sm:$0xff]   ;;  %v8300_v13 = vld [vmem:[%s11440_s1 + $0x1104] ss:$16 sps:$4 sm:$0xff]  }
 0x200   :  { %5347 = vmatprep.subr.bf16.mxu0 %v8252_v54  ;;  %5880 = vmatprep.subr.bf16.mxu1 %v8255_v55  ;;  %v8303_v27 = vld [vmem:[%s11440_s1 + $0x110c] ss:$16 sps:$4 sm:$0xff]   ;;  %v8298_v28 = vld [vmem:[%s11440_s1 + $0x1100] ss:$16 sps:$4 sm:$0xff]   ;;  %v8301_v29 = vld [vmem:[%s11440_s1 + $0x1108] ss:$16 sps:$4 sm:$0xff]  }
 0x201   :  { %v8306_v14 = vld [vmem:[%s11440_s1 + $0x1124] ss:$16 sps:$4 sm:$0xff]   ;;  %v8309_v30 = vld [vmem:[%s11440_s1 + $0x112c] ss:$16 sps:$4 sm:$0xff]   ;;  %v8304_v31 = vld [vmem:[%s11440_s1 + $0x1120] ss:$16 sps:$4 sm:$0xff]  }
 0x202   :  { %5339 = vmatmul.mubr.bf16.vlgmr.msra.gmra.mrb[0].mxu0 %v928_v47  ;;  %5872 = vmatmul.mubr.bf16.vlgmr.msra.gmra.mrb[0].mxu1 %v928_v47  ;;  %v8307_v25 = vld [vmem:[%s11440_s1 + $0x1128] ss:$16 sps:$4 sm:$0xff]   ;;  %v8312_v32 = vld [vmem:[%s11440_s1 + $0x1144] ss:$16 sps:$4 sm:$0xff]   ;;  %v8315_v33 = vld [vmem:[%s11440_s1 + $0x114c] ss:$16 sps:$4 sm:$0xff]  }
 0x203   :  { %5348 = vmatpush1.bf16.msra.mxu0 %v8250_v57  ;;  %5881 = vmatpush1.bf16.msra.mxu1 %v8253_v58  ;;  %v8310_v26 = vld [vmem:[%s11440_s1 + $0x1140] ss:$16 sps:$4 sm:$0xff]   ;;  %v8313_v36 = vld [vmem:[%s11440_s1 + $0x1148] ss:$16 sps:$4 sm:$0xff]   ;;  %v8318_v37 = vld [vmem:[%s11440_s1 + $0x1164] ss:$16 sps:$4 sm:$0xff]  }
 0x204   :  { %5349 = vmatprep.subr.bf16.mxu0 %v8258_v59  ;;  %5882 = vmatprep.subr.bf16.mxu1 %v8261_v48  ;;  %v8321_v21 = vld [vmem:[%s11440_s1 + $0x116c] ss:$16 sps:$4 sm:$0xff]   ;;  %v8316_v39 = vld [vmem:[%s11440_s1 + $0x1160] ss:$16 sps:$4 sm:$0xff]   ;;  %v8319_v40 = vld [vmem:[%s11440_s1 + $0x1168] ss:$16 sps:$4 sm:$0xff]  }
 0x205   :  { %5379 = vmatprep.mubr.bf16.mxu0 %v10432_v60  ;;  %5912 = vmatprep.mubr.bf16.mxu1 %v10432_v60  ;;  %v8324_v41 = vld [vmem:[%s11440_s1 + $0x1184] ss:$16 sps:$4 sm:$0xff]   ;;  %v8327_v34 = vld [vmem:[%s11440_s1 + $0x118c] ss:$16 sps:$4 sm:$0xff]   ;;  %v8322_v42 = vld [vmem:[%s11440_s1 + $0x1180] ss:$16 sps:$4 sm:$0xff]  }
 0x206   :  { %v8325_v45 = vld [vmem:[%s11440_s1 + $0x1188] ss:$16 sps:$4 sm:$0xff]   ;;  %v8330_v46 = vld [vmem:[%s11440_s1 + $0x11a4] ss:$16 sps:$4 sm:$0xff]   ;;  %v8333_v35 = vld [vmem:[%s11440_s1 + $0x11ac] ss:$16 sps:$4 sm:$0xff]  }
 0x207   :  { %5350 = vmatpush1.bf16.msra.mxu0 %v8256_v61  ;;  %5883 = vmatpush1.bf16.msra.mxu1 %v8259_v62  ;;  %v8328_v50 = vld [vmem:[%s11440_s1 + $0x11a0] ss:$16 sps:$4 sm:$0xff]   ;;  %v8331_v53 = vld [vmem:[%s11440_s1 + $0x11a8] ss:$16 sps:$4 sm:$0xff]   ;;  %v8336_v38 = vld [vmem:[%s11440_s1 + $0x11c4] ss:$16 sps:$4 sm:$0xff]   ;;  %v10618_v62 = vrot.slane %v10401_v51, %v8914_v49 }
 0x208   :  { %5351 = vmatprep.subr.bf16.mxu0 %v8264_v63  ;;  %5884 = vmatprep.subr.bf16.mxu1 %v8267_v0  ;;  %v8339_v54 = vld [vmem:[%s11440_s1 + $0x11cc] ss:$16 sps:$4 sm:$0xff]   ;;  %v8334_v55 = vld [vmem:[%s11440_s1 + $0x11c0] ss:$16 sps:$4 sm:$0xff]   ;;  %v8337_v56 = vld [vmem:[%s11440_s1 + $0x11c8] ss:$16 sps:$4 sm:$0xff]  }
 0x209   :  { %v8342_v47 = vld [vmem:[%s11440_s1 + $0x11e4] ss:$16 sps:$4 sm:$0xff]   ;;  %v8345_v57 = vld [vmem:[%s11440_s1 + $0x11ec] ss:$16 sps:$4 sm:$0xff]   ;;  %v8340_v58 = vld [vmem:[%s11440_s1 + $0x11e0] ss:$16 sps:$4 sm:$0xff]  }
 0x20a   :  { %v8343_v59 = vld [vmem:[%s11440_s1 + $0x11e8] ss:$16 sps:$4 sm:$0xff]   ;;  %v8348_v48 = vld [vmem:[%s11440_s1 + $0x1204] ss:$16 sps:$4 sm:$0xff]   ;;  %v8351_v61 = vld [vmem:[%s11440_s1 + $0x120c] ss:$16 sps:$4 sm:$0xff]  }
 0x20b   :  { %5352 = vmatpush1.bf16.msra.mxu0 %v8262_v1  ;;  %5885 = vmatpush1.bf16.msra.mxu1 %v8265_v2  ;;  %v8346_v63 = vld [vmem:[%s11440_s1 + $0x1200] ss:$16 sps:$4 sm:$0xff]   ;;  %v8349_v0 = vld [vmem:[%s11440_s1 + $0x1208] ss:$16 sps:$4 sm:$0xff]   ;;  %v8354_v1 = vld [vmem:[%s11440_s1 + $0x1224] ss:$16 sps:$4 sm:$0xff]   ;;  %v978_v2 = vcombine.high %v10432_v60, %v10432_v60 }
 0x20c   :  { %5353 = vmatprep.subr.bf16.mxu0 %v8270_v3  ;;  %5886 = vmatprep.subr.bf16.mxu1 %v8273_v4  ;;  %v8357_v51 = vld [vmem:[%s11440_s1 + $0x122c] ss:$16 sps:$4 sm:$0xff]   ;;  %v8352_v3 = vld [vmem:[%s11440_s1 + $0x1220] ss:$16 sps:$4 sm:$0xff]   ;;  %v8355_v4 = vld [vmem:[%s11440_s1 + $0x1228] ss:$16 sps:$4 sm:$0xff]  }
 0x20d   :  { %v8360_v60 = vld [vmem:[%s11440_s1 + $0x1244] ss:$16 sps:$4 sm:$0xff]  }
 0x20f   :  { %5354 = vmatpush1.bf16.msra.mxu0 %v8268_v5  ;;  %5887 = vmatpush1.bf16.msra.mxu1 %v8271_v6  ;;  %v8363_v5 = vld [vmem:[%s11440_s1 + $0x124c] ss:$16 sps:$4 sm:$0xff]   ;;  %v8358_v6 = vld [vmem:[%s11440_s1 + $0x1240] ss:$16 sps:$4 sm:$0xff]  }
 0x210   :  { %5355 = vmatprep.subr.bf16.mxu0 %v8276_v7  ;;  %5888 = vmatprep.subr.bf16.mxu1 %v8279_v8  ;;  %v8361_v7 = vld [vmem:[%s11440_s1 + $0x1248] ss:$16 sps:$4 sm:$0xff]   ;;  %v8366_v8 = vld [vmem:[%s11440_s1 + $0x1264] ss:$16 sps:$4 sm:$0xff]  }
 0x213   :  { %5356 = vmatpush1.bf16.msra.mxu0 %v8274_v9  ;;  %5889 = vmatpush1.bf16.msra.mxu1 %v8277_v10  ;;  %v8369_v9 = vld [vmem:[%s11440_s1 + $0x126c] ss:$16 sps:$4 sm:$0xff]   ;;  %v8364_v10 = vld [vmem:[%s11440_s1 + $0x1260] ss:$16 sps:$4 sm:$0xff]  }
 0x214   :  { %5357 = vmatprep.subr.bf16.mxu0 %v8282_v11  ;;  %5890 = vmatprep.subr.bf16.mxu1 %v8285_v12  ;;  %v8367_v11 = vld [vmem:[%s11440_s1 + $0x1268] ss:$16 sps:$4 sm:$0xff]   ;;  %v8372_v12 = vld [vmem:[%s11440_s1 + $0x1284] ss:$16 sps:$4 sm:$0xff]  }
 0x217   :  { %5358 = vmatpush1.bf16.msra.mxu0 %v8280_v52  ;;  %5891 = vmatpush1.bf16.msra.mxu1 %v8283_v15  ;;  %v8375_v52 = vld [vmem:[%s11440_s1 + $0x128c] ss:$16 sps:$4 sm:$0xff]   ;;  %v8370_v15 = vld [vmem:[%s11440_s1 + $0x1280] ss:$16 sps:$4 sm:$0xff]  }
 0x218   :  { %5359 = vmatprep.subr.bf16.mxu0 %v8288_v16  ;;  %5892 = vmatprep.subr.bf16.mxu1 %v8291_v17  ;;  %v8373_v16 = vld [vmem:[%s11440_s1 + $0x1288] ss:$16 sps:$4 sm:$0xff]   ;;  %v8378_v17 = vld [vmem:[%s11440_s1 + $0x12a4] ss:$16 sps:$4 sm:$0xff]  }
 0x21b   :  { %5360 = vmatpush1.bf16.msra.mxu0 %v8286_v18  ;;  %5893 = vmatpush1.bf16.msra.mxu1 %v8289_v19  ;;  %v8381_v18 = vld [vmem:[%s11440_s1 + $0x12ac] ss:$16 sps:$4 sm:$0xff]   ;;  %v8376_v19 = vld [vmem:[%s11440_s1 + $0x12a0] ss:$16 sps:$4 sm:$0xff]  }
 0x21c   :  { %5361 = vmatprep.subr.bf16.mxu0 %v8294_v20  ;;  %5894 = vmatprep.subr.bf16.mxu1 %v8297_v22  ;;  %v8379_v20 = vld [vmem:[%s11440_s1 + $0x12a8] ss:$16 sps:$4 sm:$0xff]   ;;  %v8384_v22 = vld [vmem:[%s11440_s1 + $0x12c4] ss:$16 sps:$4 sm:$0xff]  }
 0x21f   :  { %5362 = vmatpush1.bf16.msra.mxu0 %v8292_v23  ;;  %5895 = vmatpush1.bf16.msra.mxu1 %v8295_v24  ;;  %v8387_v23 = vld [vmem:[%s11440_s1 + $0x12cc] ss:$16 sps:$4 sm:$0xff]   ;;  %v8382_v24 = vld [vmem:[%s11440_s1 + $0x12c0] ss:$16 sps:$4 sm:$0xff]  }
 0x220   :  { %5363 = vmatprep.subr.bf16.mxu0 %v8300_v13  ;;  %5896 = vmatprep.subr.bf16.mxu1 %v8303_v27  ;;  %v8385_v13 = vld [vmem:[%s11440_s1 + $0x12c8] ss:$16 sps:$4 sm:$0xff]   ;;  %v8390_v27 = vld [vmem:[%s11440_s1 + $0x12e4] ss:$16 sps:$4 sm:$0xff]  }
 0x223   :  { %5364 = vmatpush1.bf16.msra.mxu0 %v8298_v28  ;;  %5897 = vmatpush1.bf16.msra.mxu1 %v8301_v29  ;;  %v8393_v28 = vld [vmem:[%s11440_s1 + $0x12ec] ss:$16 sps:$4 sm:$0xff]   ;;  %v8388_v29 = vld [vmem:[%s11440_s1 + $0x12e0] ss:$16 sps:$4 sm:$0xff]  }
 0x224   :  { %5365 = vmatprep.subr.bf16.mxu0 %v8306_v14  ;;  %5898 = vmatprep.subr.bf16.mxu1 %v8309_v30  ;;  %v8391_v14 = vld [vmem:[%s11440_s1 + $0x12e8] ss:$16 sps:$4 sm:$0xff]   ;;  %v8396_v30 = vld [vmem:[%s11440_s1 + $0x1304] ss:$16 sps:$4 sm:$0xff]  }
 0x227   :  { %5366 = vmatpush1.bf16.msra.mxu0 %v8304_v31  ;;  %5899 = vmatpush1.bf16.msra.mxu1 %v8307_v25  ;;  %v8399_v31 = vld [vmem:[%s11440_s1 + $0x130c] ss:$16 sps:$4 sm:$0xff]   ;;  %v8394_v25 = vld [vmem:[%s11440_s1 + $0x1300] ss:$16 sps:$4 sm:$0xff]  }
 0x228   :  { %5367 = vmatprep.subr.bf16.mxu0 %v8312_v32  ;;  %5900 = vmatprep.subr.bf16.mxu1 %v8315_v33  ;;  %v8397_v32 = vld [vmem:[%s11440_s1 + $0x1308] ss:$16 sps:$4 sm:$0xff]   ;;  %v8402_v33 = vld [vmem:[%s11440_s1 + $0x1324] ss:$16 sps:$4 sm:$0xff]  }
 0x22b   :  { %5368 = vmatpush1.bf16.msra.mxu0 %v8310_v26  ;;  %5901 = vmatpush1.bf16.msra.mxu1 %v8313_v36  ;;  %v8405_v26 = vld [vmem:[%s11440_s1 + $0x132c] ss:$16 sps:$4 sm:$0xff]   ;;  %v8400_v36 = vld [vmem:[%s11440_s1 + $0x1320] ss:$16 sps:$4 sm:$0xff]  }
 0x22c   :  { %5369 = vmatprep.subr.bf16.mxu0 %v8318_v37  ;;  %5902 = vmatprep.subr.bf16.mxu1 %v8321_v21  ;;  %v8403_v37 = vld [vmem:[%s11440_s1 + $0x1328] ss:$16 sps:$4 sm:$0xff]   ;;  %v8408_v21 = vld [vmem:[%s11440_s1 + $0x1344] ss:$16 sps:$4 sm:$0xff]  }
 0x22f   :  { %5370 = vmatpush1.bf16.msra.mxu0 %v8316_v39  ;;  %5903 = vmatpush1.bf16.msra.mxu1 %v8319_v40  ;;  %v8411_v39 = vld [vmem:[%s11440_s1 + $0x134c] ss:$16 sps:$4 sm:$0xff]   ;;  %v8406_v40 = vld [vmem:[%s11440_s1 + $0x1340] ss:$16 sps:$4 sm:$0xff]  }
 0x230   :  { %5371 = vmatprep.subr.bf16.mxu0 %v8324_v41  ;;  %5904 = vmatprep.subr.bf16.mxu1 %v8327_v34  ;;  %v8409_v41 = vld [vmem:[%s11440_s1 + $0x1348] ss:$16 sps:$4 sm:$0xff]   ;;  %v8414_v34 = vld [vmem:[%s11440_s1 + $0x1364] ss:$16 sps:$4 sm:$0xff]  }
 0x233   :  { %5372 = vmatpush1.bf16.msra.mxu0 %v8322_v42  ;;  %5905 = vmatpush1.bf16.msra.mxu1 %v8325_v45  ;;  %v8417_v42 = vld [vmem:[%s11440_s1 + $0x136c] ss:$16 sps:$4 sm:$0xff]   ;;  %v8412_v45 = vld [vmem:[%s11440_s1 + $0x1360] ss:$16 sps:$4 sm:$0xff]  }
 0x234   :  { %5373 = vmatprep.subr.bf16.mxu0 %v8330_v46  ;;  %5906 = vmatprep.subr.bf16.mxu1 %v8333_v35  ;;  %v8415_v46 = vld [vmem:[%s11440_s1 + $0x1368] ss:$16 sps:$4 sm:$0xff]   ;;  %v8420_v35 = vld [vmem:[%s11440_s1 + $0x1384] ss:$16 sps:$4 sm:$0xff]  }
 0x237   :  { %5374 = vmatpush1.bf16.msra.mxu0 %v8328_v50  ;;  %5907 = vmatpush1.bf16.msra.mxu1 %v8331_v53  ;;  %v8423_v50 = vld [vmem:[%s11440_s1 + $0x138c] ss:$16 sps:$4 sm:$0xff]   ;;  %v8418_v53 = vld [vmem:[%s11440_s1 + $0x1380] ss:$16 sps:$4 sm:$0xff]  }
 0x238   :  { %5375 = vmatprep.subr.bf16.mxu0 %v8336_v38  ;;  %5908 = vmatprep.subr.bf16.mxu1 %v8339_v54  ;;  %v8421_v38 = vld [vmem:[%s11440_s1 + $0x1388] ss:$16 sps:$4 sm:$0xff]   ;;  %v8426_v54 = vld [vmem:[%s11440_s1 + $0x13a4] ss:$16 sps:$4 sm:$0xff]  }
 0x23b   :  { %5376 = vmatpush1.bf16.msra.mxu0 %v8334_v55  ;;  %5909 = vmatpush1.bf16.msra.mxu1 %v8337_v56  ;;  %v8429_v55 = vld [vmem:[%s11440_s1 + $0x13ac] ss:$16 sps:$4 sm:$0xff]   ;;  %v8424_v56 = vld [vmem:[%s11440_s1 + $0x13a0] ss:$16 sps:$4 sm:$0xff]  }
 0x23c   :  { %5377 = vmatprep.subr.bf16.mxu0 %v8342_v47  ;;  %5910 = vmatprep.subr.bf16.mxu1 %v8345_v57  ;;  %v8427_v47 = vld [vmem:[%s11440_s1 + $0x13a8] ss:$16 sps:$4 sm:$0xff]   ;;  %v8432_v57 = vld [vmem:[%s11440_s1 + $0x13c4] ss:$16 sps:$4 sm:$0xff]  }
 0x23f   :  { %5378 = vmatpush1.bf16.msra.mxu0 %v8340_v58  ;;  %5911 = vmatpush1.bf16.msra.mxu1 %v8343_v59  ;;  %v8435_v58 = vld [vmem:[%s11440_s1 + $0x13cc] ss:$16 sps:$4 sm:$0xff]   ;;  %v931_v59 = vcombine.high %v10385_v44, %v10385_v44 }
 0x240   :  { %5388 = vmatprep.subr.bf16.mxu0 %v8348_v48  ;;  %5921 = vmatprep.subr.bf16.mxu1 %v8351_v61  ;;  %v8430_v48 = vld [vmem:[%s11440_s1 + $0x13c0] ss:$16 sps:$4 sm:$0xff]   ;;  %v8433_v61 = vld [vmem:[%s11440_s1 + $0x13c8] ss:$16 sps:$4 sm:$0xff]   ;;  %v8441_v44 = vld [vmem:[%s11440_s1 + $0x13ec] ss:$16 sps:$4 sm:$0xff]  }
 0x242   :  { %5380 = vmatmul.mubr.bf16.vlgmr.msra.gmra.mrb[0].mxu0 %v10618_v62  ;;  %5913 = vmatmul.mubr.bf16.vlgmr.msra.gmra.mrb[0].mxu1 %v10618_v62 }
 0x243   :  { %5389 = vmatpush1.bf16.msra.mxu0 %v8346_v63  ;;  %5922 = vmatpush1.bf16.msra.mxu1 %v8349_v0  ;;  %v8438_v63 = vld [vmem:[%s11440_s1 + $0x13e4] ss:$16 sps:$4 sm:$0xff]   ;;  %v10807_v0 = vrot.slane %v931_v59, %v8914_v49  ;;  %v8517_v59 = vld [vmem:[%s11440_s1 + $0x1588] ss:$16 sps:$4 sm:$0xff]  }
 0x244   :  { %5390 = vmatprep.subr.bf16.mxu0 %v8354_v1  ;;  %5923 = vmatprep.subr.bf16.mxu1 %v8357_v51  ;;  %v8436_v1 = vld [vmem:[%s11440_s1 + $0x13e0] ss:$16 sps:$4 sm:$0xff]   ;;  %v8439_v51 = vld [vmem:[%s11440_s1 + $0x13e8] ss:$16 sps:$4 sm:$0xff]  }
 0x245   :  { %5420 = vmatprep.mubr.bf16.mxu0 %v978_v2  ;;  %5953 = vmatprep.mubr.bf16.mxu1 %v978_v2  ;;  %v8444_v2 = vld [vmem:[%s11440_s1 + $0x1404] ss:$16 sps:$4 sm:$0xff]  }
 0x247   :  { %5391 = vmatpush1.bf16.msra.mxu0 %v8352_v3  ;;  %5924 = vmatpush1.bf16.msra.mxu1 %v8355_v4  ;;  %v8447_v3 = vld [vmem:[%s11440_s1 + $0x140c] ss:$16 sps:$4 sm:$0xff]   ;;  %v947_v4 = vcombine.high %v10807_v0, %v10807_v0 }
 0x248   :  { %5392 = vmatprep.subr.bf16.mxu0 %v8360_v60  ;;  %5925 = vmatprep.subr.bf16.mxu1 %v8363_v5  ;;  %v976_v60 = vcombine.high %v10618_v62, %v10618_v62  ;;  %v8442_v5 = vld [vmem:[%s11440_s1 + $0x1400] ss:$16 sps:$4 sm:$0xff]   ;;  %v8453_v62 = vld [vmem:[%s11440_s1 + $0x142c] ss:$16 sps:$4 sm:$0xff]  }
 0x24b   :  { %5393 = vmatpush1.bf16.msra.mxu0 %v8358_v6  ;;  %5926 = vmatpush1.bf16.msra.mxu1 %v8361_v7  ;;  %v8445_v6 = vld [vmem:[%s11440_s1 + $0x1408] ss:$16 sps:$4 sm:$0xff]   ;;  %v8450_v7 = vld [vmem:[%s11440_s1 + $0x1424] ss:$16 sps:$4 sm:$0xff]  }
 0x24c   :  { %5394 = vmatprep.subr.bf16.mxu0 %v8366_v8  ;;  %5927 = vmatprep.subr.bf16.mxu1 %v8369_v9  ;;  %v10838_v8 = vrot.slane %v947_v4, %v8914_v49  ;;  %v8448_v9 = vld [vmem:[%s11440_s1 + $0x1420] ss:$16 sps:$4 sm:$0xff]   ;;  %v8534_v4 = vld [vmem:[%s11440_s1 + $0x15e4] ss:$16 sps:$4 sm:$0xff]  }
 0x24f   :  { %5395 = vmatpush1.bf16.msra.mxu0 %v8364_v10  ;;  %5928 = vmatpush1.bf16.msra.mxu1 %v8367_v11  ;;  %v8451_v10 = vld [vmem:[%s11440_s1 + $0x1428] ss:$16 sps:$4 sm:$0xff]   ;;  %v8456_v11 = vld [vmem:[%s11440_s1 + $0x1444] ss:$16 sps:$4 sm:$0xff]  }
 0x250   :  { %5396 = vmatprep.subr.bf16.mxu0 %v8372_v12  ;;  %5929 = vmatprep.subr.bf16.mxu1 %v8375_v52  ;;  %v8459_v12 = vld [vmem:[%s11440_s1 + $0x144c] ss:$16 sps:$4 sm:$0xff]   ;;  %v8454_v52 = vld [vmem:[%s11440_s1 + $0x1440] ss:$16 sps:$4 sm:$0xff]  }
 0x253   :  { %5397 = vmatpush1.bf16.msra.mxu0 %v8370_v15  ;;  %5930 = vmatpush1.bf16.msra.mxu1 %v8373_v16  ;;  %v8457_v15 = vld [vmem:[%s11440_s1 + $0x1448] ss:$16 sps:$4 sm:$0xff]   ;;  %v8462_v16 = vld [vmem:[%s11440_s1 + $0x1464] ss:$16 sps:$4 sm:$0xff]  }
 0x254   :  { %5398 = vmatprep.subr.bf16.mxu0 %v8378_v17  ;;  %5931 = vmatprep.subr.bf16.mxu1 %v8381_v18  ;;  %v8465_v17 = vld [vmem:[%s11440_s1 + $0x146c] ss:$16 sps:$4 sm:$0xff]   ;;  %v8460_v18 = vld [vmem:[%s11440_s1 + $0x1460] ss:$16 sps:$4 sm:$0xff]  }
 0x257   :  { %5399 = vmatpush1.bf16.msra.mxu0 %v8376_v19  ;;  %5932 = vmatpush1.bf16.msra.mxu1 %v8379_v20  ;;  %v8463_v19 = vld [vmem:[%s11440_s1 + $0x1468] ss:$16 sps:$4 sm:$0xff]   ;;  %v8468_v20 = vld [vmem:[%s11440_s1 + $0x1484] ss:$16 sps:$4 sm:$0xff]  }
 0x258   :  { %5400 = vmatprep.subr.bf16.mxu0 %v8384_v22  ;;  %5933 = vmatprep.subr.bf16.mxu1 %v8387_v23  ;;  %v8471_v22 = vld [vmem:[%s11440_s1 + $0x148c] ss:$16 sps:$4 sm:$0xff]   ;;  %v8466_v23 = vld [vmem:[%s11440_s1 + $0x1480] ss:$16 sps:$4 sm:$0xff]  }
 0x25b   :  { %5401 = vmatpush1.bf16.msra.mxu0 %v8382_v24  ;;  %5934 = vmatpush1.bf16.msra.mxu1 %v8385_v13  ;;  %v8469_v24 = vld [vmem:[%s11440_s1 + $0x1488] ss:$16 sps:$4 sm:$0xff]   ;;  %v8474_v13 = vld [vmem:[%s11440_s1 + $0x14a4] ss:$16 sps:$4 sm:$0xff]  }
 0x25c   :  { %5402 = vmatprep.subr.bf16.mxu0 %v8390_v27  ;;  %5935 = vmatprep.subr.bf16.mxu1 %v8393_v28  ;;  %v8477_v27 = vld [vmem:[%s11440_s1 + $0x14ac] ss:$16 sps:$4 sm:$0xff]   ;;  %v8472_v28 = vld [vmem:[%s11440_s1 + $0x14a0] ss:$16 sps:$4 sm:$0xff]  }
 0x25f   :  { %5403 = vmatpush1.bf16.msra.mxu0 %v8388_v29  ;;  %5936 = vmatpush1.bf16.msra.mxu1 %v8391_v14  ;;  %v8475_v29 = vld [vmem:[%s11440_s1 + $0x14a8] ss:$16 sps:$4 sm:$0xff]   ;;  %v8480_v14 = vld [vmem:[%s11440_s1 + $0x14c4] ss:$16 sps:$4 sm:$0xff]  }
 0x260   :  { %5404 = vmatprep.subr.bf16.mxu0 %v8396_v30  ;;  %5937 = vmatprep.subr.bf16.mxu1 %v8399_v31  ;;  %v8483_v30 = vld [vmem:[%s11440_s1 + $0x14cc] ss:$16 sps:$4 sm:$0xff]   ;;  %v8478_v31 = vld [vmem:[%s11440_s1 + $0x14c0] ss:$16 sps:$4 sm:$0xff]  }
 0x263   :  { %5405 = vmatpush1.bf16.msra.mxu0 %v8394_v25  ;;  %5938 = vmatpush1.bf16.msra.mxu1 %v8397_v32  ;;  %v8481_v25 = vld [vmem:[%s11440_s1 + $0x14c8] ss:$16 sps:$4 sm:$0xff]   ;;  %v8486_v32 = vld [vmem:[%s11440_s1 + $0x14e4] ss:$16 sps:$4 sm:$0xff]  }
 0x264   :  { %5406 = vmatprep.subr.bf16.mxu0 %v8402_v33  ;;  %5939 = vmatprep.subr.bf16.mxu1 %v8405_v26  ;;  %v8489_v33 = vld [vmem:[%s11440_s1 + $0x14ec] ss:$16 sps:$4 sm:$0xff]   ;;  %v8484_v26 = vld [vmem:[%s11440_s1 + $0x14e0] ss:$16 sps:$4 sm:$0xff]  }
 0x267   :  { %5407 = vmatpush1.bf16.msra.mxu0 %v8400_v36  ;;  %5940 = vmatpush1.bf16.msra.mxu1 %v8403_v37  ;;  %v8487_v36 = vld [vmem:[%s11440_s1 + $0x14e8] ss:$16 sps:$4 sm:$0xff]   ;;  %v8492_v37 = vld [vmem:[%s11440_s1 + $0x1504] ss:$16 sps:$4 sm:$0xff]  }
 0x268   :  { %5408 = vmatprep.subr.bf16.mxu0 %v8408_v21  ;;  %5941 = vmatprep.subr.bf16.mxu1 %v8411_v39  ;;  %v8495_v21 = vld [vmem:[%s11440_s1 + $0x150c] ss:$16 sps:$4 sm:$0xff]   ;;  %v8490_v39 = vld [vmem:[%s11440_s1 + $0x1500] ss:$16 sps:$4 sm:$0xff]  }
 0x26b   :  { %5409 = vmatpush1.bf16.msra.mxu0 %v8406_v40  ;;  %5942 = vmatpush1.bf16.msra.mxu1 %v8409_v41  ;;  %v8493_v40 = vld [vmem:[%s11440_s1 + $0x1508] ss:$16 sps:$4 sm:$0xff]   ;;  %v8498_v41 = vld [vmem:[%s11440_s1 + $0x1524] ss:$16 sps:$4 sm:$0xff]  }
 0x26c   :  { %5410 = vmatprep.subr.bf16.mxu0 %v8414_v34  ;;  %5943 = vmatprep.subr.bf16.mxu1 %v8417_v42  ;;  %v8501_v34 = vld [vmem:[%s11440_s1 + $0x152c] ss:$16 sps:$4 sm:$0xff]   ;;  %v8496_v42 = vld [vmem:[%s11440_s1 + $0x1520] ss:$16 sps:$4 sm:$0xff]  }
 0x26f   :  { %5411 = vmatpush1.bf16.msra.mxu0 %v8412_v45  ;;  %5944 = vmatpush1.bf16.msra.mxu1 %v8415_v46  ;;  %v8499_v45 = vld [vmem:[%s11440_s1 + $0x1528] ss:$16 sps:$4 sm:$0xff]   ;;  %v8504_v46 = vld [vmem:[%s11440_s1 + $0x1544] ss:$16 sps:$4 sm:$0xff]  }
 0x270   :  { %5412 = vmatprep.subr.bf16.mxu0 %v8420_v35  ;;  %5945 = vmatprep.subr.bf16.mxu1 %v8423_v50  ;;  %v8507_v35 = vld [vmem:[%s11440_s1 + $0x154c] ss:$16 sps:$4 sm:$0xff]   ;;  %v8502_v50 = vld [vmem:[%s11440_s1 + $0x1540] ss:$16 sps:$4 sm:$0xff]  }
 0x273   :  { %5413 = vmatpush1.bf16.msra.mxu0 %v8418_v53  ;;  %5946 = vmatpush1.bf16.msra.mxu1 %v8421_v38  ;;  %v8505_v53 = vld [vmem:[%s11440_s1 + $0x1548] ss:$16 sps:$4 sm:$0xff]   ;;  %v8510_v38 = vld [vmem:[%s11440_s1 + $0x1564] ss:$16 sps:$4 sm:$0xff]  }
 0x274   :  { %5414 = vmatprep.subr.bf16.mxu0 %v8426_v54  ;;  %5947 = vmatprep.subr.bf16.mxu1 %v8429_v55  ;;  %v8513_v54 = vld [vmem:[%s11440_s1 + $0x156c] ss:$16 sps:$4 sm:$0xff]   ;;  %v8508_v55 = vld [vmem:[%s11440_s1 + $0x1560] ss:$16 sps:$4 sm:$0xff]  }
 0x277   :  { %5415 = vmatpush1.bf16.msra.mxu0 %v8424_v56  ;;  %5948 = vmatpush1.bf16.msra.mxu1 %v8427_v47  ;;  %v8511_v56 = vld [vmem:[%s11440_s1 + $0x1568] ss:$16 sps:$4 sm:$0xff]   ;;  %v8516_v47 = vld [vmem:[%s11440_s1 + $0x1584] ss:$16 sps:$4 sm:$0xff]  }
 0x278   :  { %5416 = vmatprep.subr.bf16.mxu0 %v8432_v57  ;;  %5949 = vmatprep.subr.bf16.mxu1 %v8435_v58  ;;  %v8519_v57 = vld [vmem:[%s11440_s1 + $0x158c] ss:$16 sps:$4 sm:$0xff]   ;;  %v8514_v58 = vld [vmem:[%s11440_s1 + $0x1580] ss:$16 sps:$4 sm:$0xff]  }
 0x27b   :  { %5417 = vmatpush1.bf16.msra.mxu0 %v8430_v48  ;;  %5950 = vmatpush1.bf16.msra.mxu1 %v8433_v61  ;;  %v8522_v48 = vld [vmem:[%s11440_s1 + $0x15a4] ss:$16 sps:$4 sm:$0xff]   ;;  %v8525_v61 = vld [vmem:[%s11440_s1 + $0x15ac] ss:$16 sps:$4 sm:$0xff]  }
 0x27c   :  { %5418 = vmatprep.subr.bf16.mxu0 %v8438_v63  ;;  %5951 = vmatprep.subr.bf16.mxu1 %v8441_v44  ;;  %v8520_v63 = vld [vmem:[%s11440_s1 + $0x15a0] ss:$16 sps:$4 sm:$0xff]   ;;  %v8523_v44 = vld [vmem:[%s11440_s1 + $0x15a8] ss:$16 sps:$4 sm:$0xff]  }
 0x27f   :  { %5419 = vmatpush1.bf16.msra.mxu0 %v8436_v1  ;;  %5952 = vmatpush1.bf16.msra.mxu1 %v8439_v51  ;;  %v8528_v1 = vld [vmem:[%s11440_s1 + $0x15c4] ss:$16 sps:$4 sm:$0xff]   ;;  %v8531_v51 = vld [vmem:[%s11440_s1 + $0x15cc] ss:$16 sps:$4 sm:$0xff]  }
 0x280   :  { %5429 = vmatprep.subr.bf16.mxu0 %v8444_v2  ;;  %5962 = vmatprep.subr.bf16.mxu1 %v8447_v3  ;;  %v8526_v2 = vld [vmem:[%s11440_s1 + $0x15c0] ss:$16 sps:$4 sm:$0xff]   ;;  %v8529_v3 = vld [vmem:[%s11440_s1 + $0x15c8] ss:$16 sps:$4 sm:$0xff]  }
 0x282   :  { %5421 = vmatmul.mubr.bf16.vlgmr.msra.gmra.mrb[0].mxu0 %v976_v60  ;;  %5954 = vmatmul.mubr.bf16.vlgmr.msra.gmra.mrb[0].mxu1 %v976_v60  ;;  %v8537_v60 = vld [vmem:[%s11440_s1 + $0x15ec] ss:$16 sps:$4 sm:$0xff]  }
 0x283   :  { %5430 = vmatpush1.bf16.msra.mxu0 %v8442_v5  ;;  %5963 = vmatpush1.bf16.msra.mxu1 %v8445_v6  ;;  %v8532_v5 = vld [vmem:[%s11440_s1 + $0x15e0] ss:$16 sps:$4 sm:$0xff]   ;;  %v8535_v6 = vld [vmem:[%s11440_s1 + $0x15e8] ss:$16 sps:$4 sm:$0xff]  }
 0x284   :  { %5431 = vmatprep.subr.bf16.mxu0 %v8450_v7  ;;  %5964 = vmatprep.subr.bf16.mxu1 %v8453_v62  ;;  %v8541_v7 = vld [vmem:[%s11440_s1 + $0x1604] ss:$16 sps:$4 sm:$0xff]   ;;  %v8544_v62 = vld [vmem:[%s11440_s1 + $0x160c] ss:$16 sps:$4 sm:$0xff]  }
 0x285   :  { %5461 = vmatprep.mubr.bf16.mxu0 %v10838_v8  ;;  %5994 = vmatprep.mubr.bf16.mxu1 %v10838_v8 }
 0x287   :  { %5432 = vmatpush1.bf16.msra.mxu0 %v8448_v9  ;;  %5965 = vmatpush1.bf16.msra.mxu1 %v8451_v10  ;;  %v11024_v9 = vrot.slane %v10807_v0, %v8914_v49  ;;  %v8539_v10 = vld [vmem:[%s11440_s1 + $0x1600] ss:$16 sps:$4 sm:$0xff]   ;;  %v8550_v0 = vld [vmem:[%s11440_s1 + $0x162c] ss:$16 sps:$4 sm:$0xff]  }
 0x288   :  { %5433 = vmatprep.subr.bf16.mxu0 %v8456_v11  ;;  %5966 = vmatprep.subr.bf16.mxu1 %v8459_v12  ;;  %v8542_v11 = vld [vmem:[%s11440_s1 + $0x1608] ss:$16 sps:$4 sm:$0xff]   ;;  %v8547_v12 = vld [vmem:[%s11440_s1 + $0x1624] ss:$16 sps:$4 sm:$0xff]  }
 0x28b   :  { %5434 = vmatpush1.bf16.msra.mxu0 %v8454_v52  ;;  %5967 = vmatpush1.bf16.msra.mxu1 %v8457_v15  ;;  %v979_v52 = vcombine.high %v10838_v8, %v10838_v8  ;;  %v8545_v15 = vld [vmem:[%s11440_s1 + $0x1620] ss:$16 sps:$4 sm:$0xff]   ;;  %v8553_v8 = vld [vmem:[%s11440_s1 + $0x1644] ss:$16 sps:$4 sm:$0xff]  }
 0x28c   :  { %5435 = vmatprep.subr.bf16.mxu0 %v8462_v16  ;;  %5968 = vmatprep.subr.bf16.mxu1 %v8465_v17  ;;  %v8548_v16 = vld [vmem:[%s11440_s1 + $0x1628] ss:$16 sps:$4 sm:$0xff]   ;;  %v8556_v17 = vld [vmem:[%s11440_s1 + $0x164c] ss:$16 sps:$4 sm:$0xff]  }
 0x28f   :  { %5436 = vmatpush1.bf16.msra.mxu0 %v8460_v18  ;;  %5969 = vmatpush1.bf16.msra.mxu1 %v8463_v19  ;;  %v8551_v18 = vld [vmem:[%s11440_s1 + $0x1640] ss:$16 sps:$4 sm:$0xff]   ;;  %v8554_v19 = vld [vmem:[%s11440_s1 + $0x1648] ss:$16 sps:$4 sm:$0xff]  }
 0x290   :  { %5437 = vmatprep.subr.bf16.mxu0 %v8468_v20  ;;  %5970 = vmatprep.subr.bf16.mxu1 %v8471_v22  ;;  %v8559_v20 = vld [vmem:[%s11440_s1 + $0x1664] ss:$16 sps:$4 sm:$0xff]   ;;  %v8562_v22 = vld [vmem:[%s11440_s1 + $0x166c] ss:$16 sps:$4 sm:$0xff]  }
 0x293   :  { %5438 = vmatpush1.bf16.msra.mxu0 %v8466_v23  ;;  %5971 = vmatpush1.bf16.msra.mxu1 %v8469_v24  ;;  %v8557_v23 = vld [vmem:[%s11440_s1 + $0x1660] ss:$16 sps:$4 sm:$0xff]   ;;  %v8560_v24 = vld [vmem:[%s11440_s1 + $0x1668] ss:$16 sps:$4 sm:$0xff]  }
 0x294   :  { %5439 = vmatprep.subr.bf16.mxu0 %v8474_v13  ;;  %5972 = vmatprep.subr.bf16.mxu1 %v8477_v27  ;;  %v8565_v13 = vld [vmem:[%s11440_s1 + $0x1684] ss:$16 sps:$4 sm:$0xff]   ;;  %v8568_v27 = vld [vmem:[%s11440_s1 + $0x168c] ss:$16 sps:$4 sm:$0xff]  }
 0x297   :  { %5440 = vmatpush1.bf16.msra.mxu0 %v8472_v28  ;;  %5973 = vmatpush1.bf16.msra.mxu1 %v8475_v29  ;;  %v8563_v28 = vld [vmem:[%s11440_s1 + $0x1680] ss:$16 sps:$4 sm:$0xff]   ;;  %v8566_v29 = vld [vmem:[%s11440_s1 + $0x1688] ss:$16 sps:$4 sm:$0xff]  }
 0x298   :  { %5441 = vmatprep.subr.bf16.mxu0 %v8480_v14  ;;  %5974 = vmatprep.subr.bf16.mxu1 %v8483_v30  ;;  %v8571_v14 = vld [vmem:[%s11440_s1 + $0x16a4] ss:$16 sps:$4 sm:$0xff]   ;;  %v8574_v30 = vld [vmem:[%s11440_s1 + $0x16ac] ss:$16 sps:$4 sm:$0xff]  }
 0x29b   :  { %5442 = vmatpush1.bf16.msra.mxu0 %v8478_v31  ;;  %5975 = vmatpush1.bf16.msra.mxu1 %v8481_v25  ;;  %v8569_v31 = vld [vmem:[%s11440_s1 + $0x16a0] ss:$16 sps:$4 sm:$0xff]   ;;  %v8572_v25 = vld [vmem:[%s11440_s1 + $0x16a8] ss:$16 sps:$4 sm:$0xff]  }
 0x29c   :  { %5443 = vmatprep.subr.bf16.mxu0 %v8486_v32  ;;  %5976 = vmatprep.subr.bf16.mxu1 %v8489_v33  ;;  %v8577_v32 = vld [vmem:[%s11440_s1 + $0x16c4] ss:$16 sps:$4 sm:$0xff]   ;;  %v8580_v33 = vld [vmem:[%s11440_s1 + $0x16cc] ss:$16 sps:$4 sm:$0xff]  }
 0x29f   :  { %5444 = vmatpush1.bf16.msra.mxu0 %v8484_v26  ;;  %5977 = vmatpush1.bf16.msra.mxu1 %v8487_v36  ;;  %v8575_v26 = vld [vmem:[%s11440_s1 + $0x16c0] ss:$16 sps:$4 sm:$0xff]   ;;  %v8578_v36 = vld [vmem:[%s11440_s1 + $0x16c8] ss:$16 sps:$4 sm:$0xff]  }
 0x2a0   :  { %5445 = vmatprep.subr.bf16.mxu0 %v8492_v37  ;;  %5978 = vmatprep.subr.bf16.mxu1 %v8495_v21  ;;  %v8583_v37 = vld [vmem:[%s11440_s1 + $0x16e4] ss:$16 sps:$4 sm:$0xff]   ;;  %v8586_v21 = vld [vmem:[%s11440_s1 + $0x16ec] ss:$16 sps:$4 sm:$0xff]  }
 0x2a3   :  { %5446 = vmatpush1.bf16.msra.mxu0 %v8490_v39  ;;  %5979 = vmatpush1.bf16.msra.mxu1 %v8493_v40  ;;  %v8581_v39 = vld [vmem:[%s11440_s1 + $0x16e0] ss:$16 sps:$4 sm:$0xff]   ;;  %v8584_v40 = vld [vmem:[%s11440_s1 + $0x16e8] ss:$16 sps:$4 sm:$0xff]  }
 0x2a4   :  { %5447 = vmatprep.subr.bf16.mxu0 %v8498_v41  ;;  %5980 = vmatprep.subr.bf16.mxu1 %v8501_v34  ;;  %v8589_v41 = vld [vmem:[%s11440_s1 + $0x1704] ss:$16 sps:$4 sm:$0xff]   ;;  %v8592_v34 = vld [vmem:[%s11440_s1 + $0x170c] ss:$16 sps:$4 sm:$0xff]  }
 0x2a7   :  { %5448 = vmatpush1.bf16.msra.mxu0 %v8496_v42  ;;  %5981 = vmatpush1.bf16.msra.mxu1 %v8499_v45  ;;  %v8587_v42 = vld [vmem:[%s11440_s1 + $0x1700] ss:$16 sps:$4 sm:$0xff]   ;;  %v8590_v45 = vld [vmem:[%s11440_s1 + $0x1708] ss:$16 sps:$4 sm:$0xff]  }
 0x2a8   :  { %5449 = vmatprep.subr.bf16.mxu0 %v8504_v46  ;;  %5982 = vmatprep.subr.bf16.mxu1 %v8507_v35  ;;  %v8595_v46 = vld [vmem:[%s11440_s1 + $0x1724] ss:$16 sps:$4 sm:$0xff]   ;;  %v8598_v35 = vld [vmem:[%s11440_s1 + $0x172c] ss:$16 sps:$4 sm:$0xff]  }
 0x2ab   :  { %5450 = vmatpush1.bf16.msra.mxu0 %v8502_v50  ;;  %5983 = vmatpush1.bf16.msra.mxu1 %v8505_v53  ;;  %v8593_v50 = vld [vmem:[%s11440_s1 + $0x1720] ss:$16 sps:$4 sm:$0xff]   ;;  %v8596_v53 = vld [vmem:[%s11440_s1 + $0x1728] ss:$16 sps:$4 sm:$0xff]  }
 0x2ac   :  { %5451 = vmatprep.subr.bf16.mxu0 %v8510_v38  ;;  %5984 = vmatprep.subr.bf16.mxu1 %v8513_v54  ;;  %v8601_v38 = vld [vmem:[%s11440_s1 + $0x1744] ss:$16 sps:$4 sm:$0xff]   ;;  %v8604_v54 = vld [vmem:[%s11440_s1 + $0x174c] ss:$16 sps:$4 sm:$0xff]  }
 0x2af   :  { %5452 = vmatpush1.bf16.msra.mxu0 %v8508_v55  ;;  %5985 = vmatpush1.bf16.msra.mxu1 %v8511_v56  ;;  %v8599_v55 = vld [vmem:[%s11440_s1 + $0x1740] ss:$16 sps:$4 sm:$0xff]   ;;  %v8602_v56 = vld [vmem:[%s11440_s1 + $0x1748] ss:$16 sps:$4 sm:$0xff]  }
 0x2b0   :  { %5453 = vmatprep.subr.bf16.mxu0 %v8516_v47  ;;  %5986 = vmatprep.subr.bf16.mxu1 %v8519_v57  ;;  %v8607_v47 = vld [vmem:[%s11440_s1 + $0x1764] ss:$16 sps:$4 sm:$0xff]   ;;  %v8610_v57 = vld [vmem:[%s11440_s1 + $0x176c] ss:$16 sps:$4 sm:$0xff]  }
 0x2b3   :  { %5454 = vmatpush1.bf16.msra.mxu0 %v8514_v58  ;;  %5987 = vmatpush1.bf16.msra.mxu1 %v8517_v59  ;;  %v8605_v58 = vld [vmem:[%s11440_s1 + $0x1760] ss:$16 sps:$4 sm:$0xff]   ;;  %v8608_v59 = vld [vmem:[%s11440_s1 + $0x1768] ss:$16 sps:$4 sm:$0xff]  }
 0x2b4   :  { %5455 = vmatprep.subr.bf16.mxu0 %v8522_v48  ;;  %5988 = vmatprep.subr.bf16.mxu1 %v8525_v61  ;;  %v8613_v48 = vld [vmem:[%s11440_s1 + $0x1784] ss:$16 sps:$4 sm:$0xff]   ;;  %v8616_v61 = vld [vmem:[%s11440_s1 + $0x178c] ss:$16 sps:$4 sm:$0xff]  }
 0x2b7   :  { %5456 = vmatpush1.bf16.msra.mxu0 %v8520_v63  ;;  %5989 = vmatpush1.bf16.msra.mxu1 %v8523_v44  ;;  %v8611_v63 = vld [vmem:[%s11440_s1 + $0x1780] ss:$16 sps:$4 sm:$0xff]   ;;  %v8614_v44 = vld [vmem:[%s11440_s1 + $0x1788] ss:$16 sps:$4 sm:$0xff]  }
 0x2b8   :  { %5457 = vmatprep.subr.bf16.mxu0 %v8528_v1  ;;  %5990 = vmatprep.subr.bf16.mxu1 %v8531_v51  ;;  %v8619_v1 = vld [vmem:[%s11440_s1 + $0x17a4] ss:$16 sps:$4 sm:$0xff]   ;;  %v8622_v51 = vld [vmem:[%s11440_s1 + $0x17ac] ss:$16 sps:$4 sm:$0xff]  }
 0x2bb   :  { %5458 = vmatpush1.bf16.msra.mxu0 %v8526_v2  ;;  %5991 = vmatpush1.bf16.msra.mxu1 %v8529_v3  ;;  %v8617_v2 = vld [vmem:[%s11440_s1 + $0x17a0] ss:$16 sps:$4 sm:$0xff]   ;;  %v8620_v3 = vld [vmem:[%s11440_s1 + $0x17a8] ss:$16 sps:$4 sm:$0xff]  }
 0x2bc   :  { %5459 = vmatprep.subr.bf16.mxu0 %v8534_v4  ;;  %5992 = vmatprep.subr.bf16.mxu1 %v8537_v60  ;;  %v8625_v4 = vld [vmem:[%s11440_s1 + $0x17c4] ss:$16 sps:$4 sm:$0xff]   ;;  %v8628_v60 = vld [vmem:[%s11440_s1 + $0x17cc] ss:$16 sps:$4 sm:$0xff]  }
 0x2bf   :  { %5460 = vmatpush1.bf16.msra.mxu0 %v8532_v5  ;;  %5993 = vmatpush1.bf16.msra.mxu1 %v8535_v6  ;;  %v8623_v5 = vld [vmem:[%s11440_s1 + $0x17c0] ss:$16 sps:$4 sm:$0xff]   ;;  %v8626_v6 = vld [vmem:[%s11440_s1 + $0x17c8] ss:$16 sps:$4 sm:$0xff]  }
 0x2c0   :  { %5470 = vmatprep.subr.bf16.mxu0 %v8541_v7  ;;  %6003 = vmatprep.subr.bf16.mxu1 %v8544_v62  ;;  %v8631_v7 = vld [vmem:[%s11440_s1 + $0x17e4] ss:$16 sps:$4 sm:$0xff]   ;;  %v8634_v62 = vld [vmem:[%s11440_s1 + $0x17ec] ss:$16 sps:$4 sm:$0xff]  }
 0x2c2   :  { %5462 = vmatmul.mubr.bf16.vlgmr.msra.gmra.mrb[0].mxu0 %v11024_v9  ;;  %5995 = vmatmul.mubr.bf16.vlgmr.msra.gmra.mrb[0].mxu1 %v11024_v9 }
 0x2c3   :  { %5471 = vmatpush1.bf16.msra.mxu0 %v8539_v10  ;;  %6004 = vmatpush1.bf16.msra.mxu1 %v8542_v11  ;;  %v8629_v10 = vld [vmem:[%s11440_s1 + $0x17e0] ss:$16 sps:$4 sm:$0xff]   ;;  %v8632_v11 = vld [vmem:[%s11440_s1 + $0x17e8] ss:$16 sps:$4 sm:$0xff]  }
 0x2c4   :  { %5472 = vmatprep.subr.bf16.mxu0 %v8547_v12  ;;  %6005 = vmatprep.subr.bf16.mxu1 %v8550_v0  ;;  %v8637_v12 = vld [vmem:[%s11440_s1 + $0x1804] ss:$16 sps:$4 sm:$0xff]   ;;  %v8640_v0 = vld [vmem:[%s11440_s1 + $0x180c] ss:$16 sps:$4 sm:$0xff]  }
 0x2c5   :  { %5502 = vmatprep.mubr.bf16.mxu0 %v979_v52  ;;  %6035 = vmatprep.mubr.bf16.mxu1 %v979_v52  ;;  %v977_v52 = vcombine.high %v11024_v9, %v11024_v9  ;;  %v8646_v9 = vld [vmem:[%s11440_s1 + $0x182c] ss:$16 sps:$4 sm:$0xff]  }
 0x2c7   :  { %5473 = vmatpush1.bf16.msra.mxu0 %v8545_v15  ;;  %6006 = vmatpush1.bf16.msra.mxu1 %v8548_v16  ;;  %v8635_v15 = vld [vmem:[%s11440_s1 + $0x1800] ss:$16 sps:$4 sm:$0xff]   ;;  %v8638_v16 = vld [vmem:[%s11440_s1 + $0x1808] ss:$16 sps:$4 sm:$0xff]  }
 0x2c8   :  { %5474 = vmatprep.subr.bf16.mxu0 %v8553_v8  ;;  %6007 = vmatprep.subr.bf16.mxu1 %v8556_v17  ;;  %v8643_v8 = vld [vmem:[%s11440_s1 + $0x1824] ss:$16 sps:$4 sm:$0xff]   ;;  %v8641_v17 = vld [vmem:[%s11440_s1 + $0x1820] ss:$16 sps:$4 sm:$0xff]  }
 0x2cb   :  { %5475 = vmatpush1.bf16.msra.mxu0 %v8551_v18  ;;  %6008 = vmatpush1.bf16.msra.mxu1 %v8554_v19  ;;  %v8644_v18 = vld [vmem:[%s11440_s1 + $0x1828] ss:$16 sps:$4 sm:$0xff]   ;;  %v8649_v19 = vld [vmem:[%s11440_s1 + $0x1844] ss:$16 sps:$4 sm:$0xff]  }
 0x2cc   :  { %5476 = vmatprep.subr.bf16.mxu0 %v8559_v20  ;;  %6009 = vmatprep.subr.bf16.mxu1 %v8562_v22  ;;  %v8652_v20 = vld [vmem:[%s11440_s1 + $0x184c] ss:$16 sps:$4 sm:$0xff]   ;;  %v8742_v22 = vmov 0  }
 0x2cf   :  { %5477 = vmatpush1.bf16.msra.mxu0 %v8557_v23  ;;  %6010 = vmatpush1.bf16.msra.mxu1 %v8560_v24  ;;  %v8647_v23 = vld [vmem:[%s11440_s1 + $0x1840] ss:$16 sps:$4 sm:$0xff]   ;;  %v8650_v24 = vld [vmem:[%s11440_s1 + $0x1848] ss:$16 sps:$4 sm:$0xff]  }
 0x2d0   :  { %5478 = vmatprep.subr.bf16.mxu0 %v8565_v13  ;;  %6011 = vmatprep.subr.bf16.mxu1 %v8568_v27  ;;  %v8655_v13 = vld [vmem:[%s11440_s1 + $0x1864] ss:$16 sps:$4 sm:$0xff]   ;;  %v8658_v27 = vld [vmem:[%s11440_s1 + $0x186c] ss:$16 sps:$4 sm:$0xff]  }
 0x2d3   :  { %5479 = vmatpush1.bf16.msra.mxu0 %v8563_v28  ;;  %6012 = vmatpush1.bf16.msra.mxu1 %v8566_v29  ;;  %v8653_v28 = vld [vmem:[%s11440_s1 + $0x1860] ss:$16 sps:$4 sm:$0xff]   ;;  %v8656_v29 = vld [vmem:[%s11440_s1 + $0x1868] ss:$16 sps:$4 sm:$0xff]  }
 0x2d4   :  { %5480 = vmatprep.subr.bf16.mxu0 %v8571_v14  ;;  %6013 = vmatprep.subr.bf16.mxu1 %v8574_v30  ;;  %v8661_v14 = vld [vmem:[%s11440_s1 + $0x1884] ss:$16 sps:$4 sm:$0xff]   ;;  %v8664_v30 = vld [vmem:[%s11440_s1 + $0x188c] ss:$16 sps:$4 sm:$0xff]  }
 0x2d7   :  { %5481 = vmatpush1.bf16.msra.mxu0 %v8569_v31  ;;  %6014 = vmatpush1.bf16.msra.mxu1 %v8572_v25  ;;  %v8659_v31 = vld [vmem:[%s11440_s1 + $0x1880] ss:$16 sps:$4 sm:$0xff]   ;;  %v8662_v25 = vld [vmem:[%s11440_s1 + $0x1888] ss:$16 sps:$4 sm:$0xff]  }
 0x2d8   :  { %5482 = vmatprep.subr.bf16.mxu0 %v8577_v32  ;;  %6015 = vmatprep.subr.bf16.mxu1 %v8580_v33  ;;  %v8667_v32 = vld [vmem:[%s11440_s1 + $0x18a4] ss:$16 sps:$4 sm:$0xff]   ;;  %v8670_v33 = vld [vmem:[%s11440_s1 + $0x18ac] ss:$16 sps:$4 sm:$0xff]  }
 0x2db   :  { %5483 = vmatpush1.bf16.msra.mxu0 %v8575_v26  ;;  %6016 = vmatpush1.bf16.msra.mxu1 %v8578_v36  ;;  %v8665_v26 = vld [vmem:[%s11440_s1 + $0x18a0] ss:$16 sps:$4 sm:$0xff]   ;;  %v8668_v36 = vld [vmem:[%s11440_s1 + $0x18a8] ss:$16 sps:$4 sm:$0xff]  }
 0x2dc   :  { %5484 = vmatprep.subr.bf16.mxu0 %v8583_v37  ;;  %6017 = vmatprep.subr.bf16.mxu1 %v8586_v21  ;;  %v8673_v37 = vld [vmem:[%s11440_s1 + $0x18c4] ss:$16 sps:$4 sm:$0xff]   ;;  %v8676_v21 = vld [vmem:[%s11440_s1 + $0x18cc] ss:$16 sps:$4 sm:$0xff]  }
 0x2df   :  { %5485 = vmatpush1.bf16.msra.mxu0 %v8581_v39  ;;  %6018 = vmatpush1.bf16.msra.mxu1 %v8584_v40  ;;  %v8671_v39 = vld [vmem:[%s11440_s1 + $0x18c0] ss:$16 sps:$4 sm:$0xff]   ;;  %v8674_v40 = vld [vmem:[%s11440_s1 + $0x18c8] ss:$16 sps:$4 sm:$0xff]  }
 0x2e0   :  { %5486 = vmatprep.subr.bf16.mxu0 %v8589_v41  ;;  %6019 = vmatprep.subr.bf16.mxu1 %v8592_v34  ;;  %v8679_v41 = vld [vmem:[%s11440_s1 + $0x18e4] ss:$16 sps:$4 sm:$0xff]   ;;  %v8682_v34 = vld [vmem:[%s11440_s1 + $0x18ec] ss:$16 sps:$4 sm:$0xff]  }
 0x2e3   :  { %5487 = vmatpush1.bf16.msra.mxu0 %v8587_v42  ;;  %6020 = vmatpush1.bf16.msra.mxu1 %v8590_v45  ;;  %v8677_v42 = vld [vmem:[%s11440_s1 + $0x18e0] ss:$16 sps:$4 sm:$0xff]   ;;  %v8680_v45 = vld [vmem:[%s11440_s1 + $0x18e8] ss:$16 sps:$4 sm:$0xff]  }
 0x2e4   :  { %5488 = vmatprep.subr.bf16.mxu0 %v8595_v46  ;;  %6021 = vmatprep.subr.bf16.mxu1 %v8598_v35  ;;  %v6503_v46 = vld.sshfl [vmem:[%s11439_s0 + $0x18] sm:$0x1 pattern:$0x75316420]  ;;  %v8683_v35 = vld [vmem:[%s11443_s4 + $0x40] sm:$0xff]  }
 0x2e7   :  { %5489 = vmatpush1.bf16.msra.mxu0 %v8593_v50  ;;  %6022 = vmatpush1.bf16.msra.mxu1 %v8596_v53  ;;  %v8684_v50 = vld [vmem:[%s11443_s4 + $0xc0] sm:$0xff]   ;;  %v993_v53 = vrot.slane %v6503_v46, %v8914_v49  ;;  %v8688_v49 = vld [vmem:[%s11443_s4 + $0xc8] sm:$0xff]  }
 0x2e8   :  { %5490 = vmatprep.subr.bf16.mxu0 %v8601_v38  ;;  %6023 = vmatprep.subr.bf16.mxu1 %v8604_v54  ;;  %v8685_v38 = vld [vmem:[%s11443_s4] sm:$0xff]  }
 0x2e9   :  { %v8686_v54 = vld [vmem:[%s11443_s4 + $0x80] sm:$0xff]  }
 0x2eb   :  { %5491 = vmatpush1.bf16.msra.mxu0 %v8599_v55  ;;  %6024 = vmatpush1.bf16.msra.mxu1 %v8602_v56  ;;  %v8687_v55 = vld [vmem:[%s11443_s4 + $0x48] sm:$0xff]  }
 0x2ec   :  { %5492 = vmatprep.subr.bf16.mxu0 %v8607_v47  ;;  %6025 = vmatprep.subr.bf16.mxu1 %v8610_v57  ;;  %v8689_v56 = vld [vmem:[%s11443_s4 + $0x8] sm:$0xff]   ;;  %v8691_v57 = vld [vmem:[%s11443_s4 + $0x50] sm:$0xff]  }
 0x2ed   :  { %v8690_v47 = vld [vmem:[%s11443_s4 + $0x88] sm:$0xff]  }
 0x2ef   :  { %5493 = vmatpush1.bf16.msra.mxu0 %v8605_v58  ;;  %6026 = vmatpush1.bf16.msra.mxu1 %v8608_v59  ;;  %v8692_v58 = vld [vmem:[%s11443_s4 + $0xd0] sm:$0xff]  }
 0x2f0   :  { %5494 = vmatprep.subr.bf16.mxu0 %v8613_v48  ;;  %6027 = vmatprep.subr.bf16.mxu1 %v8616_v61  ;;  %v8693_v59 = vld [vmem:[%s11443_s4 + $0x10] sm:$0xff]   ;;  %v8695_v61 = vld [vmem:[%s11443_s4 + $0x58] sm:$0xff]  }
 0x2f1   :  { %v8694_v48 = vld [vmem:[%s11443_s4 + $0x90] sm:$0xff]  }
 0x2f3   :  { %5495 = vmatpush1.bf16.msra.mxu0 %v8611_v63  ;;  %6028 = vmatpush1.bf16.msra.mxu1 %v8614_v44  ;;  %v8696_v63 = vld [vmem:[%s11443_s4 + $0xd8] sm:$0xff]  }
 0x2f4   :  { %5496 = vmatprep.subr.bf16.mxu0 %v8619_v1  ;;  %6029 = vmatprep.subr.bf16.mxu1 %v8622_v51  ;;  %v8697_v44 = vld [vmem:[%s11443_s4 + $0x18] sm:$0xff]   ;;  %v8699_v51 = vld [vmem:[%s11443_s4 + $0x60] sm:$0xff]  }
 0x2f5   :  { %v8698_v1 = vld [vmem:[%s11443_s4 + $0x98] sm:$0xff]  }
 0x2f7   :  { %5497 = vmatpush1.bf16.msra.mxu0 %v8617_v2  ;;  %6030 = vmatpush1.bf16.msra.mxu1 %v8620_v3  ;;  %v8700_v2 = vld [vmem:[%s11443_s4 + $0xe0] sm:$0xff]  }
 0x2f8   :  { %5498 = vmatprep.subr.bf16.mxu0 %v8625_v4  ;;  %6031 = vmatprep.subr.bf16.mxu1 %v8628_v60  ;;  %v8701_v3 = vld [vmem:[%s11443_s4 + $0x20] sm:$0xff]   ;;  %v8703_v60 = vld [vmem:[%s11443_s4 + $0x68] sm:$0xff]  }
 0x2f9   :  { %v8702_v4 = vld [vmem:[%s11443_s4 + $0xa0] sm:$0xff]  }
 0x2fb   :  { %5499 = vmatpush1.bf16.msra.mxu0 %v8623_v5  ;;  %6032 = vmatpush1.bf16.msra.mxu1 %v8626_v6  ;;  %v8704_v5 = vld [vmem:[%s11443_s4 + $0xe8] sm:$0xff]  }
 0x2fc   :  { %5500 = vmatprep.subr.bf16.mxu0 %v8631_v7  ;;  %6033 = vmatprep.subr.bf16.mxu1 %v8634_v62  ;;  %v8705_v6 = vld [vmem:[%s11443_s4 + $0x28] sm:$0xff]   ;;  %v8707_v62 = vld [vmem:[%s11443_s4 + $0x70] sm:$0xff]  }
 0x2fd   :  { %v8706_v7 = vld [vmem:[%s11443_s4 + $0xa8] sm:$0xff]  }
 0x2ff   :  { %5501 = vmatpush1.bf16.msra.mxu0 %v8629_v10  ;;  %6034 = vmatpush1.bf16.msra.mxu1 %v8632_v11  ;;  %v8708_v10 = vld [vmem:[%s11443_s4 + $0xf0] sm:$0xff]  }
 0x300   :  { %5511 = vmatprep.subr.bf16.mxu0 %v8637_v12  ;;  %6044 = vmatprep.subr.bf16.mxu1 %v8640_v0  ;;  %v8709_v11 = vld [vmem:[%s11443_s4 + $0x30] sm:$0xff]   ;;  %v8711_v0 = vld [vmem:[%s11443_s4 + $0x78] sm:$0xff]  }
 0x301   :  { %v8710_v12 = vld [vmem:[%s11443_s4 + $0xb0] sm:$0xff]  }
 0x302   :  { %5503 = vmatmul.mubr.bf16.vlgmr.msra.gmra.mrb[0].mxu0 %v977_v52  ;;  %6036 = vmatmul.mubr.bf16.vlgmr.msra.gmra.mrb[0].mxu1 %v977_v52  ;;  %v8712_v52 = vld [vmem:[%s11443_s4 + $0xf8] sm:$0xff]  }
 0x303   :  { %5512 = vmatpush1.bf16.msra.mxu0 %v8635_v15  ;;  %6045 = vmatpush1.bf16.msra.mxu1 %v8638_v16  ;;  %v8713_v15 = vld [vmem:[%s11443_s4 + $0x38] sm:$0xff]  }
 0x304   :  { %5513 = vmatprep.subr.bf16.mxu0 %v8643_v8  ;;  %6046 = vmatprep.subr.bf16.mxu1 %v8646_v9  ;;  %v8714_v16 = vld [vmem:[%s11443_s4 + $0xb8] sm:$0xff]   ;;  %v6089_v8 = vsub.s32 0, %v8896_v43  ;;  %v6097_v9 = vsub.s32 2, %v8896_v43  ;;  %s8743_s4 = smov [#allocation2]  }
 0x305   :  { %5543 = vmatprep.mubr.bf16.mxu0 %v8742_v22  ;;  %6076 = vmatprep.mubr.bf16.mxu1 %v8742_v22  ;;  %s6495_s13 = sshll.u32 %s8743_s4, 4  ;;  %s6496_s13 = int_to_ptr.vmem [resolvable:$true] %s6495_s13 }
 0x306   :  { %s8717_s14 = scalar_lea.vmem %s6496_s13, 32  ;;  %p8722_p1 = scmp.lt.s32.totalorder %s6496_s13, %s6496_s13 }
 0x307   :  { %5514 = vmatpush1.bf16.msra.mxu0 %v8641_v17  ;;  %6047 = vmatpush1.bf16.msra.mxu1 %v8644_v18  ;;  %v6085_v17 = vld [vmem:[%s11441_s2] sm:$0xf]  ;;  %v6093_v18 = vsub.s32 1, %v8896_v43  ;;  %p8718_p0 = scmp.ne.s32.totalorder %s6496_s13, %s8717_s14  ;;  %p8723_p2 = scmp.lt.s32.totalorder %s8717_s14, %s8717_s14 }
 0x308   :  { %5515 = vmatprep.subr.bf16.mxu0 %v8649_v19  ;;  %6048 = vmatprep.subr.bf16.mxu1 %v8652_v20  ;;  %v6101_v19 = vsub.s32 3, %v8896_v43  ;;  %v6111_v20 = vld [vmem:[%s11442_s3] sm:$0xf]  ;;  %v6090_v22 = vrot.slane %v6085_v17, %v6089_v8 }
 0x309   :  { %p8724_p3 = por %p8723_p2, %p8722_p1 }
 0x30b   :  { %5516 = vmatpush1.bf16.msra.mxu0 %v8647_v23  ;;  %6049 = vmatpush1.bf16.msra.mxu1 %v8650_v24  ;;  %v6098_v23 = vrot.slane %v6085_v17, %v6097_v9  ;;  %v6094_v24 = vrot.slane %v6085_v17, %v6093_v18  ;;  %p8725_p4 = pnand %p8724_p3, %p8718_p0 }
 0x30c   :  { %5517 = vmatprep.subr.bf16.mxu0 %v8655_v13  ;;  %6050 = vmatprep.subr.bf16.mxu1 %v8658_v27  ;;  %v6102_v13 = vrot.slane %v6085_v17, %v6101_v19  ;;  %v6116_v27 = vrot.slane %v6111_v20, %v6089_v8 }
 0x30f   :  { %5518 = vmatpush1.bf16.msra.mxu0 %v8653_v28  ;;  %6051 = vmatpush1.bf16.msra.mxu1 %v8656_v29  ;;  %v6124_v28 = vrot.slane %v6111_v20, %v6097_v9 }
 0x310   :  { %5519 = vmatprep.subr.bf16.mxu0 %v8661_v14  ;;  %6052 = vmatprep.subr.bf16.mxu1 %v8664_v30  ;;  %v6120_v30 = vrot.slane %v6111_v20, %v6093_v18 }
 0x313   :  { %5520 = vmatpush1.bf16.msra.mxu0 %v8659_v31  ;;  %6053 = vmatpush1.bf16.msra.mxu1 %v8662_v25  ;;  %v6128_v31 = vrot.slane %v6111_v20, %v6101_v19 }
 0x314   :  { %5521 = vmatprep.subr.bf16.mxu0 %v8667_v32  ;;  %6054 = vmatprep.subr.bf16.mxu1 %v8670_v33 }
 0x317   :  { %5522 = vmatpush1.bf16.msra.mxu0 %v8665_v26  ;;  %6055 = vmatpush1.bf16.msra.mxu1 %v8668_v36 }
 0x318   :  { %5523 = vmatprep.subr.bf16.mxu0 %v8673_v37  ;;  %6056 = vmatprep.subr.bf16.mxu1 %v8676_v21 }
 0x31b   :  { %5524 = vmatpush1.bf16.msra.mxu0 %v8671_v39  ;;  %6057 = vmatpush1.bf16.msra.mxu1 %v8674_v40 }
 0x31c   :  { %5525 = vmatprep.subr.bf16.mxu0 %v8679_v41  ;;  %6058 = vmatprep.subr.bf16.mxu1 %v8682_v34 }
 0x31f   :  { %5526 = vmatpush1.bf16.msra.mxu0 %v8677_v42  ;;  %6059 = vmatpush1.bf16.msra.mxu1 %v8680_v45 }
 0x320   :  { %7337 = vmatprep.subr.bf16.mxu0 %v8683_v35  ;;  %7359 = vmatprep.subr.bf16.mxu1 %v8684_v50 }
 0x322   :  { %5544 = vmatmul.mubr.bf16.vlgmr.msra.gmra.mrb[0].mxu0 %v993_v53  ;;  %6077 = vmatmul.mubr.bf16.vlgmr.msra.gmra.mrb[0].mxu1 %v993_v53 }
 0x323   :  { %7338 = vmatpush3.bf16.msra.mxu0 %v8685_v38  ;;  %7360 = vmatpush3.bf16.msra.mxu1 %v8686_v54 }
 0x324   :  { %7339 = vmatprep.subr.bf16.mxu0 %v8687_v55  ;;  %7361 = vmatprep.subr.bf16.mxu1 %v8688_v49 }
 0x327   :  { %7340 = vmatpush3.bf16.msra.mxu0 %v8689_v56  ;;  %7362 = vmatpush3.bf16.msra.mxu1 %v8690_v47 }
 0x328   :  { %7341 = vmatprep.subr.bf16.mxu0 %v8691_v57  ;;  %7363 = vmatprep.subr.bf16.mxu1 %v8692_v58  ;;  %v7304_v57 = vld [vmem:[%s11444_s5] ss:$0 sm:$0xff] }
 0x32b   :  { %7342 = vmatpush3.bf16.msra.mxu0 %v8693_v59  ;;  %7364 = vmatpush3.bf16.msra.mxu1 %v8694_v48 }
 0x32c   :  { %7343 = vmatprep.subr.bf16.mxu0 %v8695_v61  ;;  %7365 = vmatprep.subr.bf16.mxu1 %v8696_v63 }
 0x32f   :  { %7344 = vmatpush3.bf16.msra.mxu0 %v8697_v44  ;;  %7366 = vmatpush3.bf16.msra.mxu1 %v8698_v1 }
 0x330   :  { %7345 = vmatprep.subr.bf16.mxu0 %v8699_v51  ;;  %7367 = vmatprep.subr.bf16.mxu1 %v8700_v2 }
 0x333   :  { %7346 = vmatpush3.bf16.msra.mxu0 %v8701_v3  ;;  %7368 = vmatpush3.bf16.msra.mxu1 %v8702_v4 }
 0x334   :  { %7347 = vmatprep.subr.bf16.mxu0 %v8703_v60  ;;  %7369 = vmatprep.subr.bf16.mxu1 %v8704_v5 }
 0x337   :  { %7348 = vmatpush3.bf16.msra.mxu0 %v8705_v6  ;;  %7370 = vmatpush3.bf16.msra.mxu1 %v8706_v7 }
 0x338   :  { %7349 = vmatprep.subr.bf16.mxu0 %v8707_v62  ;;  %7371 = vmatprep.subr.bf16.mxu1 %v8708_v10 }
 0x33b   :  { %7350 = vmatpush3.bf16.msra.mxu0 %v8709_v11  ;;  %7372 = vmatpush3.bf16.msra.mxu1 %v8710_v12 }
 0x33c   :  { %7351 = vmatprep.subr.bf16.mxu0 %v8711_v0  ;;  %7373 = vmatprep.subr.bf16.mxu1 %v8712_v52 }
 0x33f   :  { %7352 = vmatpush3.bf16.msra.mxu0 %v8713_v15  ;;  %7374 = vmatpush3.bf16.msra.mxu1 %v8714_v16 }
 0x3f5   :  { %v5545_v29 = vpop.f32.mrb[0].mxu0  ;;  %v6078_v14 = vpop.f32.mrb[0].mxu1 }
 0x3f6   :  { %v6107_v25 = vmul.f32 %v6090_v22, %v5545_v29  ;;  %v6109_v32 = vmul.f32 %v6098_v23, %v6078_v14  ;;  %v5547_v33 = vpop.f32.mrb[1].mxu0  ;;  %v6080_v26 = vpop.f32.mrb[1].mxu1 }
 0x3f7   :  { %v6108_v36 = vmul.f32 %v6094_v24, %v5547_v33  ;;  %v6110_v43 = vmul.f32 %v6102_v13, %v6080_v26  ;;  %v5549_v37 = vpop.f32.mrb[2].mxu0  ;;  %v6082_v21 = vpop.f32.mrb[2].mxu1 }
 0x3f8   :  { %v6133_v39 = vadd.f32 %v6116_v27, %v6107_v25  ;;  %v6135_v40 = vadd.f32 %v6124_v28, %v6109_v32  ;;  %v5550_v41 = vpop.f32.mrb[3].mxu0  ;;  %v6083_v34 = vpop.f32.mrb[3].mxu1 }
 0x3f9   :  { %v6134_v42 = vadd.f32 %v6120_v30, %v6108_v36  ;;  %v6136_v45 = vadd.f32 %v6128_v31, %v6110_v43 }
 0x3fa   :  { %v6137_v46 = vmax.f32 %v6133_v39, 0.0  ;;  %v6139_v35 = vmax.f32 %v6135_v40, 0.0 }
 0x3fb   :  { %v6138_v50 = vmax.f32 %v6134_v42, 0.0  ;;  %v6140_v53 = vmax.f32 %v6136_v45, 0.0 }
 0x3fc   :  { %v6141_v55 = vpack.c.bf16 %v6137_v46, %v6137_v46  ;;  %v6143_v49 = vpack.c.bf16 %v6139_v35, %v6139_v35 }
 0x3fd   :  { %v6142_v38 = vpack.c.bf16 %v6138_v50, %v6138_v50  ;;  %v6144_v54 = vpack.c.bf16 %v6140_v53, %v6140_v53 }
 0x3ff   :  { %6440 = vmatprep.mubr.bf16.mxu0 %v6142_v38  ;;  %6480 = vmatprep.mubr.bf16.mxu1 %v6144_v54 }
 0x400   :  { %6441 = vmatmul.mubr.bf16.vlgmr.msra.gmra.mrb[4].mxu0 %v6141_v55  ;;  %6481 = vmatmul.mubr.bf16.vlgmr.msra.gmra.mrb[4].mxu1 %v6143_v49 }
 0x4d3   :  { %v7353_v56 = vpop.f32.mrb[4].mxu0  ;;  %v7375_v47 = vpop.f32.mrb[4].mxu1 }
 0x4d4   :  { %v7354_v58 = vpop.f32.mrb[5].mxu0  ;;  %v7376_v59 = vpop.f32.mrb[5].mxu1 }
 0x4d5   :  { %v7355_v48 = vadd.f32 %v7354_v58, %v7353_v56  ;;  %v7377_v61 = vadd.f32 %v7376_v59, %v7375_v47  ;;  %v7356_v63 = vpop.f32.mrb[6].mxu0  ;;  %v7378_v44 = vpop.f32.mrb[6].mxu1 }
 0x4d6   :  { %v7357_v1 = vpop.f32.mrb[7].mxu0  ;;  %v7379_v51 = vpop.f32.mrb[7].mxu1 }
 0x4d7   :  { %v6443_v2 = vadd.f32 %v7355_v48, %v7304_v57 }
 0x4d9   :  { %v6483_v3 = vadd.f32 %v7377_v61, %v6443_v2 }
 0x4db   :  { %6488 = vst [vmem:[#allocation2] sm:$0x3] %v6483_v3 }
 0x4dc   :  { %8728 = shalt.err (!%p8725_p4)
}
 0x4dd   :  { %s8729_s16 = scalar_lea.hbm %s11445_s6, 32 }
 0x4de   :  { %p8730_p5 = scmp.ne.s32.totalorder %s11445_s6, %s8729_s16  ;;  %p8733_p6 = scmp.lt.u32.totalorder %s8729_s16, %s11445_s6 }
 0x4e0   :  { %p8735_p7 = pnand %p8733_p6, %p8730_p5 }
 0x4e2   :  { %8738 = shalt.err (!%p8735_p7)
}
 0x4e3   :  { %6498 = dma.vmem_to_hbm [thread:$0]  %s6496_s13, 32, %s11445_s6, [#allocation3]  }
 0x4e4   :  { %8739 = dma.done.wait [#allocation3], 32  }
 0x4e5   :  { %8740 = vsyncadd [#allocation3], 4294967264 }
 0x4e6   :  { %6502 = vsyncpa [#allocation3], 1 }

</bundles_post_ra>
